<compile_context>
chip_gen: v7x
topology: tpu7x:2x2x1
jax: 0.10.0
libtpu: 0.0.40
codegen_flags: <defaults>
</compile_context>

<pallas_src>
import math

import jax
import jax.numpy as jnp
from jax.experimental import pallas as pl
from jax.experimental.pallas import tpu as pltpu

# ----------------------------- model dims -----------------------------------
B = 2            # batch
N_MELS = 8       # whisper num_mel_bins (small synthetic)
T = 16           # input frames
D_MODEL = 32     # encoder hidden size == MLP input_size
N_HEADS = 4
HEAD_DIM = D_MODEL // N_HEADS
FFN = 64
N_LAYERS = 2
OUTPUT_DIMS = [16]   # MLPBase hidden dims
OUTPUT_SIZE = 4
LN_EPS = 1e-5
K_CONV = 3
T2 = (T + 2 * 1 - K_CONV) // 2 + 1   # frames after stride-2 conv  (= 8)
TP = T + 2                           # zero-padded frames per batch element
BT = B * T
BT2 = B * T2

_MM_DTYPE = jnp.bfloat16             # MXU operand dtype (f32 accumulation)
_LANES = 128                         # lane width of the packed param buffers
_W_ALIGN = 16                        # bf16 packed sublane tile (row alignment)


# ----------------------------- packed-buffer layout --------------------------
def _build_w_slots():
    """Static layout of the single bf16 weight buffer: name -> (row, rows, cols)."""
    slots, off = {}, 0

    def add(name, rows, cols):
        nonlocal off
        assert cols <= _LANES
        slots[name] = (off, rows, cols)
        off += ((rows + _W_ALIGN - 1) // _W_ALIGN) * _W_ALIGN

    add("conv1", N_MELS, K_CONV * D_MODEL)          # (C, 3D)  column-blocked taps
    add("conv2", D_MODEL, K_CONV * D_MODEL)         # (D, 3D)
    for k in range(K_CONV):                         # stride-2 row selectors
        add(f"sel{k}", BT2, BT)                     # block-diag over folded batch
    for l in range(N_LAYERS):
        add(f"qkv{l}", D_MODEL, 3 * D_MODEL)
        add(f"o{l}", D_MODEL, D_MODEL)
        add(f"fc1_{l}", D_MODEL, FFN)
        add(f"fc2_{l}", FFN, D_MODEL)
    add("avg", B, BT2)                              # block-diag mean-pool matrix
    in_dim = D_MODEL
    for i, d in enumerate(OUTPUT_DIMS):
        add(f"head{i}", in_dim, d)
        in_dim = d
    add("head_out", in_dim, _LANES)                 # padded to 128 lanes (zeros)
    return slots, off


W_SLOTS, W_ROWS = _build_w_slots()


def _build_f_rows():
    """Static layout of the single f32 bias/LN buffer: name -> row index."""
    rows, r = {}, 0

    def add(name, n=1):
        nonlocal r
        rows[name] = r
        r += n

    add("pos", BT2)                                 # pos-emb pre-tiled over batch
    add("conv1_b")
    add("conv2_b")
    for l in range(N_LAYERS):
        for nm in ("ln1_g", "ln1_b", "qkv_b", "o_b",
                   "ln2_g", "ln2_b", "fc1_b", "fc2_b"):
            add(f"{nm}{l}")
    add("lnf_g")
    add("lnf_b")
    for i in range(len(OUTPUT_DIMS)):
        add(f"head_b{i}")
    add("head_out_b")
    return rows, r


F_ROWS, F_NROWS = _build_f_rows()


# ----------------------------- in-kernel helpers -----------------------------
def _gelu(x):
    # TODO(synk): HF Whisper uses exact erf GELU; tanh approximation used here.
    c = math.sqrt(2.0 / math.pi)
    return 0.5 * x * (1.0 + jnp.tanh(c * (x + 0.044715 * x * x * x)))


def _mm(a, b):
    """bf16 x bf16 -> f32 MXU matmul."""
    return jnp.dot(a.astype(_MM_DTYPE), b.astype(_MM_DTYPE),
                   preferred_element_type=jnp.float32)


def _layer_norm(x, g, b):
    mu = jnp.mean(x, axis=-1, keepdims=True)
    var = jnp.mean((x - mu) ** 2, axis=-1, keepdims=True)
    return (x - mu) * jax.lax.rsqrt(var + LN_EPS) * g + b


# ----------------------------- fused kernel ----------------------------------
def _fused_kernel(xp_ref, w_ref, f_ref, out_ref):
    D = D_MODEL

    def wblk(name):                               # static slice of bf16 weights
        off, rows, cols = W_SLOTS[name]
        return w_ref[pl.ds(off, rows), :cols]

    def frow(name, cols=D_MODEL):                 # static (1, cols) f32 row
        return f_ref[pl.ds(F_ROWS[name], 1), :cols]

    # ---- conv1 (k=3, s=1, p=1): one matmul on the padded input, tap shift-add
    y1 = _mm(xp_ref[...], wblk("conv1"))                       # (B*TP, 3D)
    parts = []
    for b in range(B):
        base = b * TP
        parts.append(y1[base:base + T, 0:D]
                     + y1[base + 1:base + 1 + T, D:2 * D]
                     + y1[base + 2:base + 2 + T, 2 * D:3 * D])
    h1 = _gelu(jnp.concatenate(parts, axis=0) + frow("conv1_b"))   # (BT, D)

    # ---- conv2 (k=3, s=2, p=1): one cat matmul + 3 constant selector matmuls
    y2 = _mm(h1, wblk("conv2"))                                # (BT, 3D)
    acc = jnp.zeros((BT2, D), jnp.float32)
    for k in range(K_CONV):
        acc = acc + _mm(wblk(f"sel{k}"), y2[:, k * D:(k + 1) * D])
    h = _gelu(acc + frow("conv2_b")) + f_ref[pl.ds(F_ROWS["pos"], BT2), :D]

    # ---- encoder layers (batch folded into rows; attention per-batch/head) ---
    for l in range(N_LAYERS):
        xn = _layer_norm(h, frow(f"ln1_g{l}"), frow(f"ln1_b{l}"))
        qkv = _mm(xn, wblk(f"qkv{l}")) + frow(f"qkv_b{l}", 3 * D)   # (BT2, 3D)
        q = qkv[:, 0:D]                    # q scale already folded into weights
        kk = qkv[:, D:2 * D]               # k_proj bias slot is zero
        v = qkv[:, 2 * D:3 * D]
        o_w = wblk(f"o{l}")                                         # (D, D)
        attn_parts = []
        for b in range(B):
            r0 = b * T2
            qb, kb, vb = q[r0:r0 + T2], kk[r0:r0 + T2], v[r0:r0 + T2]
            acc_b = jnp.zeros((T2, D), jnp.float32)
            for hh in range(N_HEADS):
                lo, hi = hh * HEAD_DIM, (hh + 1) * HEAD_DIM
                s = _mm(qb[:, lo:hi], kb[:, lo:hi].T)               # (T2, T2)
                s = s - jnp.max(s, axis=-1, keepdims=True)
                p = jnp.exp(s)
                p = p * pl.reciprocal(jnp.sum(p, axis=-1, keepdims=True),
                                      approx=True)
                # output projection folded into the head loop (no lane concat)
                acc_b = acc_b + _mm(_mm(p, vb[:, lo:hi]), o_w[lo:hi, :])
            attn_parts.append(acc_b)
        h = h + jnp.concatenate(attn_parts, axis=0) + frow(f"o_b{l}")

        xn = _layer_norm(h, frow(f"ln2_g{l}"), frow(f"ln2_b{l}"))
        ff = _gelu(_mm(xn, wblk(f"fc1_{l}")) + frow(f"fc1_b{l}", FFN))
        h = h + _mm(ff, wblk(f"fc2_{l}")) + frow(f"fc2_b{l}")

    h = _layer_norm(h, frow("lnf_g"), frow("lnf_b"))               # (BT2, D)

    # ---- mean over time (block-diag matmul) + MLP head ------------------------
    z = _mm(wblk("avg"), h)                                        # (B, D)
    for i, d in enumerate(OUTPUT_DIMS):                            # dropout = id
        z = jnp.maximum(_mm(z, wblk(f"head{i}")) + frow(f"head_b{i}", d), 0.0)
    z = _mm(z, wblk("head_out")) + frow("head_out_b", _LANES)      # (B, 128)
    out_ref[...] = z.astype(out_ref.dtype)


# ----------------------------- wrapper ----------------------------------------
def mlp_net_whisper_forward(params, x):
    """x: (B, n_mels, T) NCW (PyTorch Whisper input) -> (B, OUTPUT_SIZE) logits."""
    assert x.shape == (B, N_MELS, T), x.shape
    # (B, C, T) -> (B, T, C), zero-pad one frame each side, fold batch into rows.
    xt = jnp.transpose(x, (0, 2, 1))
    xp = jnp.pad(xt, ((0, 0), (1, 1), (0, 0))).reshape(B * TP, N_MELS)

    out = pl.pallas_call(
        _fused_kernel,
        out_shape=jax.ShapeDtypeStruct((B, _LANES), jnp.float32),
        grid=(1,),
        in_specs=[
            pl.BlockSpec((B * TP, N_MELS), lambda i: (0, 0)),
            pl.BlockSpec((W_ROWS, _LANES), lambda i: (0, 0)),
            pl.BlockSpec((F_NROWS, _LANES), lambda i: (0, 0)),
        ],
        out_specs=pl.BlockSpec((B, _LANES), lambda i: (0, 0)),
        compiler_params=pltpu.CompilerParams(
            dimension_semantics=("arbitrary",)),
    )(xp, params["wbuf"], params["fbuf"])
    return out[:, :OUTPUT_SIZE]


# ----------------------------- parameter init ---------------------------------
def init_params(key):
    keys = iter(jax.random.split(key, 64))

    def nrm(shape, scale=0.02):
        return scale * jax.random.normal(next(keys), shape, jnp.float32)

    wbuf = jnp.zeros((W_ROWS, _LANES), jnp.float32)
    fbuf = jnp.zeros((F_NROWS, _LANES), jnp.float32)

    def put_w(buf, name, val):
        off, rows, cols = W_SLOTS[name]
        assert val.shape == (rows, cols), (name, val.shape, (rows, cols))
        return buf.at[off:off + rows, :cols].set(val)

    def put_f(buf, name, val):
        r = F_ROWS[name]
        val = jnp.asarray(val, jnp.float32)
        return buf.at[r:r + val.shape[0], :val.shape[1]].set(val)

    # conv weights, PyTorch layout (Cout, Cin, K) -> column-blocked (Cin, K*Cout).
    w1 = nrm((D_MODEL, N_MELS, K_CONV))
    wbuf = put_w(wbuf, "conv1",
                 jnp.concatenate([w1[:, :, k].T for k in range(K_CONV)], axis=1))
    w2 = nrm((D_MODEL, D_MODEL, K_CONV))
    wbuf = put_w(wbuf, "conv2",
                 jnp.concatenate([w2[:, :, k].T for k in range(K_CONV)], axis=1))
    # conv biases stay zero (rows already zero in fbuf).

    # stride-2 / pad-1 row selectors, block-diagonal over the folded batch:
    # sel_k[(b,j), (b,t)] = 1 iff t == 2*j + k - 1 (all-zero rows model padding).
    jj = jnp.arange(T2)[:, None]
    tt = jnp.arange(T)[None, :]
    for k in range(K_CONV):
        sel = (tt == 2 * jj + k - 1).astype(jnp.float32)            # (T2, T)
        wbuf = put_w(wbuf, f"sel{k}",
                     jnp.kron(jnp.eye(B, dtype=jnp.float32), sel))  # (BT2, BT)

    # positional embedding, pre-tiled over the folded batch rows.
    fbuf = put_f(fbuf, "pos", jnp.tile(nrm((T2, D_MODEL)), (B, 1)))

    scale = HEAD_DIM ** -0.5
    for l in range(N_LAYERS):
        # fused q/k/v projection (D, 3D); 1/sqrt(head_dim) folded into q columns
        # (would also apply to the q bias); k_proj bias slot kept zero (bias=False).
        qw = nrm((D_MODEL, D_MODEL)) * scale
        kw = nrm((D_MODEL, D_MODEL))
        vw = nrm((D_MODEL, D_MODEL))
        wbuf = put_w(wbuf, f"qkv{l}", jnp.concatenate([qw, kw, vw], axis=1))
        wbuf = put_w(wbuf, f"o{l}", nrm((D_MODEL, D_MODEL)))
        wbuf = put_w(wbuf, f"fc1_{l}", nrm((D_MODEL, FFN)))
        wbuf = put_w(wbuf, f"fc2_{l}", nrm((FFN, D_MODEL)))
        fbuf = put_f(fbuf, f"ln1_g{l}", jnp.ones((1, D_MODEL)))
        fbuf = put_f(fbuf, f"ln2_g{l}", jnp.ones((1, D_MODEL)))
        # all biases / LN betas stay zero.

    fbuf = put_f(fbuf, "lnf_g", jnp.ones((1, D_MODEL)))

    # MLPBase head: Linear->ReLU(->Dropout) per hidden dim, final Linear
    # (final weight/bias zero-padded to 128 lanes for a lane-dense output store).
    in_dim = D_MODEL
    for i, d in enumerate(OUTPUT_DIMS):
        wbuf = put_w(wbuf, f"head{i}", nrm((in_dim, d)))
        in_dim = d
    head_out = jnp.zeros((in_dim, _LANES), jnp.float32)
    head_out = head_out.at[:, :OUTPUT_SIZE].set(nrm((in_dim, OUTPUT_SIZE)))
    wbuf = put_w(wbuf, "head_out", head_out)

    # block-diagonal mean-pool matrix over each batch element's T2 frames.
    avg = jnp.kron(jnp.eye(B, dtype=jnp.float32),
                   jnp.full((1, T2), 1.0 / T2, jnp.float32))
    wbuf = put_w(wbuf, "avg", avg)

    return {"wbuf": wbuf.astype(_MM_DTYPE), "fbuf": fbuf}


# ----------------------------- main -------------------------------------------
if __name__ == "__main__":
    key = jax.random.PRNGKey(0)
    pkey, xkey = jax.random.split(key)
    params = init_params(pkey)
    # PyTorch Whisper encoder input: (batch, num_mel_bins, frames) -- NCW
    x = jax.random.normal(xkey, (B, N_MELS, T), jnp.float32)

    logits = jax.jit(mlp_net_whisper_forward)(params, x)
    logits = jax.block_until_ready(logits)

    assert logits.shape == (B, OUTPUT_SIZE), logits.shape
    assert bool(jnp.all(jnp.isfinite(logits)))
    print("KERNEL_OK")
</pallas_src>

<mosaic_0001>
module attributes {stable_mosaic.version = 11 : i64} {
  func.func @_fused_kernel(%arg0: i32, %arg1: memref<36x8xf32, #tpu.memory_space<vmem>>, %arg2: memref<480x128xbf16, #tpu.memory_space<vmem>>, %arg3: memref<38x128xf32, #tpu.memory_space<vmem>>, %arg4: memref<2x128xf32, #tpu.memory_space<vmem>>) attributes {dimension_semantics = [#tpu.dimension_semantics<arbitrary>], iteration_bounds = array<i64: 1>, scalar_prefetch = 0 : i64, scratch_operands = 0 : i64, tpu.core_type = #tpu.core_type<tc>, window_params = [{pipeline_mode = #tpu.pipeline_mode<synchronous>, transform_indices = @transform_0, window_bounds = array<i64: 36, 8>}, {pipeline_mode = #tpu.pipeline_mode<synchronous>, transform_indices = @transform_1, window_bounds = array<i64: 480, 128>}, {pipeline_mode = #tpu.pipeline_mode<synchronous>, transform_indices = @transform_2, window_bounds = array<i64: 38, 128>}, {pipeline_mode = #tpu.pipeline_mode<synchronous>, transform_indices = @transform_3, window_bounds = array<i64: 2, 128>}]} {
    %c0 = arith.constant 0 : index
    %c0_0 = arith.constant 0 : index
    %0 = vector.load %arg1[%c0, %c0_0] : memref<36x8xf32, #tpu.memory_space<vmem>>, vector<36x8xf32>
    %c0_1 = arith.constant 0 : index
    %c0_2 = arith.constant 0 : index
    %1 = vector.load %arg2[%c0_1, %c0_2] : memref<480x128xbf16, #tpu.memory_space<vmem>>, vector<8x96xbf16>
    %2 = arith.truncf %0 : vector<36x8xf32> to vector<36x8xbf16>
    %cst = arith.constant dense<0.000000e+00> : vector<36x96xf32>
    %3 = tpu.matmul %2, %1, %cst {dimension_numbers = #tpu.dot_dimension_numbers<[1], [0], [0], [1], [0, 0, 1, 1], [], []>} : vector<36x8xbf16>, vector<8x96xbf16>, vector<36x96xf32> -> vector<36x96xf32>
    %4 = vector.extract_strided_slice %3 {offsets = [0, 0], sizes = [16, 32], strides = [1, 1]} : vector<36x96xf32> to vector<16x32xf32>
    %5 = vector.extract_strided_slice %3 {offsets = [1, 32], sizes = [16, 32], strides = [1, 1]} : vector<36x96xf32> to vector<16x32xf32>
    %6 = arith.addf %4, %5 : vector<16x32xf32>
    %7 = vector.extract_strided_slice %3 {offsets = [2, 64], sizes = [16, 32], strides = [1, 1]} : vector<36x96xf32> to vector<16x32xf32>
    %8 = arith.addf %6, %7 : vector<16x32xf32>
    %9 = vector.extract_strided_slice %3 {offsets = [18, 0], sizes = [16, 32], strides = [1, 1]} : vector<36x96xf32> to vector<16x32xf32>
    %10 = vector.extract_strided_slice %3 {offsets = [19, 32], sizes = [16, 32], strides = [1, 1]} : vector<36x96xf32> to vector<16x32xf32>
    %11 = arith.addf %9, %10 : vector<16x32xf32>
    %12 = vector.extract_strided_slice %3 {offsets = [20, 64], sizes = [16, 32], strides = [1, 1]} : vector<36x96xf32> to vector<16x32xf32>
    %13 = arith.addf %11, %12 : vector<16x32xf32>
    %14 = tpu.concatenate %8, %13 in 0 : vector<16x32xf32>, vector<16x32xf32> -> vector<32x32xf32>
    %c16 = arith.constant 16 : index
    %c0_3 = arith.constant 0 : index
    %15 = vector.load %arg3[%c16, %c0_3] : memref<38x128xf32, #tpu.memory_space<vmem>>, vector<1x32xf32>
    %16 = vector.broadcast %15 : vector<1x32xf32> to vector<32x32xf32>
    %17 = arith.addf %14, %16 : vector<32x32xf32>
    %cst_4 = arith.constant 5.000000e-01 : f32
    %18 = vector.broadcast %cst_4 : f32 to vector<32x32xf32>
    %19 = arith.mulf %18, %17 : vector<32x32xf32>
    %cst_5 = arith.constant 4.471500e-02 : f32
    %20 = vector.broadcast %cst_5 : f32 to vector<32x32xf32>
    %21 = arith.mulf %20, %17 : vector<32x32xf32>
    %22 = arith.mulf %21, %17 : vector<32x32xf32>
    %23 = arith.mulf %22, %17 : vector<32x32xf32>
    %24 = arith.addf %17, %23 : vector<32x32xf32>
    %cst_6 = arith.constant 0.797884583 : f32
    %25 = vector.broadcast %cst_6 : f32 to vector<32x32xf32>
    %26 = arith.mulf %25, %24 : vector<32x32xf32>
    %27 = math.tanh %26 : vector<32x32xf32>
    %cst_7 = arith.constant 1.000000e+00 : f32
    %28 = vector.broadcast %cst_7 : f32 to vector<32x32xf32>
    %29 = arith.addf %28, %27 : vector<32x32xf32>
    %30 = arith.mulf %19, %29 : vector<32x32xf32>
    %c16_8 = arith.constant 16 : index
    %c0_9 = arith.constant 0 : index
    %31 = vector.load %arg2[%c16_8, %c0_9] : memref<480x128xbf16, #tpu.memory_space<vmem>>, vector<32x96xbf16>
    %32 = arith.truncf %30 : vector<32x32xf32> to vector<32x32xbf16>
    %cst_10 = arith.constant dense<0.000000e+00> : vector<32x96xf32>
    %33 = tpu.matmul %32, %31, %cst_10 {dimension_numbers = #tpu.dot_dimension_numbers<[1], [0], [0], [1], [0, 0, 1, 1], [], []>} : vector<32x32xbf16>, vector<32x96xbf16>, vector<32x96xf32> -> vector<32x96xf32>
    %cst_11 = arith.constant 0.000000e+00 : f32
    %34 = vector.broadcast %cst_11 : f32 to vector<16x32xf32>
    %c48 = arith.constant 48 : index
    %c0_12 = arith.constant 0 : index
    %35 = vector.load %arg2[%c48, %c0_12] : memref<480x128xbf16, #tpu.memory_space<vmem>>, vector<16x32xbf16>
    %36 = vector.extract_strided_slice %33 {offsets = [0, 0], sizes = [32, 32], strides = [1, 1]} : vector<32x96xf32> to vector<32x32xf32>
    %37 = arith.truncf %36 : vector<32x32xf32> to vector<32x32xbf16>
    %cst_13 = arith.constant dense<0.000000e+00> : vector<16x32xf32>
    %38 = tpu.matmul %35, %37, %cst_13 {dimension_numbers = #tpu.dot_dimension_numbers<[1], [0], [0], [1], [0, 0, 1, 1], [], []>} : vector<16x32xbf16>, vector<32x32xbf16>, vector<16x32xf32> -> vector<16x32xf32>
    %39 = arith.addf %34, %38 : vector<16x32xf32>
    %c64 = arith.constant 64 : index
    %c0_14 = arith.constant 0 : index
    %40 = vector.load %arg2[%c64, %c0_14] : memref<480x128xbf16, #tpu.memory_space<vmem>>, vector<16x32xbf16>
    %41 = vector.extract_strided_slice %33 {offsets = [0, 32], sizes = [32, 32], strides = [1, 1]} : vector<32x96xf32> to vector<32x32xf32>
    %42 = arith.truncf %41 : vector<32x32xf32> to vector<32x32xbf16>
    %cst_15 = arith.constant dense<0.000000e+00> : vector<16x32xf32>
    %43 = tpu.matmul %40, %42, %cst_15 {dimension_numbers = #tpu.dot_dimension_numbers<[1], [0], [0], [1], [0, 0, 1, 1], [], []>} : vector<16x32xbf16>, vector<32x32xbf16>, vector<16x32xf32> -> vector<16x32xf32>
    %44 = arith.addf %39, %43 : vector<16x32xf32>
    %c80 = arith.constant 80 : index
    %c0_16 = arith.constant 0 : index
    %45 = vector.load %arg2[%c80, %c0_16] : memref<480x128xbf16, #tpu.memory_space<vmem>>, vector<16x32xbf16>
    %46 = vector.extract_strided_slice %33 {offsets = [0, 64], sizes = [32, 32], strides = [1, 1]} : vector<32x96xf32> to vector<32x32xf32>
    %47 = arith.truncf %46 : vector<32x32xf32> to vector<32x32xbf16>
    %cst_17 = arith.constant dense<0.000000e+00> : vector<16x32xf32>
    %48 = tpu.matmul %45, %47, %cst_17 {dimension_numbers = #tpu.dot_dimension_numbers<[1], [0], [0], [1], [0, 0, 1, 1], [], []>} : vector<16x32xbf16>, vector<32x32xbf16>, vector<16x32xf32> -> vector<16x32xf32>
    %49 = arith.addf %44, %48 : vector<16x32xf32>
    %c17 = arith.constant 17 : index
    %c0_18 = arith.constant 0 : index
    %50 = vector.load %arg3[%c17, %c0_18] : memref<38x128xf32, #tpu.memory_space<vmem>>, vector<1x32xf32>
    %51 = vector.broadcast %50 : vector<1x32xf32> to vector<16x32xf32>
    %52 = arith.addf %49, %51 : vector<16x32xf32>
    %cst_19 = arith.constant 5.000000e-01 : f32
    %53 = vector.broadcast %cst_19 : f32 to vector<16x32xf32>
    %54 = arith.mulf %53, %52 : vector<16x32xf32>
    %cst_20 = arith.constant 4.471500e-02 : f32
    %55 = vector.broadcast %cst_20 : f32 to vector<16x32xf32>
    %56 = arith.mulf %55, %52 : vector<16x32xf32>
    %57 = arith.mulf %56, %52 : vector<16x32xf32>
    %58 = arith.mulf %57, %52 : vector<16x32xf32>
    %59 = arith.addf %52, %58 : vector<16x32xf32>
    %cst_21 = arith.constant 0.797884583 : f32
    %60 = vector.broadcast %cst_21 : f32 to vector<16x32xf32>
    %61 = arith.mulf %60, %59 : vector<16x32xf32>
    %62 = math.tanh %61 : vector<16x32xf32>
    %cst_22 = arith.constant 1.000000e+00 : f32
    %63 = vector.broadcast %cst_22 : f32 to vector<16x32xf32>
    %64 = arith.addf %63, %62 : vector<16x32xf32>
    %65 = arith.mulf %54, %64 : vector<16x32xf32>
    %c0_23 = arith.constant 0 : index
    %c0_24 = arith.constant 0 : index
    %66 = vector.load %arg3[%c0_23, %c0_24] : memref<38x128xf32, #tpu.memory_space<vmem>>, vector<16x32xf32>
    %67 = arith.addf %65, %66 : vector<16x32xf32>
    %c18 = arith.constant 18 : index
    %c0_25 = arith.constant 0 : index
    %68 = vector.load %arg3[%c18, %c0_25] : memref<38x128xf32, #tpu.memory_space<vmem>>, vector<1x32xf32>
    %c19 = arith.constant 19 : index
    %c0_26 = arith.constant 0 : index
    %69 = vector.load %arg3[%c19, %c0_26] : memref<38x128xf32, #tpu.memory_space<vmem>>, vector<1x32xf32>
    %cst_27 = arith.constant dense<0.000000e+00> : vector<16xf32>
    %70 = vector.multi_reduction <add>, %67, %cst_27 [1] : vector<16x32xf32> to vector<16xf32>
    %71 = vector.shape_cast %70 : vector<16xf32> to vector<16x1xf32>
    %cst_28 = arith.constant 3.200000e+01 : f32
    %72 = vector.broadcast %cst_28 : f32 to vector<16x1xf32>
    %73 = arith.divf %71, %72 : vector<16x1xf32>
    %74 = vector.broadcast %73 : vector<16x1xf32> to vector<16x32xf32>
    %75 = arith.subf %67, %74 : vector<16x32xf32>
    %76 = arith.mulf %75, %75 : vector<16x32xf32>
    %cst_29 = arith.constant dense<0.000000e+00> : vector<16xf32>
    %77 = vector.multi_reduction <add>, %76, %cst_29 [1] : vector<16x32xf32> to vector<16xf32>
    %78 = vector.shape_cast %77 : vector<16xf32> to vector<16x1xf32>
    %cst_30 = arith.constant 3.200000e+01 : f32
    %79 = vector.broadcast %cst_30 : f32 to vector<16x1xf32>
    %80 = arith.divf %78, %79 : vector<16x1xf32>
    %81 = vector.broadcast %73 : vector<16x1xf32> to vector<16x32xf32>
    %82 = arith.subf %67, %81 : vector<16x32xf32>
    %cst_31 = arith.constant 9.99999974E-6 : f32
    %83 = vector.broadcast %cst_31 : f32 to vector<16x1xf32>
    %84 = arith.addf %80, %83 : vector<16x1xf32>
    %85 = math.rsqrt %84 : vector<16x1xf32>
    %86 = vector.broadcast %85 : vector<16x1xf32> to vector<16x32xf32>
    %87 = arith.mulf %82, %86 : vector<16x32xf32>
    %88 = vector.broadcast %68 : vector<1x32xf32> to vector<16x32xf32>
    %89 = arith.mulf %87, %88 : vector<16x32xf32>
    %90 = vector.broadcast %69 : vector<1x32xf32> to vector<16x32xf32>
    %91 = arith.addf %89, %90 : vector<16x32xf32>
    %c96 = arith.constant 96 : index
    %c0_32 = arith.constant 0 : index
    %92 = vector.load %arg2[%c96, %c0_32] : memref<480x128xbf16, #tpu.memory_space<vmem>>, vector<32x96xbf16>
    %93 = arith.truncf %91 : vector<16x32xf32> to vector<16x32xbf16>
    %cst_33 = arith.constant dense<0.000000e+00> : vector<16x96xf32>
    %94 = tpu.matmul %93, %92, %cst_33 {dimension_numbers = #tpu.dot_dimension_numbers<[1], [0], [0], [1], [0, 0, 1, 1], [], []>} : vector<16x32xbf16>, vector<32x96xbf16>, vector<16x96xf32> -> vector<16x96xf32>
    %c20 = arith.constant 20 : index
    %c0_34 = arith.constant 0 : index
    %95 = vector.load %arg3[%c20, %c0_34] : memref<38x128xf32, #tpu.memory_space<vmem>>, vector<1x96xf32>
    %96 = vector.broadcast %95 : vector<1x96xf32> to vector<16x96xf32>
    %97 = arith.addf %94, %96 : vector<16x96xf32>
    %98 = vector.extract_strided_slice %97 {offsets = [0, 0], sizes = [16, 32], strides = [1, 1]} : vector<16x96xf32> to vector<16x32xf32>
    %99 = vector.extract_strided_slice %97 {offsets = [0, 32], sizes = [16, 32], strides = [1, 1]} : vector<16x96xf32> to vector<16x32xf32>
    %100 = vector.extract_strided_slice %97 {offsets = [0, 64], sizes = [16, 32], strides = [1, 1]} : vector<16x96xf32> to vector<16x32xf32>
    %c128 = arith.constant 128 : index
    %c0_35 = arith.constant 0 : index
    %101 = vector.load %arg2[%c128, %c0_35] : memref<480x128xbf16, #tpu.memory_space<vmem>>, vector<32x32xbf16>
    %102 = vector.extract_strided_slice %98 {offsets = [0, 0], sizes = [8, 32], strides = [1, 1]} : vector<16x32xf32> to vector<8x32xf32>
    %103 = vector.extract_strided_slice %99 {offsets = [0, 0], sizes = [8, 32], strides = [1, 1]} : vector<16x32xf32> to vector<8x32xf32>
    %104 = vector.extract_strided_slice %100 {offsets = [0, 0], sizes = [8, 32], strides = [1, 1]} : vector<16x32xf32> to vector<8x32xf32>
    %cst_36 = arith.constant 0.000000e+00 : f32
    %105 = vector.broadcast %cst_36 : f32 to vector<8x32xf32>
    %106 = vector.extract_strided_slice %102 {offsets = [0, 0], sizes = [8, 8], strides = [1, 1]} : vector<8x32xf32> to vector<8x8xf32>
    %107 = vector.extract_strided_slice %103 {offsets = [0, 0], sizes = [8, 8], strides = [1, 1]} : vector<8x32xf32> to vector<8x8xf32>
    %108 = tpu.transpose %107, [1, 0] : vector<8x8xf32> -> vector<8x8xf32>
    %109 = arith.truncf %106 : vector<8x8xf32> to vector<8x8xbf16>
    %110 = arith.truncf %108 : vector<8x8xf32> to vector<8x8xbf16>
    %cst_37 = arith.constant dense<0.000000e+00> : vector<8x8xf32>
    %111 = tpu.matmul %109, %110, %cst_37 {dimension_numbers = #tpu.dot_dimension_numbers<[1], [0], [0], [1], [0, 0, 1, 1], [], []>} : vector<8x8xbf16>, vector<8x8xbf16>, vector<8x8xf32> -> vector<8x8xf32>
    %cst_38 = arith.constant dense<0xFF800000> : vector<8xf32>
    %112 = vector.multi_reduction <maximumf>, %111, %cst_38 [1] : vector<8x8xf32> to vector<8xf32>
    %113 = vector.shape_cast %112 : vector<8xf32> to vector<8x1xf32>
    %114 = vector.broadcast %113 : vector<8x1xf32> to vector<8x8xf32>
    %115 = arith.subf %111, %114 : vector<8x8xf32>
    %116 = math.exp %115 : vector<8x8xf32>
    %cst_39 = arith.constant dense<0.000000e+00> : vector<8xf32>
    %117 = vector.multi_reduction <add>, %116, %cst_39 [1] : vector<8x8xf32> to vector<8xf32>
    %118 = vector.shape_cast %117 : vector<8xf32> to vector<8x1xf32>
    %119 = tpu.reciprocal %118 {approx = true} : vector<8x1xf32> -> vector<8x1xf32>
    %120 = vector.broadcast %119 : vector<8x1xf32> to vector<8x8xf32>
    %121 = arith.mulf %116, %120 : vector<8x8xf32>
    %122 = vector.extract_strided_slice %104 {offsets = [0, 0], sizes = [8, 8], strides = [1, 1]} : vector<8x32xf32> to vector<8x8xf32>
    %123 = arith.truncf %121 : vector<8x8xf32> to vector<8x8xbf16>
    %124 = arith.truncf %122 : vector<8x8xf32> to vector<8x8xbf16>
    %cst_40 = arith.constant dense<0.000000e+00> : vector<8x8xf32>
    %125 = tpu.matmul %123, %124, %cst_40 {dimension_numbers = #tpu.dot_dimension_numbers<[1], [0], [0], [1], [0, 0, 1, 1], [], []>} : vector<8x8xbf16>, vector<8x8xbf16>, vector<8x8xf32> -> vector<8x8xf32>
    %126 = vector.extract_strided_slice %101 {offsets = [0, 0], sizes = [8, 32], strides = [1, 1]} : vector<32x32xbf16> to vector<8x32xbf16>
    %127 = arith.truncf %125 : vector<8x8xf32> to vector<8x8xbf16>
    %cst_41 = arith.constant dense<0.000000e+00> : vector<8x32xf32>
    %128 = tpu.matmul %127, %126, %cst_41 {dimension_numbers = #tpu.dot_dimension_numbers<[1], [0], [0], [1], [0, 0, 1, 1], [], []>} : vector<8x8xbf16>, vector<8x32xbf16>, vector<8x32xf32> -> vector<8x32xf32>
    %129 = arith.addf %105, %128 : vector<8x32xf32>
    %130 = vector.extract_strided_slice %102 {offsets = [0, 8], sizes = [8, 8], strides = [1, 1]} : vector<8x32xf32> to vector<8x8xf32>
    %131 = vector.extract_strided_slice %103 {offsets = [0, 8], sizes = [8, 8], strides = [1, 1]} : vector<8x32xf32> to vector<8x8xf32>
    %132 = tpu.transpose %131, [1, 0] : vector<8x8xf32> -> vector<8x8xf32>
    %133 = arith.truncf %130 : vector<8x8xf32> to vector<8x8xbf16>
    %134 = arith.truncf %132 : vector<8x8xf32> to vector<8x8xbf16>
    %cst_42 = arith.constant dense<0.000000e+00> : vector<8x8xf32>
    %135 = tpu.matmul %133, %134, %cst_42 {dimension_numbers = #tpu.dot_dimension_numbers<[1], [0], [0], [1], [0, 0, 1, 1], [], []>} : vector<8x8xbf16>, vector<8x8xbf16>, vector<8x8xf32> -> vector<8x8xf32>
    %cst_43 = arith.constant dense<0xFF800000> : vector<8xf32>
    %136 = vector.multi_reduction <maximumf>, %135, %cst_43 [1] : vector<8x8xf32> to vector<8xf32>
    %137 = vector.shape_cast %136 : vector<8xf32> to vector<8x1xf32>
    %138 = vector.broadcast %137 : vector<8x1xf32> to vector<8x8xf32>
    %139 = arith.subf %135, %138 : vector<8x8xf32>
    %140 = math.exp %139 : vector<8x8xf32>
    %cst_44 = arith.constant dense<0.000000e+00> : vector<8xf32>
    %141 = vector.multi_reduction <add>, %140, %cst_44 [1] : vector<8x8xf32> to vector<8xf32>
    %142 = vector.shape_cast %141 : vector<8xf32> to vector<8x1xf32>
    %143 = tpu.reciprocal %142 {approx = true} : vector<8x1xf32> -> vector<8x1xf32>
    %144 = vector.broadcast %143 : vector<8x1xf32> to vector<8x8xf32>
    %145 = arith.mulf %140, %144 : vector<8x8xf32>
    %146 = vector.extract_strided_slice %104 {offsets = [0, 8], sizes = [8, 8], strides = [1, 1]} : vector<8x32xf32> to vector<8x8xf32>
    %147 = arith.truncf %145 : vector<8x8xf32> to vector<8x8xbf16>
    %148 = arith.truncf %146 : vector<8x8xf32> to vector<8x8xbf16>
    %cst_45 = arith.constant dense<0.000000e+00> : vector<8x8xf32>
    %149 = tpu.matmul %147, %148, %cst_45 {dimension_numbers = #tpu.dot_dimension_numbers<[1], [0], [0], [1], [0, 0, 1, 1], [], []>} : vector<8x8xbf16>, vector<8x8xbf16>, vector<8x8xf32> -> vector<8x8xf32>
    %150 = vector.extract_strided_slice %101 {offsets = [8, 0], sizes = [8, 32], strides = [1, 1]} : vector<32x32xbf16> to vector<8x32xbf16>
    %151 = arith.truncf %149 : vector<8x8xf32> to vector<8x8xbf16>
    %cst_46 = arith.constant dense<0.000000e+00> : vector<8x32xf32>
    %152 = tpu.matmul %151, %150, %cst_46 {dimension_numbers = #tpu.dot_dimension_numbers<[1], [0], [0], [1], [0, 0, 1, 1], [], []>} : vector<8x8xbf16>, vector<8x32xbf16>, vector<8x32xf32> -> vector<8x32xf32>
    %153 = arith.addf %129, %152 : vector<8x32xf32>
    %154 = vector.extract_strided_slice %102 {offsets = [0, 16], sizes = [8, 8], strides = [1, 1]} : vector<8x32xf32> to vector<8x8xf32>
    %155 = vector.extract_strided_slice %103 {offsets = [0, 16], sizes = [8, 8], strides = [1, 1]} : vector<8x32xf32> to vector<8x8xf32>
    %156 = tpu.transpose %155, [1, 0] : vector<8x8xf32> -> vector<8x8xf32>
    %157 = arith.truncf %154 : vector<8x8xf32> to vector<8x8xbf16>
    %158 = arith.truncf %156 : vector<8x8xf32> to vector<8x8xbf16>
    %cst_47 = arith.constant dense<0.000000e+00> : vector<8x8xf32>
    %159 = tpu.matmul %157, %158, %cst_47 {dimension_numbers = #tpu.dot_dimension_numbers<[1], [0], [0], [1], [0, 0, 1, 1], [], []>} : vector<8x8xbf16>, vector<8x8xbf16>, vector<8x8xf32> -> vector<8x8xf32>
    %cst_48 = arith.constant dense<0xFF800000> : vector<8xf32>
    %160 = vector.multi_reduction <maximumf>, %159, %cst_48 [1] : vector<8x8xf32> to vector<8xf32>
    %161 = vector.shape_cast %160 : vector<8xf32> to vector<8x1xf32>
    %162 = vector.broadcast %161 : vector<8x1xf32> to vector<8x8xf32>
    %163 = arith.subf %159, %162 : vector<8x8xf32>
    %164 = math.exp %163 : vector<8x8xf32>
    %cst_49 = arith.constant dense<0.000000e+00> : vector<8xf32>
    %165 = vector.multi_reduction <add>, %164, %cst_49 [1] : vector<8x8xf32> to vector<8xf32>
    %166 = vector.shape_cast %165 : vector<8xf32> to vector<8x1xf32>
    %167 = tpu.reciprocal %166 {approx = true} : vector<8x1xf32> -> vector<8x1xf32>
    %168 = vector.broadcast %167 : vector<8x1xf32> to vector<8x8xf32>
    %169 = arith.mulf %164, %168 : vector<8x8xf32>
    %170 = vector.extract_strided_slice %104 {offsets = [0, 16], sizes = [8, 8], strides = [1, 1]} : vector<8x32xf32> to vector<8x8xf32>
    %171 = arith.truncf %169 : vector<8x8xf32> to vector<8x8xbf16>
    %172 = arith.truncf %170 : vector<8x8xf32> to vector<8x8xbf16>
    %cst_50 = arith.constant dense<0.000000e+00> : vector<8x8xf32>
    %173 = tpu.matmul %171, %172, %cst_50 {dimension_numbers = #tpu.dot_dimension_numbers<[1], [0], [0], [1], [0, 0, 1, 1], [], []>} : vector<8x8xbf16>, vector<8x8xbf16>, vector<8x8xf32> -> vector<8x8xf32>
    %174 = vector.extract_strided_slice %101 {offsets = [16, 0], sizes = [8, 32], strides = [1, 1]} : vector<32x32xbf16> to vector<8x32xbf16>
    %175 = arith.truncf %173 : vector<8x8xf32> to vector<8x8xbf16>
    %cst_51 = arith.constant dense<0.000000e+00> : vector<8x32xf32>
    %176 = tpu.matmul %175, %174, %cst_51 {dimension_numbers = #tpu.dot_dimension_numbers<[1], [0], [0], [1], [0, 0, 1, 1], [], []>} : vector<8x8xbf16>, vector<8x32xbf16>, vector<8x32xf32> -> vector<8x32xf32>
    %177 = arith.addf %153, %176 : vector<8x32xf32>
    %178 = vector.extract_strided_slice %102 {offsets = [0, 24], sizes = [8, 8], strides = [1, 1]} : vector<8x32xf32> to vector<8x8xf32>
    %179 = vector.extract_strided_slice %103 {offsets = [0, 24], sizes = [8, 8], strides = [1, 1]} : vector<8x32xf32> to vector<8x8xf32>
    %180 = tpu.transpose %179, [1, 0] : vector<8x8xf32> -> vector<8x8xf32>
    %181 = arith.truncf %178 : vector<8x8xf32> to vector<8x8xbf16>
    %182 = arith.truncf %180 : vector<8x8xf32> to vector<8x8xbf16>
    %cst_52 = arith.constant dense<0.000000e+00> : vector<8x8xf32>
    %183 = tpu.matmul %181, %182, %cst_52 {dimension_numbers = #tpu.dot_dimension_numbers<[1], [0], [0], [1], [0, 0, 1, 1], [], []>} : vector<8x8xbf16>, vector<8x8xbf16>, vector<8x8xf32> -> vector<8x8xf32>
    %cst_53 = arith.constant dense<0xFF800000> : vector<8xf32>
    %184 = vector.multi_reduction <maximumf>, %183, %cst_53 [1] : vector<8x8xf32> to vector<8xf32>
    %185 = vector.shape_cast %184 : vector<8xf32> to vector<8x1xf32>
    %186 = vector.broadcast %185 : vector<8x1xf32> to vector<8x8xf32>
    %187 = arith.subf %183, %186 : vector<8x8xf32>
    %188 = math.exp %187 : vector<8x8xf32>
    %cst_54 = arith.constant dense<0.000000e+00> : vector<8xf32>
    %189 = vector.multi_reduction <add>, %188, %cst_54 [1] : vector<8x8xf32> to vector<8xf32>
    %190 = vector.shape_cast %189 : vector<8xf32> to vector<8x1xf32>
    %191 = tpu.reciprocal %190 {approx = true} : vector<8x1xf32> -> vector<8x1xf32>
    %192 = vector.broadcast %191 : vector<8x1xf32> to vector<8x8xf32>
    %193 = arith.mulf %188, %192 : vector<8x8xf32>
    %194 = vector.extract_strided_slice %104 {offsets = [0, 24], sizes = [8, 8], strides = [1, 1]} : vector<8x32xf32> to vector<8x8xf32>
    %195 = arith.truncf %193 : vector<8x8xf32> to vector<8x8xbf16>
    %196 = arith.truncf %194 : vector<8x8xf32> to vector<8x8xbf16>
    %cst_55 = arith.constant dense<0.000000e+00> : vector<8x8xf32>
    %197 = tpu.matmul %195, %196, %cst_55 {dimension_numbers = #tpu.dot_dimension_numbers<[1], [0], [0], [1], [0, 0, 1, 1], [], []>} : vector<8x8xbf16>, vector<8x8xbf16>, vector<8x8xf32> -> vector<8x8xf32>
    %198 = vector.extract_strided_slice %101 {offsets = [24, 0], sizes = [8, 32], strides = [1, 1]} : vector<32x32xbf16> to vector<8x32xbf16>
    %199 = arith.truncf %197 : vector<8x8xf32> to vector<8x8xbf16>
    %cst_56 = arith.constant dense<0.000000e+00> : vector<8x32xf32>
    %200 = tpu.matmul %199, %198, %cst_56 {dimension_numbers = #tpu.dot_dimension_numbers<[1], [0], [0], [1], [0, 0, 1, 1], [], []>} : vector<8x8xbf16>, vector<8x32xbf16>, vector<8x32xf32> -> vector<8x32xf32>
    %201 = arith.addf %177, %200 : vector<8x32xf32>
    %202 = vector.extract_strided_slice %98 {offsets = [8, 0], sizes = [8, 32], strides = [1, 1]} : vector<16x32xf32> to vector<8x32xf32>
    %203 = vector.extract_strided_slice %99 {offsets = [8, 0], sizes = [8, 32], strides = [1, 1]} : vector<16x32xf32> to vector<8x32xf32>
    %204 = vector.extract_strided_slice %100 {offsets = [8, 0], sizes = [8, 32], strides = [1, 1]} : vector<16x32xf32> to vector<8x32xf32>
    %cst_57 = arith.constant 0.000000e+00 : f32
    %205 = vector.broadcast %cst_57 : f32 to vector<8x32xf32>
    %206 = vector.extract_strided_slice %202 {offsets = [0, 0], sizes = [8, 8], strides = [1, 1]} : vector<8x32xf32> to vector<8x8xf32>
    %207 = vector.extract_strided_slice %203 {offsets = [0, 0], sizes = [8, 8], strides = [1, 1]} : vector<8x32xf32> to vector<8x8xf32>
    %208 = tpu.transpose %207, [1, 0] : vector<8x8xf32> -> vector<8x8xf32>
    %209 = arith.truncf %206 : vector<8x8xf32> to vector<8x8xbf16>
    %210 = arith.truncf %208 : vector<8x8xf32> to vector<8x8xbf16>
    %cst_58 = arith.constant dense<0.000000e+00> : vector<8x8xf32>
    %211 = tpu.matmul %209, %210, %cst_58 {dimension_numbers = #tpu.dot_dimension_numbers<[1], [0], [0], [1], [0, 0, 1, 1], [], []>} : vector<8x8xbf16>, vector<8x8xbf16>, vector<8x8xf32> -> vector<8x8xf32>
    %cst_59 = arith.constant dense<0xFF800000> : vector<8xf32>
    %212 = vector.multi_reduction <maximumf>, %211, %cst_59 [1] : vector<8x8xf32> to vector<8xf32>
    %213 = vector.shape_cast %212 : vector<8xf32> to vector<8x1xf32>
    %214 = vector.broadcast %213 : vector<8x1xf32> to vector<8x8xf32>
    %215 = arith.subf %211, %214 : vector<8x8xf32>
    %216 = math.exp %215 : vector<8x8xf32>
    %cst_60 = arith.constant dense<0.000000e+00> : vector<8xf32>
    %217 = vector.multi_reduction <add>, %216, %cst_60 [1] : vector<8x8xf32> to vector<8xf32>
    %218 = vector.shape_cast %217 : vector<8xf32> to vector<8x1xf32>
    %219 = tpu.reciprocal %218 {approx = true} : vector<8x1xf32> -> vector<8x1xf32>
    %220 = vector.broadcast %219 : vector<8x1xf32> to vector<8x8xf32>
    %221 = arith.mulf %216, %220 : vector<8x8xf32>
    %222 = vector.extract_strided_slice %204 {offsets = [0, 0], sizes = [8, 8], strides = [1, 1]} : vector<8x32xf32> to vector<8x8xf32>
    %223 = arith.truncf %221 : vector<8x8xf32> to vector<8x8xbf16>
    %224 = arith.truncf %222 : vector<8x8xf32> to vector<8x8xbf16>
    %cst_61 = arith.constant dense<0.000000e+00> : vector<8x8xf32>
    %225 = tpu.matmul %223, %224, %cst_61 {dimension_numbers = #tpu.dot_dimension_numbers<[1], [0], [0], [1], [0, 0, 1, 1], [], []>} : vector<8x8xbf16>, vector<8x8xbf16>, vector<8x8xf32> -> vector<8x8xf32>
    %226 = vector.extract_strided_slice %101 {offsets = [0, 0], sizes = [8, 32], strides = [1, 1]} : vector<32x32xbf16> to vector<8x32xbf16>
    %227 = arith.truncf %225 : vector<8x8xf32> to vector<8x8xbf16>
    %cst_62 = arith.constant dense<0.000000e+00> : vector<8x32xf32>
    %228 = tpu.matmul %227, %226, %cst_62 {dimension_numbers = #tpu.dot_dimension_numbers<[1], [0], [0], [1], [0, 0, 1, 1], [], []>} : vector<8x8xbf16>, vector<8x32xbf16>, vector<8x32xf32> -> vector<8x32xf32>
    %229 = arith.addf %205, %228 : vector<8x32xf32>
    %230 = vector.extract_strided_slice %202 {offsets = [0, 8], sizes = [8, 8], strides = [1, 1]} : vector<8x32xf32> to vector<8x8xf32>
    %231 = vector.extract_strided_slice %203 {offsets = [0, 8], sizes = [8, 8], strides = [1, 1]} : vector<8x32xf32> to vector<8x8xf32>
    %232 = tpu.transpose %231, [1, 0] : vector<8x8xf32> -> vector<8x8xf32>
    %233 = arith.truncf %230 : vector<8x8xf32> to vector<8x8xbf16>
    %234 = arith.truncf %232 : vector<8x8xf32> to vector<8x8xbf16>
    %cst_63 = arith.constant dense<0.000000e+00> : vector<8x8xf32>
    %235 = tpu.matmul %233, %234, %cst_63 {dimension_numbers = #tpu.dot_dimension_numbers<[1], [0], [0], [1], [0, 0, 1, 1], [], []>} : vector<8x8xbf16>, vector<8x8xbf16>, vector<8x8xf32> -> vector<8x8xf32>
    %cst_64 = arith.constant dense<0xFF800000> : vector<8xf32>
    %236 = vector.multi_reduction <maximumf>, %235, %cst_64 [1] : vector<8x8xf32> to vector<8xf32>
    %237 = vector.shape_cast %236 : vector<8xf32> to vector<8x1xf32>
    %238 = vector.broadcast %237 : vector<8x1xf32> to vector<8x8xf32>
    %239 = arith.subf %235, %238 : vector<8x8xf32>
    %240 = math.exp %239 : vector<8x8xf32>
    %cst_65 = arith.constant dense<0.000000e+00> : vector<8xf32>
    %241 = vector.multi_reduction <add>, %240, %cst_65 [1] : vector<8x8xf32> to vector<8xf32>
    %242 = vector.shape_cast %241 : vector<8xf32> to vector<8x1xf32>
    %243 = tpu.reciprocal %242 {approx = true} : vector<8x1xf32> -> vector<8x1xf32>
    %244 = vector.broadcast %243 : vector<8x1xf32> to vector<8x8xf32>
    %245 = arith.mulf %240, %244 : vector<8x8xf32>
    %246 = vector.extract_strided_slice %204 {offsets = [0, 8], sizes = [8, 8], strides = [1, 1]} : vector<8x32xf32> to vector<8x8xf32>
    %247 = arith.truncf %245 : vector<8x8xf32> to vector<8x8xbf16>
    %248 = arith.truncf %246 : vector<8x8xf32> to vector<8x8xbf16>
    %cst_66 = arith.constant dense<0.000000e+00> : vector<8x8xf32>
    %249 = tpu.matmul %247, %248, %cst_66 {dimension_numbers = #tpu.dot_dimension_numbers<[1], [0], [0], [1], [0, 0, 1, 1], [], []>} : vector<8x8xbf16>, vector<8x8xbf16>, vector<8x8xf32> -> vector<8x8xf32>
    %250 = vector.extract_strided_slice %101 {offsets = [8, 0], sizes = [8, 32], strides = [1, 1]} : vector<32x32xbf16> to vector<8x32xbf16>
    %251 = arith.truncf %249 : vector<8x8xf32> to vector<8x8xbf16>
    %cst_67 = arith.constant dense<0.000000e+00> : vector<8x32xf32>
    %252 = tpu.matmul %251, %250, %cst_67 {dimension_numbers = #tpu.dot_dimension_numbers<[1], [0], [0], [1], [0, 0, 1, 1], [], []>} : vector<8x8xbf16>, vector<8x32xbf16>, vector<8x32xf32> -> vector<8x32xf32>
    %253 = arith.addf %229, %252 : vector<8x32xf32>
    %254 = vector.extract_strided_slice %202 {offsets = [0, 16], sizes = [8, 8], strides = [1, 1]} : vector<8x32xf32> to vector<8x8xf32>
    %255 = vector.extract_strided_slice %203 {offsets = [0, 16], sizes = [8, 8], strides = [1, 1]} : vector<8x32xf32> to vector<8x8xf32>
    %256 = tpu.transpose %255, [1, 0] : vector<8x8xf32> -> vector<8x8xf32>
    %257 = arith.truncf %254 : vector<8x8xf32> to vector<8x8xbf16>
    %258 = arith.truncf %256 : vector<8x8xf32> to vector<8x8xbf16>
    %cst_68 = arith.constant dense<0.000000e+00> : vector<8x8xf32>
    %259 = tpu.matmul %257, %258, %cst_68 {dimension_numbers = #tpu.dot_dimension_numbers<[1], [0], [0], [1], [0, 0, 1, 1], [], []>} : vector<8x8xbf16>, vector<8x8xbf16>, vector<8x8xf32> -> vector<8x8xf32>
    %cst_69 = arith.constant dense<0xFF800000> : vector<8xf32>
    %260 = vector.multi_reduction <maximumf>, %259, %cst_69 [1] : vector<8x8xf32> to vector<8xf32>
    %261 = vector.shape_cast %260 : vector<8xf32> to vector<8x1xf32>
    %262 = vector.broadcast %261 : vector<8x1xf32> to vector<8x8xf32>
    %263 = arith.subf %259, %262 : vector<8x8xf32>
    %264 = math.exp %263 : vector<8x8xf32>
    %cst_70 = arith.constant dense<0.000000e+00> : vector<8xf32>
    %265 = vector.multi_reduction <add>, %264, %cst_70 [1] : vector<8x8xf32> to vector<8xf32>
    %266 = vector.shape_cast %265 : vector<8xf32> to vector<8x1xf32>
    %267 = tpu.reciprocal %266 {approx = true} : vector<8x1xf32> -> vector<8x1xf32>
    %268 = vector.broadcast %267 : vector<8x1xf32> to vector<8x8xf32>
    %269 = arith.mulf %264, %268 : vector<8x8xf32>
    %270 = vector.extract_strided_slice %204 {offsets = [0, 16], sizes = [8, 8], strides = [1, 1]} : vector<8x32xf32> to vector<8x8xf32>
    %271 = arith.truncf %269 : vector<8x8xf32> to vector<8x8xbf16>
    %272 = arith.truncf %270 : vector<8x8xf32> to vector<8x8xbf16>
    %cst_71 = arith.constant dense<0.000000e+00> : vector<8x8xf32>
    %273 = tpu.matmul %271, %272, %cst_71 {dimension_numbers = #tpu.dot_dimension_numbers<[1], [0], [0], [1], [0, 0, 1, 1], [], []>} : vector<8x8xbf16>, vector<8x8xbf16>, vector<8x8xf32> -> vector<8x8xf32>
    %274 = vector.extract_strided_slice %101 {offsets = [16, 0], sizes = [8, 32], strides = [1, 1]} : vector<32x32xbf16> to vector<8x32xbf16>
    %275 = arith.truncf %273 : vector<8x8xf32> to vector<8x8xbf16>
    %cst_72 = arith.constant dense<0.000000e+00> : vector<8x32xf32>
    %276 = tpu.matmul %275, %274, %cst_72 {dimension_numbers = #tpu.dot_dimension_numbers<[1], [0], [0], [1], [0, 0, 1, 1], [], []>} : vector<8x8xbf16>, vector<8x32xbf16>, vector<8x32xf32> -> vector<8x32xf32>
    %277 = arith.addf %253, %276 : vector<8x32xf32>
    %278 = vector.extract_strided_slice %202 {offsets = [0, 24], sizes = [8, 8], strides = [1, 1]} : vector<8x32xf32> to vector<8x8xf32>
    %279 = vector.extract_strided_slice %203 {offsets = [0, 24], sizes = [8, 8], strides = [1, 1]} : vector<8x32xf32> to vector<8x8xf32>
    %280 = tpu.transpose %279, [1, 0] : vector<8x8xf32> -> vector<8x8xf32>
    %281 = arith.truncf %278 : vector<8x8xf32> to vector<8x8xbf16>
    %282 = arith.truncf %280 : vector<8x8xf32> to vector<8x8xbf16>
    %cst_73 = arith.constant dense<0.000000e+00> : vector<8x8xf32>
    %283 = tpu.matmul %281, %282, %cst_73 {dimension_numbers = #tpu.dot_dimension_numbers<[1], [0], [0], [1], [0, 0, 1, 1], [], []>} : vector<8x8xbf16>, vector<8x8xbf16>, vector<8x8xf32> -> vector<8x8xf32>
    %cst_74 = arith.constant dense<0xFF800000> : vector<8xf32>
    %284 = vector.multi_reduction <maximumf>, %283, %cst_74 [1] : vector<8x8xf32> to vector<8xf32>
    %285 = vector.shape_cast %284 : vector<8xf32> to vector<8x1xf32>
    %286 = vector.broadcast %285 : vector<8x1xf32> to vector<8x8xf32>
    %287 = arith.subf %283, %286 : vector<8x8xf32>
    %288 = math.exp %287 : vector<8x8xf32>
    %cst_75 = arith.constant dense<0.000000e+00> : vector<8xf32>
    %289 = vector.multi_reduction <add>, %288, %cst_75 [1] : vector<8x8xf32> to vector<8xf32>
    %290 = vector.shape_cast %289 : vector<8xf32> to vector<8x1xf32>
    %291 = tpu.reciprocal %290 {approx = true} : vector<8x1xf32> -> vector<8x1xf32>
    %292 = vector.broadcast %291 : vector<8x1xf32> to vector<8x8xf32>
    %293 = arith.mulf %288, %292 : vector<8x8xf32>
    %294 = vector.extract_strided_slice %204 {offsets = [0, 24], sizes = [8, 8], strides = [1, 1]} : vector<8x32xf32> to vector<8x8xf32>
    %295 = arith.truncf %293 : vector<8x8xf32> to vector<8x8xbf16>
    %296 = arith.truncf %294 : vector<8x8xf32> to vector<8x8xbf16>
    %cst_76 = arith.constant dense<0.000000e+00> : vector<8x8xf32>
    %297 = tpu.matmul %295, %296, %cst_76 {dimension_numbers = #tpu.dot_dimension_numbers<[1], [0], [0], [1], [0, 0, 1, 1], [], []>} : vector<8x8xbf16>, vector<8x8xbf16>, vector<8x8xf32> -> vector<8x8xf32>
    %298 = vector.extract_strided_slice %101 {offsets = [24, 0], sizes = [8, 32], strides = [1, 1]} : vector<32x32xbf16> to vector<8x32xbf16>
    %299 = arith.truncf %297 : vector<8x8xf32> to vector<8x8xbf16>
    %cst_77 = arith.constant dense<0.000000e+00> : vector<8x32xf32>
    %300 = tpu.matmul %299, %298, %cst_77 {dimension_numbers = #tpu.dot_dimension_numbers<[1], [0], [0], [1], [0, 0, 1, 1], [], []>} : vector<8x8xbf16>, vector<8x32xbf16>, vector<8x32xf32> -> vector<8x32xf32>
    %301 = arith.addf %277, %300 : vector<8x32xf32>
    %302 = tpu.concatenate %201, %301 in 0 : vector<8x32xf32>, vector<8x32xf32> -> vector<16x32xf32>
    %303 = arith.addf %67, %302 : vector<16x32xf32>
    %c21 = arith.constant 21 : index
    %c0_78 = arith.constant 0 : index
    %304 = vector.load %arg3[%c21, %c0_78] : memref<38x128xf32, #tpu.memory_space<vmem>>, vector<1x32xf32>
    %305 = vector.broadcast %304 : vector<1x32xf32> to vector<16x32xf32>
    %306 = arith.addf %303, %305 : vector<16x32xf32>
    %c22 = arith.constant 22 : index
    %c0_79 = arith.constant 0 : index
    %307 = vector.load %arg3[%c22, %c0_79] : memref<38x128xf32, #tpu.memory_space<vmem>>, vector<1x32xf32>
    %c23 = arith.constant 23 : index
    %c0_80 = arith.constant 0 : index
    %308 = vector.load %arg3[%c23, %c0_80] : memref<38x128xf32, #tpu.memory_space<vmem>>, vector<1x32xf32>
    %cst_81 = arith.constant dense<0.000000e+00> : vector<16xf32>
    %309 = vector.multi_reduction <add>, %306, %cst_81 [1] : vector<16x32xf32> to vector<16xf32>
    %310 = vector.shape_cast %309 : vector<16xf32> to vector<16x1xf32>
    %cst_82 = arith.constant 3.200000e+01 : f32
    %311 = vector.broadcast %cst_82 : f32 to vector<16x1xf32>
    %312 = arith.divf %310, %311 : vector<16x1xf32>
    %313 = vector.broadcast %312 : vector<16x1xf32> to vector<16x32xf32>
    %314 = arith.subf %306, %313 : vector<16x32xf32>
    %315 = arith.mulf %314, %314 : vector<16x32xf32>
    %cst_83 = arith.constant dense<0.000000e+00> : vector<16xf32>
    %316 = vector.multi_reduction <add>, %315, %cst_83 [1] : vector<16x32xf32> to vector<16xf32>
    %317 = vector.shape_cast %316 : vector<16xf32> to vector<16x1xf32>
    %cst_84 = arith.constant 3.200000e+01 : f32
    %318 = vector.broadcast %cst_84 : f32 to vector<16x1xf32>
    %319 = arith.divf %317, %318 : vector<16x1xf32>
    %320 = vector.broadcast %312 : vector<16x1xf32> to vector<16x32xf32>
    %321 = arith.subf %306, %320 : vector<16x32xf32>
    %cst_85 = arith.constant 9.99999974E-6 : f32
    %322 = vector.broadcast %cst_85 : f32 to vector<16x1xf32>
    %323 = arith.addf %319, %322 : vector<16x1xf32>
    %324 = math.rsqrt %323 : vector<16x1xf32>
    %325 = vector.broadcast %324 : vector<16x1xf32> to vector<16x32xf32>
    %326 = arith.mulf %321, %325 : vector<16x32xf32>
    %327 = vector.broadcast %307 : vector<1x32xf32> to vector<16x32xf32>
    %328 = arith.mulf %326, %327 : vector<16x32xf32>
    %329 = vector.broadcast %308 : vector<1x32xf32> to vector<16x32xf32>
    %330 = arith.addf %328, %329 : vector<16x32xf32>
    %c160 = arith.constant 160 : index
    %c0_86 = arith.constant 0 : index
    %331 = vector.load %arg2[%c160, %c0_86] : memref<480x128xbf16, #tpu.memory_space<vmem>>, vector<32x64xbf16>
    %332 = arith.truncf %330 : vector<16x32xf32> to vector<16x32xbf16>
    %cst_87 = arith.constant dense<0.000000e+00> : vector<16x64xf32>
    %333 = tpu.matmul %332, %331, %cst_87 {dimension_numbers = #tpu.dot_dimension_numbers<[1], [0], [0], [1], [0, 0, 1, 1], [], []>} : vector<16x32xbf16>, vector<32x64xbf16>, vector<16x64xf32> -> vector<16x64xf32>
    %c24 = arith.constant 24 : index
    %c0_88 = arith.constant 0 : index
    %334 = vector.load %arg3[%c24, %c0_88] : memref<38x128xf32, #tpu.memory_space<vmem>>, vector<1x64xf32>
    %335 = vector.broadcast %334 : vector<1x64xf32> to vector<16x64xf32>
    %336 = arith.addf %333, %335 : vector<16x64xf32>
    %cst_89 = arith.constant 5.000000e-01 : f32
    %337 = vector.broadcast %cst_89 : f32 to vector<16x64xf32>
    %338 = arith.mulf %337, %336 : vector<16x64xf32>
    %cst_90 = arith.constant 4.471500e-02 : f32
    %339 = vector.broadcast %cst_90 : f32 to vector<16x64xf32>
    %340 = arith.mulf %339, %336 : vector<16x64xf32>
    %341 = arith.mulf %340, %336 : vector<16x64xf32>
    %342 = arith.mulf %341, %336 : vector<16x64xf32>
    %343 = arith.addf %336, %342 : vector<16x64xf32>
    %cst_91 = arith.constant 0.797884583 : f32
    %344 = vector.broadcast %cst_91 : f32 to vector<16x64xf32>
    %345 = arith.mulf %344, %343 : vector<16x64xf32>
    %346 = math.tanh %345 : vector<16x64xf32>
    %cst_92 = arith.constant 1.000000e+00 : f32
    %347 = vector.broadcast %cst_92 : f32 to vector<16x64xf32>
    %348 = arith.addf %347, %346 : vector<16x64xf32>
    %349 = arith.mulf %338, %348 : vector<16x64xf32>
    %c192 = arith.constant 192 : index
    %c0_93 = arith.constant 0 : index
    %350 = vector.load %arg2[%c192, %c0_93] : memref<480x128xbf16, #tpu.memory_space<vmem>>, vector<64x32xbf16>
    %351 = arith.truncf %349 : vector<16x64xf32> to vector<16x64xbf16>
    %cst_94 = arith.constant dense<0.000000e+00> : vector<16x32xf32>
    %352 = tpu.matmul %351, %350, %cst_94 {dimension_numbers = #tpu.dot_dimension_numbers<[1], [0], [0], [1], [0, 0, 1, 1], [], []>} : vector<16x64xbf16>, vector<64x32xbf16>, vector<16x32xf32> -> vector<16x32xf32>
    %353 = arith.addf %306, %352 : vector<16x32xf32>
    %c25 = arith.constant 25 : index
    %c0_95 = arith.constant 0 : index
    %354 = vector.load %arg3[%c25, %c0_95] : memref<38x128xf32, #tpu.memory_space<vmem>>, vector<1x32xf32>
    %355 = vector.broadcast %354 : vector<1x32xf32> to vector<16x32xf32>
    %356 = arith.addf %353, %355 : vector<16x32xf32>
    %c26 = arith.constant 26 : index
    %c0_96 = arith.constant 0 : index
    %357 = vector.load %arg3[%c26, %c0_96] : memref<38x128xf32, #tpu.memory_space<vmem>>, vector<1x32xf32>
    %c27 = arith.constant 27 : index
    %c0_97 = arith.constant 0 : index
    %358 = vector.load %arg3[%c27, %c0_97] : memref<38x128xf32, #tpu.memory_space<vmem>>, vector<1x32xf32>
    %cst_98 = arith.constant dense<0.000000e+00> : vector<16xf32>
    %359 = vector.multi_reduction <add>, %356, %cst_98 [1] : vector<16x32xf32> to vector<16xf32>
    %360 = vector.shape_cast %359 : vector<16xf32> to vector<16x1xf32>
    %cst_99 = arith.constant 3.200000e+01 : f32
    %361 = vector.broadcast %cst_99 : f32 to vector<16x1xf32>
    %362 = arith.divf %360, %361 : vector<16x1xf32>
    %363 = vector.broadcast %362 : vector<16x1xf32> to vector<16x32xf32>
    %364 = arith.subf %356, %363 : vector<16x32xf32>
    %365 = arith.mulf %364, %364 : vector<16x32xf32>
    %cst_100 = arith.constant dense<0.000000e+00> : vector<16xf32>
    %366 = vector.multi_reduction <add>, %365, %cst_100 [1] : vector<16x32xf32> to vector<16xf32>
    %367 = vector.shape_cast %366 : vector<16xf32> to vector<16x1xf32>
    %cst_101 = arith.constant 3.200000e+01 : f32
    %368 = vector.broadcast %cst_101 : f32 to vector<16x1xf32>
    %369 = arith.divf %367, %368 : vector<16x1xf32>
    %370 = vector.broadcast %362 : vector<16x1xf32> to vector<16x32xf32>
    %371 = arith.subf %356, %370 : vector<16x32xf32>
    %cst_102 = arith.constant 9.99999974E-6 : f32
    %372 = vector.broadcast %cst_102 : f32 to vector<16x1xf32>
    %373 = arith.addf %369, %372 : vector<16x1xf32>
    %374 = math.rsqrt %373 : vector<16x1xf32>
    %375 = vector.broadcast %374 : vector<16x1xf32> to vector<16x32xf32>
    %376 = arith.mulf %371, %375 : vector<16x32xf32>
    %377 = vector.broadcast %357 : vector<1x32xf32> to vector<16x32xf32>
    %378 = arith.mulf %376, %377 : vector<16x32xf32>
    %379 = vector.broadcast %358 : vector<1x32xf32> to vector<16x32xf32>
    %380 = arith.addf %378, %379 : vector<16x32xf32>
    %c256 = arith.constant 256 : index
    %c0_103 = arith.constant 0 : index
    %381 = vector.load %arg2[%c256, %c0_103] : memref<480x128xbf16, #tpu.memory_space<vmem>>, vector<32x96xbf16>
    %382 = arith.truncf %380 : vector<16x32xf32> to vector<16x32xbf16>
    %cst_104 = arith.constant dense<0.000000e+00> : vector<16x96xf32>
    %383 = tpu.matmul %382, %381, %cst_104 {dimension_numbers = #tpu.dot_dimension_numbers<[1], [0], [0], [1], [0, 0, 1, 1], [], []>} : vector<16x32xbf16>, vector<32x96xbf16>, vector<16x96xf32> -> vector<16x96xf32>
    %c28 = arith.constant 28 : index
    %c0_105 = arith.constant 0 : index
    %384 = vector.load %arg3[%c28, %c0_105] : memref<38x128xf32, #tpu.memory_space<vmem>>, vector<1x96xf32>
    %385 = vector.broadcast %384 : vector<1x96xf32> to vector<16x96xf32>
    %386 = arith.addf %383, %385 : vector<16x96xf32>
    %387 = vector.extract_strided_slice %386 {offsets = [0, 0], sizes = [16, 32], strides = [1, 1]} : vector<16x96xf32> to vector<16x32xf32>
    %388 = vector.extract_strided_slice %386 {offsets = [0, 32], sizes = [16, 32], strides = [1, 1]} : vector<16x96xf32> to vector<16x32xf32>
    %389 = vector.extract_strided_slice %386 {offsets = [0, 64], sizes = [16, 32], strides = [1, 1]} : vector<16x96xf32> to vector<16x32xf32>
    %c288 = arith.constant 288 : index
    %c0_106 = arith.constant 0 : index
    %390 = vector.load %arg2[%c288, %c0_106] : memref<480x128xbf16, #tpu.memory_space<vmem>>, vector<32x32xbf16>
    %391 = vector.extract_strided_slice %387 {offsets = [0, 0], sizes = [8, 32], strides = [1, 1]} : vector<16x32xf32> to vector<8x32xf32>
    %392 = vector.extract_strided_slice %388 {offsets = [0, 0], sizes = [8, 32], strides = [1, 1]} : vector<16x32xf32> to vector<8x32xf32>
    %393 = vector.extract_strided_slice %389 {offsets = [0, 0], sizes = [8, 32], strides = [1, 1]} : vector<16x32xf32> to vector<8x32xf32>
    %cst_107 = arith.constant 0.000000e+00 : f32
    %394 = vector.broadcast %cst_107 : f32 to vector<8x32xf32>
    %395 = vector.extract_strided_slice %391 {offsets = [0, 0], sizes = [8, 8], strides = [1, 1]} : vector<8x32xf32> to vector<8x8xf32>
    %396 = vector.extract_strided_slice %392 {offsets = [0, 0], sizes = [8, 8], strides = [1, 1]} : vector<8x32xf32> to vector<8x8xf32>
    %397 = tpu.transpose %396, [1, 0] : vector<8x8xf32> -> vector<8x8xf32>
    %398 = arith.truncf %395 : vector<8x8xf32> to vector<8x8xbf16>
    %399 = arith.truncf %397 : vector<8x8xf32> to vector<8x8xbf16>
    %cst_108 = arith.constant dense<0.000000e+00> : vector<8x8xf32>
    %400 = tpu.matmul %398, %399, %cst_108 {dimension_numbers = #tpu.dot_dimension_numbers<[1], [0], [0], [1], [0, 0, 1, 1], [], []>} : vector<8x8xbf16>, vector<8x8xbf16>, vector<8x8xf32> -> vector<8x8xf32>
    %cst_109 = arith.constant dense<0xFF800000> : vector<8xf32>
    %401 = vector.multi_reduction <maximumf>, %400, %cst_109 [1] : vector<8x8xf32> to vector<8xf32>
    %402 = vector.shape_cast %401 : vector<8xf32> to vector<8x1xf32>
    %403 = vector.broadcast %402 : vector<8x1xf32> to vector<8x8xf32>
    %404 = arith.subf %400, %403 : vector<8x8xf32>
    %405 = math.exp %404 : vector<8x8xf32>
    %cst_110 = arith.constant dense<0.000000e+00> : vector<8xf32>
    %406 = vector.multi_reduction <add>, %405, %cst_110 [1] : vector<8x8xf32> to vector<8xf32>
    %407 = vector.shape_cast %406 : vector<8xf32> to vector<8x1xf32>
    %408 = tpu.reciprocal %407 {approx = true} : vector<8x1xf32> -> vector<8x1xf32>
    %409 = vector.broadcast %408 : vector<8x1xf32> to vector<8x8xf32>
    %410 = arith.mulf %405, %409 : vector<8x8xf32>
    %411 = vector.extract_strided_slice %393 {offsets = [0, 0], sizes = [8, 8], strides = [1, 1]} : vector<8x32xf32> to vector<8x8xf32>
    %412 = arith.truncf %410 : vector<8x8xf32> to vector<8x8xbf16>
    %413 = arith.truncf %411 : vector<8x8xf32> to vector<8x8xbf16>
    %cst_111 = arith.constant dense<0.000000e+00> : vector<8x8xf32>
    %414 = tpu.matmul %412, %413, %cst_111 {dimension_numbers = #tpu.dot_dimension_numbers<[1], [0], [0], [1], [0, 0, 1, 1], [], []>} : vector<8x8xbf16>, vector<8x8xbf16>, vector<8x8xf32> -> vector<8x8xf32>
    %415 = vector.extract_strided_slice %390 {offsets = [0, 0], sizes = [8, 32], strides = [1, 1]} : vector<32x32xbf16> to vector<8x32xbf16>
    %416 = arith.truncf %414 : vector<8x8xf32> to vector<8x8xbf16>
    %cst_112 = arith.constant dense<0.000000e+00> : vector<8x32xf32>
    %417 = tpu.matmul %416, %415, %cst_112 {dimension_numbers = #tpu.dot_dimension_numbers<[1], [0], [0], [1], [0, 0, 1, 1], [], []>} : vector<8x8xbf16>, vector<8x32xbf16>, vector<8x32xf32> -> vector<8x32xf32>
    %418 = arith.addf %394, %417 : vector<8x32xf32>
    %419 = vector.extract_strided_slice %391 {offsets = [0, 8], sizes = [8, 8], strides = [1, 1]} : vector<8x32xf32> to vector<8x8xf32>
    %420 = vector.extract_strided_slice %392 {offsets = [0, 8], sizes = [8, 8], strides = [1, 1]} : vector<8x32xf32> to vector<8x8xf32>
    %421 = tpu.transpose %420, [1, 0] : vector<8x8xf32> -> vector<8x8xf32>
    %422 = arith.truncf %419 : vector<8x8xf32> to vector<8x8xbf16>
    %423 = arith.truncf %421 : vector<8x8xf32> to vector<8x8xbf16>
    %cst_113 = arith.constant dense<0.000000e+00> : vector<8x8xf32>
    %424 = tpu.matmul %422, %423, %cst_113 {dimension_numbers = #tpu.dot_dimension_numbers<[1], [0], [0], [1], [0, 0, 1, 1], [], []>} : vector<8x8xbf16>, vector<8x8xbf16>, vector<8x8xf32> -> vector<8x8xf32>
    %cst_114 = arith.constant dense<0xFF800000> : vector<8xf32>
    %425 = vector.multi_reduction <maximumf>, %424, %cst_114 [1] : vector<8x8xf32> to vector<8xf32>
    %426 = vector.shape_cast %425 : vector<8xf32> to vector<8x1xf32>
    %427 = vector.broadcast %426 : vector<8x1xf32> to vector<8x8xf32>
    %428 = arith.subf %424, %427 : vector<8x8xf32>
    %429 = math.exp %428 : vector<8x8xf32>
    %cst_115 = arith.constant dense<0.000000e+00> : vector<8xf32>
    %430 = vector.multi_reduction <add>, %429, %cst_115 [1] : vector<8x8xf32> to vector<8xf32>
    %431 = vector.shape_cast %430 : vector<8xf32> to vector<8x1xf32>
    %432 = tpu.reciprocal %431 {approx = true} : vector<8x1xf32> -> vector<8x1xf32>
    %433 = vector.broadcast %432 : vector<8x1xf32> to vector<8x8xf32>
    %434 = arith.mulf %429, %433 : vector<8x8xf32>
    %435 = vector.extract_strided_slice %393 {offsets = [0, 8], sizes = [8, 8], strides = [1, 1]} : vector<8x32xf32> to vector<8x8xf32>
    %436 = arith.truncf %434 : vector<8x8xf32> to vector<8x8xbf16>
    %437 = arith.truncf %435 : vector<8x8xf32> to vector<8x8xbf16>
    %cst_116 = arith.constant dense<0.000000e+00> : vector<8x8xf32>
    %438 = tpu.matmul %436, %437, %cst_116 {dimension_numbers = #tpu.dot_dimension_numbers<[1], [0], [0], [1], [0, 0, 1, 1], [], []>} : vector<8x8xbf16>, vector<8x8xbf16>, vector<8x8xf32> -> vector<8x8xf32>
    %439 = vector.extract_strided_slice %390 {offsets = [8, 0], sizes = [8, 32], strides = [1, 1]} : vector<32x32xbf16> to vector<8x32xbf16>
    %440 = arith.truncf %438 : vector<8x8xf32> to vector<8x8xbf16>
    %cst_117 = arith.constant dense<0.000000e+00> : vector<8x32xf32>
    %441 = tpu.matmul %440, %439, %cst_117 {dimension_numbers = #tpu.dot_dimension_numbers<[1], [0], [0], [1], [0, 0, 1, 1], [], []>} : vector<8x8xbf16>, vector<8x32xbf16>, vector<8x32xf32> -> vector<8x32xf32>
    %442 = arith.addf %418, %441 : vector<8x32xf32>
    %443 = vector.extract_strided_slice %391 {offsets = [0, 16], sizes = [8, 8], strides = [1, 1]} : vector<8x32xf32> to vector<8x8xf32>
    %444 = vector.extract_strided_slice %392 {offsets = [0, 16], sizes = [8, 8], strides = [1, 1]} : vector<8x32xf32> to vector<8x8xf32>
    %445 = tpu.transpose %444, [1, 0] : vector<8x8xf32> -> vector<8x8xf32>
    %446 = arith.truncf %443 : vector<8x8xf32> to vector<8x8xbf16>
    %447 = arith.truncf %445 : vector<8x8xf32> to vector<8x8xbf16>
    %cst_118 = arith.constant dense<0.000000e+00> : vector<8x8xf32>
    %448 = tpu.matmul %446, %447, %cst_118 {dimension_numbers = #tpu.dot_dimension_numbers<[1], [0], [0], [1], [0, 0, 1, 1], [], []>} : vector<8x8xbf16>, vector<8x8xbf16>, vector<8x8xf32> -> vector<8x8xf32>
    %cst_119 = arith.constant dense<0xFF800000> : vector<8xf32>
    %449 = vector.multi_reduction <maximumf>, %448, %cst_119 [1] : vector<8x8xf32> to vector<8xf32>
    %450 = vector.shape_cast %449 : vector<8xf32> to vector<8x1xf32>
    %451 = vector.broadcast %450 : vector<8x1xf32> to vector<8x8xf32>
    %452 = arith.subf %448, %451 : vector<8x8xf32>
    %453 = math.exp %452 : vector<8x8xf32>
    %cst_120 = arith.constant dense<0.000000e+00> : vector<8xf32>
    %454 = vector.multi_reduction <add>, %453, %cst_120 [1] : vector<8x8xf32> to vector<8xf32>
    %455 = vector.shape_cast %454 : vector<8xf32> to vector<8x1xf32>
    %456 = tpu.reciprocal %455 {approx = true} : vector<8x1xf32> -> vector<8x1xf32>
    %457 = vector.broadcast %456 : vector<8x1xf32> to vector<8x8xf32>
    %458 = arith.mulf %453, %457 : vector<8x8xf32>
    %459 = vector.extract_strided_slice %393 {offsets = [0, 16], sizes = [8, 8], strides = [1, 1]} : vector<8x32xf32> to vector<8x8xf32>
    %460 = arith.truncf %458 : vector<8x8xf32> to vector<8x8xbf16>
    %461 = arith.truncf %459 : vector<8x8xf32> to vector<8x8xbf16>
    %cst_121 = arith.constant dense<0.000000e+00> : vector<8x8xf32>
    %462 = tpu.matmul %460, %461, %cst_121 {dimension_numbers = #tpu.dot_dimension_numbers<[1], [0], [0], [1], [0, 0, 1, 1], [], []>} : vector<8x8xbf16>, vector<8x8xbf16>, vector<8x8xf32> -> vector<8x8xf32>
    %463 = vector.extract_strided_slice %390 {offsets = [16, 0], sizes = [8, 32], strides = [1, 1]} : vector<32x32xbf16> to vector<8x32xbf16>
    %464 = arith.truncf %462 : vector<8x8xf32> to vector<8x8xbf16>
    %cst_122 = arith.constant dense<0.000000e+00> : vector<8x32xf32>
    %465 = tpu.matmul %464, %463, %cst_122 {dimension_numbers = #tpu.dot_dimension_numbers<[1], [0], [0], [1], [0, 0, 1, 1], [], []>} : vector<8x8xbf16>, vector<8x32xbf16>, vector<8x32xf32> -> vector<8x32xf32>
    %466 = arith.addf %442, %465 : vector<8x32xf32>
    %467 = vector.extract_strided_slice %391 {offsets = [0, 24], sizes = [8, 8], strides = [1, 1]} : vector<8x32xf32> to vector<8x8xf32>
    %468 = vector.extract_strided_slice %392 {offsets = [0, 24], sizes = [8, 8], strides = [1, 1]} : vector<8x32xf32> to vector<8x8xf32>
    %469 = tpu.transpose %468, [1, 0] : vector<8x8xf32> -> vector<8x8xf32>
    %470 = arith.truncf %467 : vector<8x8xf32> to vector<8x8xbf16>
    %471 = arith.truncf %469 : vector<8x8xf32> to vector<8x8xbf16>
    %cst_123 = arith.constant dense<0.000000e+00> : vector<8x8xf32>
    %472 = tpu.matmul %470, %471, %cst_123 {dimension_numbers = #tpu.dot_dimension_numbers<[1], [0], [0], [1], [0, 0, 1, 1], [], []>} : vector<8x8xbf16>, vector<8x8xbf16>, vector<8x8xf32> -> vector<8x8xf32>
    %cst_124 = arith.constant dense<0xFF800000> : vector<8xf32>
    %473 = vector.multi_reduction <maximumf>, %472, %cst_124 [1] : vector<8x8xf32> to vector<8xf32>
    %474 = vector.shape_cast %473 : vector<8xf32> to vector<8x1xf32>
    %475 = vector.broadcast %474 : vector<8x1xf32> to vector<8x8xf32>
    %476 = arith.subf %472, %475 : vector<8x8xf32>
    %477 = math.exp %476 : vector<8x8xf32>
    %cst_125 = arith.constant dense<0.000000e+00> : vector<8xf32>
    %478 = vector.multi_reduction <add>, %477, %cst_125 [1] : vector<8x8xf32> to vector<8xf32>
    %479 = vector.shape_cast %478 : vector<8xf32> to vector<8x1xf32>
    %480 = tpu.reciprocal %479 {approx = true} : vector<8x1xf32> -> vector<8x1xf32>
    %481 = vector.broadcast %480 : vector<8x1xf32> to vector<8x8xf32>
    %482 = arith.mulf %477, %481 : vector<8x8xf32>
    %483 = vector.extract_strided_slice %393 {offsets = [0, 24], sizes = [8, 8], strides = [1, 1]} : vector<8x32xf32> to vector<8x8xf32>
    %484 = arith.truncf %482 : vector<8x8xf32> to vector<8x8xbf16>
    %485 = arith.truncf %483 : vector<8x8xf32> to vector<8x8xbf16>
    %cst_126 = arith.constant dense<0.000000e+00> : vector<8x8xf32>
    %486 = tpu.matmul %484, %485, %cst_126 {dimension_numbers = #tpu.dot_dimension_numbers<[1], [0], [0], [1], [0, 0, 1, 1], [], []>} : vector<8x8xbf16>, vector<8x8xbf16>, vector<8x8xf32> -> vector<8x8xf32>
    %487 = vector.extract_strided_slice %390 {offsets = [24, 0], sizes = [8, 32], strides = [1, 1]} : vector<32x32xbf16> to vector<8x32xbf16>
    %488 = arith.truncf %486 : vector<8x8xf32> to vector<8x8xbf16>
    %cst_127 = arith.constant dense<0.000000e+00> : vector<8x32xf32>
    %489 = tpu.matmul %488, %487, %cst_127 {dimension_numbers = #tpu.dot_dimension_numbers<[1], [0], [0], [1], [0, 0, 1, 1], [], []>} : vector<8x8xbf16>, vector<8x32xbf16>, vector<8x32xf32> -> vector<8x32xf32>
    %490 = arith.addf %466, %489 : vector<8x32xf32>
    %491 = vector.extract_strided_slice %387 {offsets = [8, 0], sizes = [8, 32], strides = [1, 1]} : vector<16x32xf32> to vector<8x32xf32>
    %492 = vector.extract_strided_slice %388 {offsets = [8, 0], sizes = [8, 32], strides = [1, 1]} : vector<16x32xf32> to vector<8x32xf32>
    %493 = vector.extract_strided_slice %389 {offsets = [8, 0], sizes = [8, 32], strides = [1, 1]} : vector<16x32xf32> to vector<8x32xf32>
    %cst_128 = arith.constant 0.000000e+00 : f32
    %494 = vector.broadcast %cst_128 : f32 to vector<8x32xf32>
    %495 = vector.extract_strided_slice %491 {offsets = [0, 0], sizes = [8, 8], strides = [1, 1]} : vector<8x32xf32> to vector<8x8xf32>
    %496 = vector.extract_strided_slice %492 {offsets = [0, 0], sizes = [8, 8], strides = [1, 1]} : vector<8x32xf32> to vector<8x8xf32>
    %497 = tpu.transpose %496, [1, 0] : vector<8x8xf32> -> vector<8x8xf32>
    %498 = arith.truncf %495 : vector<8x8xf32> to vector<8x8xbf16>
    %499 = arith.truncf %497 : vector<8x8xf32> to vector<8x8xbf16>
    %cst_129 = arith.constant dense<0.000000e+00> : vector<8x8xf32>
    %500 = tpu.matmul %498, %499, %cst_129 {dimension_numbers = #tpu.dot_dimension_numbers<[1], [0], [0], [1], [0, 0, 1, 1], [], []>} : vector<8x8xbf16>, vector<8x8xbf16>, vector<8x8xf32> -> vector<8x8xf32>
    %cst_130 = arith.constant dense<0xFF800000> : vector<8xf32>
    %501 = vector.multi_reduction <maximumf>, %500, %cst_130 [1] : vector<8x8xf32> to vector<8xf32>
    %502 = vector.shape_cast %501 : vector<8xf32> to vector<8x1xf32>
    %503 = vector.broadcast %502 : vector<8x1xf32> to vector<8x8xf32>
    %504 = arith.subf %500, %503 : vector<8x8xf32>
    %505 = math.exp %504 : vector<8x8xf32>
    %cst_131 = arith.constant dense<0.000000e+00> : vector<8xf32>
    %506 = vector.multi_reduction <add>, %505, %cst_131 [1] : vector<8x8xf32> to vector<8xf32>
    %507 = vector.shape_cast %506 : vector<8xf32> to vector<8x1xf32>
    %508 = tpu.reciprocal %507 {approx = true} : vector<8x1xf32> -> vector<8x1xf32>
    %509 = vector.broadcast %508 : vector<8x1xf32> to vector<8x8xf32>
    %510 = arith.mulf %505, %509 : vector<8x8xf32>
    %511 = vector.extract_strided_slice %493 {offsets = [0, 0], sizes = [8, 8], strides = [1, 1]} : vector<8x32xf32> to vector<8x8xf32>
    %512 = arith.truncf %510 : vector<8x8xf32> to vector<8x8xbf16>
    %513 = arith.truncf %511 : vector<8x8xf32> to vector<8x8xbf16>
    %cst_132 = arith.constant dense<0.000000e+00> : vector<8x8xf32>
    %514 = tpu.matmul %512, %513, %cst_132 {dimension_numbers = #tpu.dot_dimension_numbers<[1], [0], [0], [1], [0, 0, 1, 1], [], []>} : vector<8x8xbf16>, vector<8x8xbf16>, vector<8x8xf32> -> vector<8x8xf32>
    %515 = vector.extract_strided_slice %390 {offsets = [0, 0], sizes = [8, 32], strides = [1, 1]} : vector<32x32xbf16> to vector<8x32xbf16>
    %516 = arith.truncf %514 : vector<8x8xf32> to vector<8x8xbf16>
    %cst_133 = arith.constant dense<0.000000e+00> : vector<8x32xf32>
    %517 = tpu.matmul %516, %515, %cst_133 {dimension_numbers = #tpu.dot_dimension_numbers<[1], [0], [0], [1], [0, 0, 1, 1], [], []>} : vector<8x8xbf16>, vector<8x32xbf16>, vector<8x32xf32> -> vector<8x32xf32>
    %518 = arith.addf %494, %517 : vector<8x32xf32>
    %519 = vector.extract_strided_slice %491 {offsets = [0, 8], sizes = [8, 8], strides = [1, 1]} : vector<8x32xf32> to vector<8x8xf32>
    %520 = vector.extract_strided_slice %492 {offsets = [0, 8], sizes = [8, 8], strides = [1, 1]} : vector<8x32xf32> to vector<8x8xf32>
    %521 = tpu.transpose %520, [1, 0] : vector<8x8xf32> -> vector<8x8xf32>
    %522 = arith.truncf %519 : vector<8x8xf32> to vector<8x8xbf16>
    %523 = arith.truncf %521 : vector<8x8xf32> to vector<8x8xbf16>
    %cst_134 = arith.constant dense<0.000000e+00> : vector<8x8xf32>
    %524 = tpu.matmul %522, %523, %cst_134 {dimension_numbers = #tpu.dot_dimension_numbers<[1], [0], [0], [1], [0, 0, 1, 1], [], []>} : vector<8x8xbf16>, vector<8x8xbf16>, vector<8x8xf32> -> vector<8x8xf32>
    %cst_135 = arith.constant dense<0xFF800000> : vector<8xf32>
    %525 = vector.multi_reduction <maximumf>, %524, %cst_135 [1] : vector<8x8xf32> to vector<8xf32>
    %526 = vector.shape_cast %525 : vector<8xf32> to vector<8x1xf32>
    %527 = vector.broadcast %526 : vector<8x1xf32> to vector<8x8xf32>
    %528 = arith.subf %524, %527 : vector<8x8xf32>
    %529 = math.exp %528 : vector<8x8xf32>
    %cst_136 = arith.constant dense<0.000000e+00> : vector<8xf32>
    %530 = vector.multi_reduction <add>, %529, %cst_136 [1] : vector<8x8xf32> to vector<8xf32>
    %531 = vector.shape_cast %530 : vector<8xf32> to vector<8x1xf32>
    %532 = tpu.reciprocal %531 {approx = true} : vector<8x1xf32> -> vector<8x1xf32>
    %533 = vector.broadcast %532 : vector<8x1xf32> to vector<8x8xf32>
    %534 = arith.mulf %529, %533 : vector<8x8xf32>
    %535 = vector.extract_strided_slice %493 {offsets = [0, 8], sizes = [8, 8], strides = [1, 1]} : vector<8x32xf32> to vector<8x8xf32>
    %536 = arith.truncf %534 : vector<8x8xf32> to vector<8x8xbf16>
    %537 = arith.truncf %535 : vector<8x8xf32> to vector<8x8xbf16>
    %cst_137 = arith.constant dense<0.000000e+00> : vector<8x8xf32>
    %538 = tpu.matmul %536, %537, %cst_137 {dimension_numbers = #tpu.dot_dimension_numbers<[1], [0], [0], [1], [0, 0, 1, 1], [], []>} : vector<8x8xbf16>, vector<8x8xbf16>, vector<8x8xf32> -> vector<8x8xf32>
    %539 = vector.extract_strided_slice %390 {offsets = [8, 0], sizes = [8, 32], strides = [1, 1]} : vector<32x32xbf16> to vector<8x32xbf16>
    %540 = arith.truncf %538 : vector<8x8xf32> to vector<8x8xbf16>
    %cst_138 = arith.constant dense<0.000000e+00> : vector<8x32xf32>
    %541 = tpu.matmul %540, %539, %cst_138 {dimension_numbers = #tpu.dot_dimension_numbers<[1], [0], [0], [1], [0, 0, 1, 1], [], []>} : vector<8x8xbf16>, vector<8x32xbf16>, vector<8x32xf32> -> vector<8x32xf32>
    %542 = arith.addf %518, %541 : vector<8x32xf32>
    %543 = vector.extract_strided_slice %491 {offsets = [0, 16], sizes = [8, 8], strides = [1, 1]} : vector<8x32xf32> to vector<8x8xf32>
    %544 = vector.extract_strided_slice %492 {offsets = [0, 16], sizes = [8, 8], strides = [1, 1]} : vector<8x32xf32> to vector<8x8xf32>
    %545 = tpu.transpose %544, [1, 0] : vector<8x8xf32> -> vector<8x8xf32>
    %546 = arith.truncf %543 : vector<8x8xf32> to vector<8x8xbf16>
    %547 = arith.truncf %545 : vector<8x8xf32> to vector<8x8xbf16>
    %cst_139 = arith.constant dense<0.000000e+00> : vector<8x8xf32>
    %548 = tpu.matmul %546, %547, %cst_139 {dimension_numbers = #tpu.dot_dimension_numbers<[1], [0], [0], [1], [0, 0, 1, 1], [], []>} : vector<8x8xbf16>, vector<8x8xbf16>, vector<8x8xf32> -> vector<8x8xf32>
    %cst_140 = arith.constant dense<0xFF800000> : vector<8xf32>
    %549 = vector.multi_reduction <maximumf>, %548, %cst_140 [1] : vector<8x8xf32> to vector<8xf32>
    %550 = vector.shape_cast %549 : vector<8xf32> to vector<8x1xf32>
    %551 = vector.broadcast %550 : vector<8x1xf32> to vector<8x8xf32>
    %552 = arith.subf %548, %551 : vector<8x8xf32>
    %553 = math.exp %552 : vector<8x8xf32>
    %cst_141 = arith.constant dense<0.000000e+00> : vector<8xf32>
    %554 = vector.multi_reduction <add>, %553, %cst_141 [1] : vector<8x8xf32> to vector<8xf32>
    %555 = vector.shape_cast %554 : vector<8xf32> to vector<8x1xf32>
    %556 = tpu.reciprocal %555 {approx = true} : vector<8x1xf32> -> vector<8x1xf32>
    %557 = vector.broadcast %556 : vector<8x1xf32> to vector<8x8xf32>
    %558 = arith.mulf %553, %557 : vector<8x8xf32>
    %559 = vector.extract_strided_slice %493 {offsets = [0, 16], sizes = [8, 8], strides = [1, 1]} : vector<8x32xf32> to vector<8x8xf32>
    %560 = arith.truncf %558 : vector<8x8xf32> to vector<8x8xbf16>
    %561 = arith.truncf %559 : vector<8x8xf32> to vector<8x8xbf16>
    %cst_142 = arith.constant dense<0.000000e+00> : vector<8x8xf32>
    %562 = tpu.matmul %560, %561, %cst_142 {dimension_numbers = #tpu.dot_dimension_numbers<[1], [0], [0], [1], [0, 0, 1, 1], [], []>} : vector<8x8xbf16>, vector<8x8xbf16>, vector<8x8xf32> -> vector<8x8xf32>
    %563 = vector.extract_strided_slice %390 {offsets = [16, 0], sizes = [8, 32], strides = [1, 1]} : vector<32x32xbf16> to vector<8x32xbf16>
    %564 = arith.truncf %562 : vector<8x8xf32> to vector<8x8xbf16>
    %cst_143 = arith.constant dense<0.000000e+00> : vector<8x32xf32>
    %565 = tpu.matmul %564, %563, %cst_143 {dimension_numbers = #tpu.dot_dimension_numbers<[1], [0], [0], [1], [0, 0, 1, 1], [], []>} : vector<8x8xbf16>, vector<8x32xbf16>, vector<8x32xf32> -> vector<8x32xf32>
    %566 = arith.addf %542, %565 : vector<8x32xf32>
    %567 = vector.extract_strided_slice %491 {offsets = [0, 24], sizes = [8, 8], strides = [1, 1]} : vector<8x32xf32> to vector<8x8xf32>
    %568 = vector.extract_strided_slice %492 {offsets = [0, 24], sizes = [8, 8], strides = [1, 1]} : vector<8x32xf32> to vector<8x8xf32>
    %569 = tpu.transpose %568, [1, 0] : vector<8x8xf32> -> vector<8x8xf32>
    %570 = arith.truncf %567 : vector<8x8xf32> to vector<8x8xbf16>
    %571 = arith.truncf %569 : vector<8x8xf32> to vector<8x8xbf16>
    %cst_144 = arith.constant dense<0.000000e+00> : vector<8x8xf32>
    %572 = tpu.matmul %570, %571, %cst_144 {dimension_numbers = #tpu.dot_dimension_numbers<[1], [0], [0], [1], [0, 0, 1, 1], [], []>} : vector<8x8xbf16>, vector<8x8xbf16>, vector<8x8xf32> -> vector<8x8xf32>
    %cst_145 = arith.constant dense<0xFF800000> : vector<8xf32>
    %573 = vector.multi_reduction <maximumf>, %572, %cst_145 [1] : vector<8x8xf32> to vector<8xf32>
    %574 = vector.shape_cast %573 : vector<8xf32> to vector<8x1xf32>
    %575 = vector.broadcast %574 : vector<8x1xf32> to vector<8x8xf32>
    %576 = arith.subf %572, %575 : vector<8x8xf32>
    %577 = math.exp %576 : vector<8x8xf32>
    %cst_146 = arith.constant dense<0.000000e+00> : vector<8xf32>
    %578 = vector.multi_reduction <add>, %577, %cst_146 [1] : vector<8x8xf32> to vector<8xf32>
    %579 = vector.shape_cast %578 : vector<8xf32> to vector<8x1xf32>
    %580 = tpu.reciprocal %579 {approx = true} : vector<8x1xf32> -> vector<8x1xf32>
    %581 = vector.broadcast %580 : vector<8x1xf32> to vector<8x8xf32>
    %582 = arith.mulf %577, %581 : vector<8x8xf32>
    %583 = vector.extract_strided_slice %493 {offsets = [0, 24], sizes = [8, 8], strides = [1, 1]} : vector<8x32xf32> to vector<8x8xf32>
    %584 = arith.truncf %582 : vector<8x8xf32> to vector<8x8xbf16>
    %585 = arith.truncf %583 : vector<8x8xf32> to vector<8x8xbf16>
    %cst_147 = arith.constant dense<0.000000e+00> : vector<8x8xf32>
    %586 = tpu.matmul %584, %585, %cst_147 {dimension_numbers = #tpu.dot_dimension_numbers<[1], [0], [0], [1], [0, 0, 1, 1], [], []>} : vector<8x8xbf16>, vector<8x8xbf16>, vector<8x8xf32> -> vector<8x8xf32>
    %587 = vector.extract_strided_slice %390 {offsets = [24, 0], sizes = [8, 32], strides = [1, 1]} : vector<32x32xbf16> to vector<8x32xbf16>
    %588 = arith.truncf %586 : vector<8x8xf32> to vector<8x8xbf16>
    %cst_148 = arith.constant dense<0.000000e+00> : vector<8x32xf32>
    %589 = tpu.matmul %588, %587, %cst_148 {dimension_numbers = #tpu.dot_dimension_numbers<[1], [0], [0], [1], [0, 0, 1, 1], [], []>} : vector<8x8xbf16>, vector<8x32xbf16>, vector<8x32xf32> -> vector<8x32xf32>
    %590 = arith.addf %566, %589 : vector<8x32xf32>
    %591 = tpu.concatenate %490, %590 in 0 : vector<8x32xf32>, vector<8x32xf32> -> vector<16x32xf32>
    %592 = arith.addf %356, %591 : vector<16x32xf32>
    %c29 = arith.constant 29 : index
    %c0_149 = arith.constant 0 : index
    %593 = vector.load %arg3[%c29, %c0_149] : memref<38x128xf32, #tpu.memory_space<vmem>>, vector<1x32xf32>
    %594 = vector.broadcast %593 : vector<1x32xf32> to vector<16x32xf32>
    %595 = arith.addf %592, %594 : vector<16x32xf32>
    %c30 = arith.constant 30 : index
    %c0_150 = arith.constant 0 : index
    %596 = vector.load %arg3[%c30, %c0_150] : memref<38x128xf32, #tpu.memory_space<vmem>>, vector<1x32xf32>
    %c31 = arith.constant 31 : index
    %c0_151 = arith.constant 0 : index
    %597 = vector.load %arg3[%c31, %c0_151] : memref<38x128xf32, #tpu.memory_space<vmem>>, vector<1x32xf32>
    %cst_152 = arith.constant dense<0.000000e+00> : vector<16xf32>
    %598 = vector.multi_reduction <add>, %595, %cst_152 [1] : vector<16x32xf32> to vector<16xf32>
    %599 = vector.shape_cast %598 : vector<16xf32> to vector<16x1xf32>
    %cst_153 = arith.constant 3.200000e+01 : f32
    %600 = vector.broadcast %cst_153 : f32 to vector<16x1xf32>
    %601 = arith.divf %599, %600 : vector<16x1xf32>
    %602 = vector.broadcast %601 : vector<16x1xf32> to vector<16x32xf32>
    %603 = arith.subf %595, %602 : vector<16x32xf32>
    %604 = arith.mulf %603, %603 : vector<16x32xf32>
    %cst_154 = arith.constant dense<0.000000e+00> : vector<16xf32>
    %605 = vector.multi_reduction <add>, %604, %cst_154 [1] : vector<16x32xf32> to vector<16xf32>
    %606 = vector.shape_cast %605 : vector<16xf32> to vector<16x1xf32>
    %cst_155 = arith.constant 3.200000e+01 : f32
    %607 = vector.broadcast %cst_155 : f32 to vector<16x1xf32>
    %608 = arith.divf %606, %607 : vector<16x1xf32>
    %609 = vector.broadcast %601 : vector<16x1xf32> to vector<16x32xf32>
    %610 = arith.subf %595, %609 : vector<16x32xf32>
    %cst_156 = arith.constant 9.99999974E-6 : f32
    %611 = vector.broadcast %cst_156 : f32 to vector<16x1xf32>
    %612 = arith.addf %608, %611 : vector<16x1xf32>
    %613 = math.rsqrt %612 : vector<16x1xf32>
    %614 = vector.broadcast %613 : vector<16x1xf32> to vector<16x32xf32>
    %615 = arith.mulf %610, %614 : vector<16x32xf32>
    %616 = vector.broadcast %596 : vector<1x32xf32> to vector<16x32xf32>
    %617 = arith.mulf %615, %616 : vector<16x32xf32>
    %618 = vector.broadcast %597 : vector<1x32xf32> to vector<16x32xf32>
    %619 = arith.addf %617, %618 : vector<16x32xf32>
    %c320 = arith.constant 320 : index
    %c0_157 = arith.constant 0 : index
    %620 = vector.load %arg2[%c320, %c0_157] : memref<480x128xbf16, #tpu.memory_space<vmem>>, vector<32x64xbf16>
    %621 = arith.truncf %619 : vector<16x32xf32> to vector<16x32xbf16>
    %cst_158 = arith.constant dense<0.000000e+00> : vector<16x64xf32>
    %622 = tpu.matmul %621, %620, %cst_158 {dimension_numbers = #tpu.dot_dimension_numbers<[1], [0], [0], [1], [0, 0, 1, 1], [], []>} : vector<16x32xbf16>, vector<32x64xbf16>, vector<16x64xf32> -> vector<16x64xf32>
    %c32 = arith.constant 32 : index
    %c0_159 = arith.constant 0 : index
    %623 = vector.load %arg3[%c32, %c0_159] : memref<38x128xf32, #tpu.memory_space<vmem>>, vector<1x64xf32>
    %624 = vector.broadcast %623 : vector<1x64xf32> to vector<16x64xf32>
    %625 = arith.addf %622, %624 : vector<16x64xf32>
    %cst_160 = arith.constant 5.000000e-01 : f32
    %626 = vector.broadcast %cst_160 : f32 to vector<16x64xf32>
    %627 = arith.mulf %626, %625 : vector<16x64xf32>
    %cst_161 = arith.constant 4.471500e-02 : f32
    %628 = vector.broadcast %cst_161 : f32 to vector<16x64xf32>
    %629 = arith.mulf %628, %625 : vector<16x64xf32>
    %630 = arith.mulf %629, %625 : vector<16x64xf32>
    %631 = arith.mulf %630, %625 : vector<16x64xf32>
    %632 = arith.addf %625, %631 : vector<16x64xf32>
    %cst_162 = arith.constant 0.797884583 : f32
    %633 = vector.broadcast %cst_162 : f32 to vector<16x64xf32>
    %634 = arith.mulf %633, %632 : vector<16x64xf32>
    %635 = math.tanh %634 : vector<16x64xf32>
    %cst_163 = arith.constant 1.000000e+00 : f32
    %636 = vector.broadcast %cst_163 : f32 to vector<16x64xf32>
    %637 = arith.addf %636, %635 : vector<16x64xf32>
    %638 = arith.mulf %627, %637 : vector<16x64xf32>
    %c352 = arith.constant 352 : index
    %c0_164 = arith.constant 0 : index
    %639 = vector.load %arg2[%c352, %c0_164] : memref<480x128xbf16, #tpu.memory_space<vmem>>, vector<64x32xbf16>
    %640 = arith.truncf %638 : vector<16x64xf32> to vector<16x64xbf16>
    %cst_165 = arith.constant dense<0.000000e+00> : vector<16x32xf32>
    %641 = tpu.matmul %640, %639, %cst_165 {dimension_numbers = #tpu.dot_dimension_numbers<[1], [0], [0], [1], [0, 0, 1, 1], [], []>} : vector<16x64xbf16>, vector<64x32xbf16>, vector<16x32xf32> -> vector<16x32xf32>
    %642 = arith.addf %595, %641 : vector<16x32xf32>
    %c33 = arith.constant 33 : index
    %c0_166 = arith.constant 0 : index
    %643 = vector.load %arg3[%c33, %c0_166] : memref<38x128xf32, #tpu.memory_space<vmem>>, vector<1x32xf32>
    %644 = vector.broadcast %643 : vector<1x32xf32> to vector<16x32xf32>
    %645 = arith.addf %642, %644 : vector<16x32xf32>
    %c34 = arith.constant 34 : index
    %c0_167 = arith.constant 0 : index
    %646 = vector.load %arg3[%c34, %c0_167] : memref<38x128xf32, #tpu.memory_space<vmem>>, vector<1x32xf32>
    %c35 = arith.constant 35 : index
    %c0_168 = arith.constant 0 : index
    %647 = vector.load %arg3[%c35, %c0_168] : memref<38x128xf32, #tpu.memory_space<vmem>>, vector<1x32xf32>
    %cst_169 = arith.constant dense<0.000000e+00> : vector<16xf32>
    %648 = vector.multi_reduction <add>, %645, %cst_169 [1] : vector<16x32xf32> to vector<16xf32>
    %649 = vector.shape_cast %648 : vector<16xf32> to vector<16x1xf32>
    %cst_170 = arith.constant 3.200000e+01 : f32
    %650 = vector.broadcast %cst_170 : f32 to vector<16x1xf32>
    %651 = arith.divf %649, %650 : vector<16x1xf32>
    %652 = vector.broadcast %651 : vector<16x1xf32> to vector<16x32xf32>
    %653 = arith.subf %645, %652 : vector<16x32xf32>
    %654 = arith.mulf %653, %653 : vector<16x32xf32>
    %cst_171 = arith.constant dense<0.000000e+00> : vector<16xf32>
    %655 = vector.multi_reduction <add>, %654, %cst_171 [1] : vector<16x32xf32> to vector<16xf32>
    %656 = vector.shape_cast %655 : vector<16xf32> to vector<16x1xf32>
    %cst_172 = arith.constant 3.200000e+01 : f32
    %657 = vector.broadcast %cst_172 : f32 to vector<16x1xf32>
    %658 = arith.divf %656, %657 : vector<16x1xf32>
    %659 = vector.broadcast %651 : vector<16x1xf32> to vector<16x32xf32>
    %660 = arith.subf %645, %659 : vector<16x32xf32>
    %cst_173 = arith.constant 9.99999974E-6 : f32
    %661 = vector.broadcast %cst_173 : f32 to vector<16x1xf32>
    %662 = arith.addf %658, %661 : vector<16x1xf32>
    %663 = math.rsqrt %662 : vector<16x1xf32>
    %664 = vector.broadcast %663 : vector<16x1xf32> to vector<16x32xf32>
    %665 = arith.mulf %660, %664 : vector<16x32xf32>
    %666 = vector.broadcast %646 : vector<1x32xf32> to vector<16x32xf32>
    %667 = arith.mulf %665, %666 : vector<16x32xf32>
    %668 = vector.broadcast %647 : vector<1x32xf32> to vector<16x32xf32>
    %669 = arith.addf %667, %668 : vector<16x32xf32>
    %c416 = arith.constant 416 : index
    %c0_174 = arith.constant 0 : index
    %670 = vector.load %arg2[%c416, %c0_174] : memref<480x128xbf16, #tpu.memory_space<vmem>>, vector<2x16xbf16>
    %671 = arith.truncf %669 : vector<16x32xf32> to vector<16x32xbf16>
    %cst_175 = arith.constant dense<0.000000e+00> : vector<2x32xf32>
    %672 = tpu.matmul %670, %671, %cst_175 {dimension_numbers = #tpu.dot_dimension_numbers<[1], [0], [0], [1], [0, 0, 1, 1], [], []>} : vector<2x16xbf16>, vector<16x32xbf16>, vector<2x32xf32> -> vector<2x32xf32>
    %c432 = arith.constant 432 : index
    %c0_176 = arith.constant 0 : index
    %673 = vector.load %arg2[%c432, %c0_176] : memref<480x128xbf16, #tpu.memory_space<vmem>>, vector<32x16xbf16>
    %674 = arith.truncf %672 : vector<2x32xf32> to vector<2x32xbf16>
    %cst_177 = arith.constant dense<0.000000e+00> : vector<2x16xf32>
    %675 = tpu.matmul %674, %673, %cst_177 {dimension_numbers = #tpu.dot_dimension_numbers<[1], [0], [0], [1], [0, 0, 1, 1], [], []>} : vector<2x32xbf16>, vector<32x16xbf16>, vector<2x16xf32> -> vector<2x16xf32>
    %c36 = arith.constant 36 : index
    %c0_178 = arith.constant 0 : index
    %676 = vector.load %arg3[%c36, %c0_178] : memref<38x128xf32, #tpu.memory_space<vmem>>, vector<1x16xf32>
    %677 = vector.broadcast %676 : vector<1x16xf32> to vector<2x16xf32>
    %678 = arith.addf %675, %677 : vector<2x16xf32>
    %cst_179 = arith.constant 0.000000e+00 : f32
    %679 = vector.broadcast %cst_179 : f32 to vector<2x16xf32>
    %680 = arith.maximumf %678, %679 : vector<2x16xf32>
    %c464 = arith.constant 464 : index
    %c0_180 = arith.constant 0 : index
    %681 = vector.load %arg2[%c464, %c0_180] : memref<480x128xbf16, #tpu.memory_space<vmem>>, vector<16x128xbf16>
    %682 = arith.truncf %680 : vector<2x16xf32> to vector<2x16xbf16>
    %cst_181 = arith.constant dense<0.000000e+00> : vector<2x128xf32>
    %683 = tpu.matmul %682, %681, %cst_181 {dimension_numbers = #tpu.dot_dimension_numbers<[1], [0], [0], [1], [0, 0, 1, 1], [], []>} : vector<2x16xbf16>, vector<16x128xbf16>, vector<2x128xf32> -> vector<2x128xf32>
    %c37 = arith.constant 37 : index
    %c0_182 = arith.constant 0 : index
    %684 = vector.load %arg3[%c37, %c0_182] : memref<38x128xf32, #tpu.memory_space<vmem>>, vector<1x128xf32>
    %685 = vector.broadcast %684 : vector<1x128xf32> to vector<2x128xf32>
    %686 = arith.addf %683, %685 : vector<2x128xf32>
    %c0_183 = arith.constant 0 : index
    %c0_184 = arith.constant 0 : index
    %687 = vector.load %arg4[%c0_183, %c0_184] : memref<2x128xf32, #tpu.memory_space<vmem>>, vector<2x128xf32>
    tpu.vector_store %arg4[%c0_183, %c0_184], %686 {strides = array<i32>} : memref<2x128xf32, #tpu.memory_space<vmem>>, vector<2x128xf32>,
    return
  }
  func.func @transform_0(%arg0: i32) -> (i32, i32) {
    %c0_i32 = arith.constant 0 : i32
    %c0_i32_0 = arith.constant 0 : i32
    %c0_i32_1 = arith.constant 0 : i32
    return %c0_i32, %c0_i32_0 : i32, i32
  }
  func.func @transform_1(%arg0: i32) -> (i32, i32) {
    %c0_i32 = arith.constant 0 : i32
    %c0_i32_0 = arith.constant 0 : i32
    %c0_i32_1 = arith.constant 0 : i32
    return %c0_i32, %c0_i32_0 : i32, i32
  }
  func.func @transform_2(%arg0: i32) -> (i32, i32) {
    %c0_i32 = arith.constant 0 : i32
    %c0_i32_0 = arith.constant 0 : i32
    %c0_i32_1 = arith.constant 0 : i32
    return %c0_i32, %c0_i32_0 : i32, i32
  }
  func.func @transform_3(%arg0: i32) -> (i32, i32) {
    %c0_i32 = arith.constant 0 : i32
    %c0_i32_0 = arith.constant 0 : i32
    %c0_i32_1 = arith.constant 0 : i32
    return %c0_i32, %c0_i32_0 : i32, i32
  }
}

</mosaic_0001>

<bundles_post_ra>
// kernel: mlp_net_whisper_forward.1
= control target key start
LH: loop header
LB: loop body
LE: loop exit
PB: predicated region body
PF: predicated region fallthrough
CT: control target
= control target key end

     0   :  { %8 = vsyncpa [#allocation3], 0  ;;  %s6054_s0 = inlined_call_operand.vmem [shape: f32[36,8], index: 0, kind: input, shape index: {}]   ;;  %s6055_s1 = inlined_call_operand.hbm [shape: bf16[480,128], index: 1, kind: input, shape index: {}]   ;;  %s6056_s2 = inlined_call_operand.vmem [shape: f32[38,128], index: 2, kind: input, shape index: {}]   ;;  %s6057_s3 = inlined_call_operand.hbm [shape: f32[2,128], index: 3, kind: output, shape index: {}]  }
   0x1   :  { %9 = vsyncpa [#allocation4], 0  ;;  %s5287_s12 = smov [#allocation2]   ;;  %s5239_s16 = scalar_lea.hbm %s6055_s1, 3840 }
   0x2   :  { %s17_s13 = sshll.u32 %s5287_s12, 4  ;;  %p5240_p0 = scmp.ne.s32.totalorder %s6055_s1, %s5239_s16  ;;  %s18_s13 = int_to_ptr.vmem [resolvable:$true] %s17_s13 }
   0x3   :  { %p5243_p1 = scmp.lt.u32.totalorder %s5239_s16, %s6055_s1 }
   0x5   :  { %p5245_p2 = pnand %p5243_p1, %p5240_p0 }
   0x7   :  { %5248 = shalt.err (!%p5245_p2)
}
   0x8   :  { %s5249_s21 = scalar_lea.vmem %s18_s13, 3840  ;;  %p5254_p4 = scmp.lt.s32.totalorder %s18_s13, %s18_s13 }
   0x9   :  { %p5250_p3 = scmp.ne.s32.totalorder %s18_s13, %s5249_s21  ;;  %p5255_p5 = scmp.lt.s32.totalorder %s5249_s21, %s5249_s21 }
   0xb   :  { %p5256_p6 = por %p5255_p5, %p5254_p4 }
   0xd   :  { %p5257_p7 = pnand %p5256_p6, %p5250_p3 }
   0xf   :  { %5260 = shalt.err (!%p5257_p7)
}
  0x10   :  { %s5288_s22 = smov 64   ;;  %s5289_s23 = smov 4  }
  0x11   :  { %23 = dma.hbm_to_vmem [thread:$0]  %s6055_s1, 3840, %s18_s13, [#allocation3], %s5288_s22, %s5288_s22, %s5289_s23  }
  0x12   :  { %5283 = dma.done.wait [#allocation3], 3840  }
  0x13   :  { %5284 = vsyncadd [#allocation3], 4294963456  ;;  %v5290_v0 = vmov 0.0   ;;  %vm5291_vm0 = vmmov 0   ;;  %vm49_vm1 = vcmask 1043456   ;;  %v30_v2 = vld [vmem:[%s6054_s0] sm:$0xff] }
  0x14   :  { %4685 = vmatprep.subr.bf16.mxu0 %v5290_v0  ;;  %4687 = vmatprep.mubr.msk.bf16.mxu0 %vm5291_vm0, %v5290_v0  ;;  %v35_v1 = vld [vmem:[#allocation2] sm:$0xf]  ;;  %v31_v3 = vld [vmem:[%s6054_s0 + $0x8] sm:$0xff]  ;;  %vm39_vm2 = vcmask 64512   ;;  %v32_v6 = vld [vmem:[%s6054_s0 + $0x10] sm:$0xff]  ;;  %vm112_vm3 = vcmask 1046528  }
  0x15   :  { %v51_v4 = vsel %vm49_vm1, %v35_v1, 0  ;;  %v36_v5 = vpack.c.bf16 %v31_v3, %v30_v2  ;;  %v33_v7 = vld [vmem:[%s6054_s0 + $0x18] sm:$0xff]  ;;  %v34_v9 = vld [vmem:[%s6054_s0 + $0x20] sm:$0xf]  ;;  %vm126_vm4 = vcmask 1045504   ;;  %s5292_s0 = smov 96  }
  0x16   :  { %4686 = vmatpush3.bf16.msra.mxu0 %v51_v4  ;;  %v37_v8 = vpack.c.bf16 %v33_v7, %v32_v6  ;;  %v38_v10 = vpack.c.bf16 %v34_v9, %v34_v9  ;;  %v5111_v38 = vld [vmem:[#allocation2 + $0x8] sm:$0xff]   ;;  %v5112_v39 = vld [vmem:[#allocation2 + $0x10] sm:$0xff]   ;;  %vm247_vm5 = vcmask 261120   ;;  %s5293_s23 = smov 88   ;;  %s5294_s24 = smov 120   ;;  %vm2302_vm6 = vcmask 523264  }
  0x17   :  { %4723 = vmatprep.subr.bf16.mxu0 %v5290_v0  ;;  %4699 = vmatprep.subr.bf16.mxu1 %v5111_v38  ;;  %v4435_v61 = vld [vmem:[%s6056_s2 + $0x10] ss:$0 sm:$0xff]  ;;  %s5295_s25 = smov 56   ;;  %s5296_s26 = smov 112   ;;  %vm4249_vm7 = vcmask 130048  }
  0x18   :  { %4700 = vmatpush3.bf16.msra.mxu1 %v5111_v38  ;;  %s5297_s27 = smov 80   ;;  %s5298_s28 = smov 72  }
  0x19   :  { %4688 = vmatmul.mubr.msk.bf16.vlgmr.msra.gmra.mrb[0].mxu0 %vm39_vm2, %v36_v5  ;;  %4701 = vmatprep.subr.bf16.mxu1 %v5112_v39  ;;  %s5299_s29 = smov 48   ;;  %s5300_s1 = smov 104  }
  0x1a   :  { %4691 = vmatprep.mubr.msk.bf16.mxu0 %vm5291_vm0, %v5290_v0  ;;  %s5301_s30 = smov 40   ;;  %s5302_s9 = smov [#allocation5]  }
  0x1b   :  { %s4423_s10 = sshll.u32 %s5302_s9, 4  ;;  %s4424_s10 = int_to_ptr.vmem [resolvable:$true] %s4423_s10 }
  0x1c   :  { %4702 = vmatpush3.bf16.msra.mxu1 %v5112_v39  ;;  %s5261_s11 = scalar_lea.vmem %s4424_s10, 32  ;;  %p5266_p9 = scmp.lt.s32.totalorder %s4424_s10, %s4424_s10 }
  0x1d   :  { %4707 = vmatprep.subr.bf16.mxu1 %v5290_v0  ;;  %p5262_p8 = scmp.ne.s32.totalorder %s4424_s10, %s5261_s11  ;;  %p5267_p10 = scmp.lt.s32.totalorder %s5261_s11, %s5261_s11 }
  0x1f   :  { %p5268_p11 = por %p5267_p10, %p5266_p9 }
  0x21   :  { %4692 = vmatmul.mubr.msk.bf16.gmra.mrb[4].mxu0 %vm39_vm2, %v37_v8  ;;  %p5269_p12 = pnand %p5268_p11, %p5262_p8 }
  0x22   :  { %4695 = vmatprep.mubr.msk.bf16.mxu0 %vm5291_vm0, %v5290_v0 }
  0x29   :  { %4696 = vmatmul.mubr.msk.bf16.gmra.mrb[8].mxu0 %vm39_vm2, %v38_v10 }
  0x2a   :  { %4727 = vmatprep.mubr.msk.bf16.mxu0 %vm5291_vm0, %v5290_v0 }
  0xec   :  { %v5366_v11 = vpop.f32.mrb[0].mxu0 }
  0xed   :  { %v4689_v12 = vpop.f32.mrb[1].mxu0  ;;  %v113_v14 = vrot.slane %v5366_v11, 1  ;;  %v127_v15 = vrot.slane %v5366_v11, 2 }
  0xee   :  { %v90_v13 = vpop.f32.mrb[2].mxu0 }
  0xef   :  { %v114_v16 = vrot.slane %v90_v13, 1  ;;  %v128_v17 = vrot.slane %v90_v13, 2  ;;  %v4690_v18 = vpop.f32.mrb[3].mxu0 }
  0xf1   :  { %v115_v19 = vsel %vm112_vm3, %v113_v14, %v114_v16  ;;  %v129_v20 = vsel %vm126_vm4, %v127_v15, %v128_v17 }
  0xf2   :  { %118 = vrot.lane.b32.xlu1 %v115_v19, %s5292_s0 }
  0xf4   :  { %v95_v21 = vpop.f32.mrb[4].mxu0 }
  0xf5   :  { %v116_v22 = vrot.slane %v95_v21, 1  ;;  %v130_v23 = vrot.slane %v95_v21, 2  ;;  %v4693_v24 = vpop.f32.mrb[5].mxu0 }
  0xf6   :  { %v98_v25 = vpop.f32.mrb[6].mxu0 }
  0xf7   :  { %v142_v26 = vrot.slane %v98_v25, 1  ;;  %v158_v27 = vrot.slane %v98_v25, 2  ;;  %v4694_v28 = vpop.f32.mrb[7].mxu0  ;;  %v117_v29 = vsel %vm112_vm3, %v114_v16, %v116_v22  ;;  %v131_v30 = vsel %vm126_vm4, %v128_v17, %v130_v23 }
  0xf8   :  { %120 = vrot.lane.b32.xlu0 %v117_v29, %s5292_s0 }
  0xf9   :  { %v159_v31 = vsel %vm126_vm4, %v130_v23, %v158_v27  ;;  %v143_v32 = vsel %vm112_vm3, %v116_v22, %v142_v26 }
  0xfa   :  { %162 = vrot.lane.b32.xlu1 %v159_v31, %s5288_s22 }
  0xfc   :  { %146 = vrot.lane.b32.xlu0 %v143_v32, %s5292_s0  ;;  %v103_v33 = vpop.f32.mrb[8].mxu0 }
  0xfd   :  { %v144_v34 = vrot.slane %v103_v33, 1  ;;  %v4697_v35 = vpop.f32.mrb[9].mxu0  ;;  %v160_v36 = vrot.slane %v103_v33, 2 }
  0xfe   :  { %v106_v37 = vpop.f32.mrb[10].mxu0 }
  0xff   :  { %150 = vrot.lane.b32.xlu1 %v144_v34, %s5292_s0  ;;  %v4698_v40 = vpop.f32.mrb[11].mxu0  ;;  %v145_v41 = vsel %vm112_vm3, %v142_v26, %v144_v34  ;;  %v161_v42 = vsel %vm126_vm4, %v158_v27, %v160_v36 }
 0x100   :  { %148 = vrot.lane.b32.xlu0 %v145_v41, %s5292_s0 }
 0x103   :  { %166 = vrot.lane.b32.xlu1 %v160_v36, %s5288_s22 }
 0x104   :  { %164 = vrot.lane.b32.xlu0 %v161_v42, %s5288_s22 }
 0x107   :  { %134 = vrot.lane.b32.xlu1 %v131_v30, %s5288_s22 }
 0x108   :  { %132 = vrot.lane.b32.xlu0 %v129_v20, %s5288_s22 }
 0x164   :  { %v119_v43 = vpop.permute.xlu1 %118 }
 0x165   :  { %v124_v59 = vadd.f32 %v119_v43, %v5366_v11 }
 0x16a   :  { %v121_v44 = vpop.permute.xlu0 %120 }
 0x16b   :  { %v125_v57 = vadd.f32 %v121_v44, %v90_v13 }
 0x16c   :  { %v163_v45 = vpop.permute.xlu1 %162 }
 0x16e   :  { %v147_v46 = vpop.permute.xlu0 %146 }
 0x16f   :  { %v155_v47 = vadd.f32 %v147_v46, %v95_v21 }
 0x171   :  { %v151_v48 = vpop.permute.xlu1 %150  ;;  %v171_v51 = vadd.f32 %v163_v45, %v155_v47 }
 0x172   :  { %v149_v49 = vpop.permute.xlu0 %148  ;;  %v157_v50 = vadd.f32 %v151_v48, %v103_v33 }
 0x173   :  { %v156_v52 = vadd.f32 %v149_v49, %v98_v25  ;;  %v177_v60 = vrot.slane %v171_v51, 2 }
 0x175   :  { %v167_v53 = vpop.permute.xlu1 %166 }
 0x176   :  { %v173_v54 = vadd.f32 %v167_v53, %v157_v50  ;;  %v165_v55 = vpop.permute.xlu0 %164 }
 0x177   :  { %v172_v56 = vadd.f32 %v165_v55, %v156_v52 }
 0x178   :  { %v180_v58 = vrot.slane %v173_v54, 2 }
 0x179   :  { %v178_v62 = vrot.slane %v172_v56, 2  ;;  %v135_v63 = vpop.permute.xlu1 %134 }
 0x17a   :  { %v139_v1 = vadd.f32 %v135_v63, %v125_v57  ;;  %v133_v2 = vpop.permute.xlu0 %132  ;;  %v5113_v57 = vld [vmem:[#allocation2 + $0x20] sm:$0xff]  }
 0x17b   :  { %v179_v3 = vsel %vm126_vm4, %v177_v60, %v178_v62  ;;  %v181_v4 = vsel %vm126_vm4, %v178_v62, %v180_v58  ;;  %v138_v5 = vadd.f32 %v133_v2, %v124_v59  ;;  %v5115_v59 = vld [vmem:[#allocation2 + $0x28] sm:$0xff]   ;;  %v5114_v60 = vld [vmem:[#allocation2 + $0x18] sm:$0xff]  }
 0x17c   :  { %v191_v6 = vadd.f32 %v4435_v61, %v179_v3  ;;  %v192_v7 = vadd.f32 %v4435_v61, %v181_v4  ;;  %v190_v8 = vadd.f32 %v4435_v61, %v139_v1 }
 0x17d   :  { %v189_v9 = vadd.f32 %v4435_v61, %v138_v5 }
 0x17e   :  { %v199_v10 = vmul.f32 0.044715, %v191_v6  ;;  %v200_v11 = vmul.f32 0.044715, %v192_v7  ;;  %v198_v13 = vmul.f32 0.044715, %v190_v8 }
 0x17f   :  { %v197_v12 = vmul.f32 0.044715, %v189_v9  ;;  %v193_v34 = vmul.f32 0.5, %v189_v9  ;;  %v195_v36 = vmul.f32 0.5, %v191_v6  ;;  %v194_v38 = vmul.f32 0.5, %v190_v8 }
 0x180   :  { %v203_v14 = vmul.f32 %v199_v10, %v191_v6  ;;  %v204_v15 = vmul.f32 %v200_v11, %v192_v7  ;;  %v202_v17 = vmul.f32 %v198_v13, %v190_v8  ;;  %v196_v41 = vmul.f32 0.5, %v192_v7  ;;  %v4446_v10 = vld [vmem:[%s6056_s2 + $0x11] ss:$0 sm:$0xff] }
 0x181   :  { %v201_v16 = vmul.f32 %v197_v12, %v189_v9 }
 0x182   :  { %v207_v18 = vmul.f32 %v203_v14, %v191_v6  ;;  %v208_v19 = vmul.f32 %v204_v15, %v192_v7  ;;  %v206_v21 = vmul.f32 %v202_v17, %v190_v8 }
 0x183   :  { %v205_v20 = vmul.f32 %v201_v16, %v189_v9 }
 0x184   :  { %v211_v22 = vadd.f32 %v207_v18, %v191_v6  ;;  %v212_v23 = vadd.f32 %v208_v19, %v192_v7  ;;  %v210_v25 = vadd.f32 %v206_v21, %v190_v8 }
 0x185   :  { %v209_v24 = vadd.f32 %v205_v20, %v189_v9 }
 0x186   :  { %v215_v26 = vmul.f32 0.7978846, %v211_v22  ;;  %v214_v28 = vmul.f32 0.7978846, %v210_v25  ;;  %v216_v29 = vmul.f32 0.7978846, %v212_v23 }
 0x187   :  { %v213_v27 = vmul.f32 0.7978846, %v209_v24 }
 0x188   :  { %5135 = vtanh.f32 %v215_v26 }
 0x189   :  { %5137 = vtanh.f32 %v213_v27 }
 0x18a   :  { %5139 = vtanh.f32 %v214_v28 }
 0x18b   :  { %5141 = vtanh.f32 %v216_v29 }
 0x192   :  { %v5136_v30 = vpop.eup %5135 }
 0x193   :  { %v5138_v31 = vpop.eup %5137  ;;  %v223_v32 = vadd.f32 1.0, %v5136_v30 }
 0x194   :  { %v5140_v33 = vpop.eup %5139  ;;  %v221_v35 = vadd.f32 1.0, %v5138_v31  ;;  %v499_v31 = vld [vmem:[%s6056_s2] sm:$0xff] }
 0x195   :  { %v5142_v37 = vpop.eup %5141  ;;  %v222_v39 = vadd.f32 1.0, %v5140_v33  ;;  %v227_v43 = vmul.f32 %v223_v32, %v195_v36 }
 0x196   :  { %v225_v40 = vmul.f32 %v221_v35, %v193_v34  ;;  %v224_v42 = vadd.f32 1.0, %v5142_v37  ;;  %v500_v35 = vld [vmem:[%s6056_s2 + $0x8] sm:$0xff] }
 0x197   :  { %v226_v44 = vmul.f32 %v222_v39, %v194_v38 }
 0x198   :  { %v228_v45 = vmul.f32 %v224_v42, %v196_v41 }
 0x199   :  { %v233_v46 = vpack.c.bf16 %v226_v44, %v225_v40 }
 0x19a   :  { %v234_v47 = vpack.c.bf16 %v228_v45, %v227_v43 }
 0x19b   :  { %4703 = vmatprep.mubr.msk.bf16.mxu1 %vm247_vm5, %v233_v46 }
 0x19c   :  { %4704 = vmatmul.mubr.msk.bf16.vlgmr.msra.gmra.mrb[0].mxu1 %vm247_vm5, %v234_v47 }
 0x19d   :  { %4711 = vmatprep.mubr.msk.bf16.mxu1 %vm5291_vm0, %v5290_v0 }
 0x26f   :  { %v4705_v48 = vpop.f32.mrb[0].mxu1 }
 0x270   :  { %v288_v49 = vpop.f32.mrb[1].mxu1 }
 0x271   :  { %v4706_v50 = vpop.f32.mrb[2].mxu1 }
 0x272   :  { %v306_v51 = vpack.c.bf16 %v4706_v50, %v4705_v48  ;;  %v291_v52 = vpop.f32.mrb[3].mxu1 }
 0x273   :  { %v305_v53 = vpack.c.bf16 %v291_v52, %v288_v49  ;;  %v5117_v52 = vld [vmem:[#allocation2 + $0x38] sm:$0xff]  }
 0x274   :  { %318 = vrot.lane.b32.xlu1 %v306_v51, %s5292_s0 }
 0x275   :  { %316 = vrot.lane.b32.xlu0 %v305_v53, %s5292_s0 }
 0x278   :  { %424 = vrot.lane.b32.xlu1 %v306_v51, %s5288_s22 }
 0x279   :  { %422 = vrot.lane.b32.xlu0 %v305_v53, %s5288_s22 }
 0x2e6   :  { %v319_v55 = vpop.permute.xlu1 %318 }
 0x2e7   :  { %v317_v54 = vpop.permute.xlu0 %316 }
 0x2e8   :  { %4708 = vmatpush3.bf16.msra.mxu1 %v317_v54 }
 0x2e9   :  { %4709 = vmatprep.subr.bf16.mxu1 %v5290_v0 }
 0x2ea   :  { %v425_v58 = vpop.permute.xlu1 %424 }
 0x2eb   :  { %v423_v56 = vpop.permute.xlu0 %422 }
 0x2ec   :  { %4710 = vmatpush3.bf16.msra.mxu1 %v319_v55  ;;  %4724 = vmatpush3.bf16.msra.mxu0 %v423_v56 }
 0x2ed   :  { %4715 = vmatprep.subr.bf16.mxu1 %v5290_v0  ;;  %4725 = vmatprep.subr.bf16.mxu0 %v5290_v0 }
 0x2ef   :  { %4712 = vmatmul.mubr.msk.bf16.vlgmr.msra.gmra.mrb[4].mxu1 %vm247_vm5, %v5113_v57 }
 0x2f0   :  { %4716 = vmatpush3.bf16.msra.mxu1 %v305_v53  ;;  %4726 = vmatpush3.bf16.msra.mxu0 %v425_v58 }
 0x2f1   :  { %4717 = vmatprep.subr.bf16.mxu1 %v5290_v0  ;;  %4719 = vmatprep.mubr.msk.bf16.mxu1 %vm5291_vm0, %v5290_v0 }
 0x2f2   :  { %4739 = vmatprep.subr.bf16.mxu0 %v5290_v0 }
 0x2f3   :  { %4728 = vmatmul.mubr.msk.bf16.vlgmr.msra.gmra.mrb[12].mxu0 %vm247_vm5, %v5115_v59 }
 0x2f4   :  { %4718 = vmatpush3.bf16.msra.mxu1 %v306_v51  ;;  %4741 = vmatprep.mubr.msk.bf16.mxu0 %vm5291_vm0, %v5290_v0  ;;  %v5116_v51 = vld [vmem:[#allocation2 + $0x30] sm:$0xff]  }
 0x2f5   :  { %4731 = vmatprep.subr.bf16.mxu1 %v5290_v0 }
 0x2f7   :  { %4720 = vmatmul.mubr.msk.bf16.vlgmr.msra.gmra.mrb[8].mxu1 %vm247_vm5, %v5114_v60 }
 0x2f8   :  { %4735 = vmatprep.mubr.msk.bf16.mxu1 %vm5291_vm0, %v5290_v0  ;;  %4732 = vmatpush3.bf16.msra.mxu1 %v5116_v51 }
 0x2f9   :  { %4733 = vmatprep.subr.bf16.mxu1 %v5290_v0 }
 0x2fc   :  { %4734 = vmatpush3.bf16.msra.mxu1 %v5117_v52 }
 0x2fd   :  { %4745 = vmatprep.subr.bf16.mxu1 %v5290_v0 }
 0x3c2   :  { %v359_v61 = vpop.f32.mrb[4].mxu1 }
 0x3c3   :  { %v4713_v62 = vpop.f32.mrb[5].mxu1 }
 0x3c4   :  { %v362_v63 = vpop.f32.mrb[6].mxu1 }
 0x3c5   :  { %v4714_v1 = vpop.f32.mrb[7].mxu1 }
 0x3c6   :  { %v465_v2 = vpop.f32.mrb[12].mxu0 }
 0x3c7   :  { %v4729_v3 = vpop.f32.mrb[13].mxu0 }
 0x3c8   :  { %v468_v4 = vpop.f32.mrb[14].mxu0 }
 0x3c9   :  { %v4730_v5 = vpop.f32.mrb[15].mxu0 }
 0x3ca   :  { %v408_v6 = vpop.f32.mrb[8].mxu1 }
 0x3cb   :  { %v409_v7 = vadd.f32 %v408_v6, %v359_v61  ;;  %v4721_v8 = vpop.f32.mrb[9].mxu1  ;;  %v4447_v61 = vld [vmem:[%s6056_s2 + $0x12] ss:$0 sm:$0xff] }
 0x3cc   :  { %v411_v9 = vpop.f32.mrb[10].mxu1 }
 0x3cd   :  { %v412_v11 = vadd.f32 %v411_v9, %v362_v63  ;;  %v472_v12 = vadd.f32 %v465_v2, %v409_v7  ;;  %v4722_v13 = vpop.f32.mrb[11].mxu1  ;;  %v4448_v2 = vld [vmem:[%s6056_s2 + $0x13] ss:$0 sm:$0xff]  ;;  %v4449_v7 = vld [vmem:[%s6056_s2 + $0x14] ss:$0 sm:$0xff] }
 0x3cf   :  { %v479_v14 = vadd.f32 %v4446_v10, %v472_v12  ;;  %v473_v15 = vadd.f32 %v468_v4, %v412_v11 }
 0x3d1   :  { %v483_v16 = vmul.f32 0.044715, %v479_v14  ;;  %v480_v17 = vadd.f32 %v4446_v10, %v473_v15  ;;  %v481_v28 = vmul.f32 0.5, %v479_v14 }
 0x3d3   :  { %v485_v18 = vmul.f32 %v483_v16, %v479_v14  ;;  %v484_v19 = vmul.f32 0.044715, %v480_v17  ;;  %v482_v33 = vmul.f32 0.5, %v480_v17 }
 0x3d5   :  { %v486_v20 = vmul.f32 %v484_v19, %v480_v17  ;;  %v487_v21 = vmul.f32 %v485_v18, %v479_v14 }
 0x3d7   :  { %v489_v22 = vadd.f32 %v487_v21, %v479_v14  ;;  %v488_v23 = vmul.f32 %v486_v20, %v480_v17 }
 0x3d9   :  { %v491_v24 = vmul.f32 0.7978846, %v489_v22  ;;  %v490_v25 = vadd.f32 %v488_v23, %v480_v17 }
 0x3db   :  { %5143 = vtanh.f32 %v491_v24  ;;  %v492_v26 = vmul.f32 0.7978846, %v490_v25 }
 0x3dd   :  { %5145 = vtanh.f32 %v492_v26 }
 0x3e5   :  { %v5144_v27 = vpop.eup %5143 }
 0x3e6   :  { %v495_v29 = vadd.f32 1.0, %v5144_v27 }
 0x3e7   :  { %v5146_v30 = vpop.eup %5145 }
 0x3e8   :  { %v497_v32 = vmul.f32 %v495_v29, %v481_v28  ;;  %v496_v34 = vadd.f32 1.0, %v5146_v30 }
 0x3ea   :  { %v5427_v36 = vadd.f32 %v499_v31, %v497_v32  ;;  %v498_v37 = vmul.f32 %v496_v34, %v482_v33 }
 0x3ec   :  { %v505_v38 = vsel %vm247_vm5, %v5427_v36, 0.0  ;;  %v5431_v39 = vadd.f32 %v500_v35, %v498_v37 }
 0x3ed   :  { %506 = vadd.xlane.f32.xlu0 %v505_v38 }
 0x3ee   :  { %v508_v40 = vsel %vm247_vm5, %v5431_v39, 0.0 }
 0x3ef   :  { %509 = vadd.xlane.f32.xlu1 %v508_v40 }
 0x47a   :  { %v507_v41 = vpop.xlane.xlu0 %506 }
 0x47b   :  { %v512_v42 = vmul.f32 0.03125, %v507_v41 }
 0x47c   :  { %v510_v43 = vpop.xlane.xlu1 %509 }
 0x47d   :  { %v514_v44 = vsub.f32 %v5427_v36, %v512_v42  ;;  %v513_v45 = vmul.f32 0.03125, %v510_v43 }
 0x47f   :  { %v515_v46 = vsub.f32 %v5431_v39, %v513_v45  ;;  %v516_v47 = vmul.f32 %v514_v44, %v514_v44 }
 0x481   :  { %v518_v48 = vsel %vm247_vm5, %v516_v47, 0.0  ;;  %v517_v49 = vmul.f32 %v515_v46, %v515_v46 }
 0x482   :  { %519 = vadd.xlane.f32.xlu0 %v518_v48 }
 0x483   :  { %v521_v50 = vsel %vm247_vm5, %v517_v49, 0.0 }
 0x486   :  { %522 = vadd.xlane.f32.xlu0 %v521_v50 }
 0x50f   :  { %v520_v53 = vpop.xlane.xlu0 %519 }
 0x510   :  { %v524_v54 = vmul.f32 0.03125, %v520_v53 }
 0x512   :  { %v526_v55 = vadd.f32 1e-05, %v524_v54 }
 0x513   :  { %v523_v56 = vpop.xlane.xlu0 %522 }
 0x514   :  { %5147 = vrsqrt.f32 %v526_v55  ;;  %v525_v57 = vmul.f32 0.03125, %v523_v56 }
 0x516   :  { %v527_v58 = vadd.f32 1e-05, %v525_v57 }
 0x518   :  { %5149 = vrsqrt.f32 %v527_v58 }
 0x51e   :  { %v5148_v59 = vpop.eup %5147 }
 0x51f   :  { %v530_v60 = vmul.f32 %v5148_v59, %v514_v44  ;;  %v610_v59 = vld [vmem:[#allocation2 + $0x40] sm:$0xf] }
 0x521   :  { %v536_v63 = vmul.f32 %v4447_v61, %v530_v60  ;;  %v5501_v60 = vsel %vm49_vm1, %v610_v59, 0 }
 0x522   :  { %v5150_v62 = vpop.eup %5149 }
 0x523   :  { %v531_v1 = vmul.f32 %v5150_v62, %v515_v46  ;;  %v542_v4 = vadd.f32 %v4448_v2, %v536_v63 }
 0x525   :  { %v537_v3 = vmul.f32 %v4447_v61, %v531_v1  ;;  %v611_v61 = vld [vmem:[#allocation2 + $0x44] sm:$0xf] }
 0x526   :  { %v5506_v62 = vsel %vm49_vm1, %v611_v61, 0 }
 0x527   :  { %v543_v5 = vadd.f32 %v4448_v2, %v537_v3 }
 0x529   :  { %v548_v6 = vpack.c.bf16 %v543_v5, %v542_v4 }
 0x52b   :  { %4736 = vmatmul.mubr.msk.bf16.vlgmr.msra.gmra.mrb[12].mxu1 %vm247_vm5, %v548_v6 }
 0x52c   :  { %4747 = vmatprep.mubr.msk.bf16.mxu1 %vm5291_vm0, %v5290_v0 }
 0x5fe   :  { %v603_v8 = vpop.f32.mrb[12].mxu1 }
 0x5ff   :  { %v5453_v9 = vadd.f32 %v4449_v7, %v603_v8  ;;  %v4737_v10 = vpop.f32.mrb[13].mxu1 }
 0x600   :  { %v606_v11 = vpop.f32.mrb[14].mxu1 }
 0x601   :  { %v5455_v12 = vadd.f32 %v4449_v7, %v606_v11  ;;  %760 = vrot.lane.b32.xlu0 %v5453_v9, %s5293_s23  ;;  %615 = vrot.lane.b32.xlu1 %v5453_v9, %s5292_s0  ;;  %v4738_v13 = vpop.f32.mrb[15].mxu1  ;;  %v5463_v14 = vpack.c.bf16 %v5453_v9, %v5453_v9 }
 0x603   :  { %v5558_v61 = vpack.c.bf16 %v5455_v12, %v5455_v12 }
 0x605   :  { %796 = vrot.lane.b32.xlu1 %v5463_v14, %s5294_s24 }
 0x673   :  { %v761_v15 = vpop.permute.xlu0 %760  ;;  %v616_v16 = vpop.permute.xlu1 %615 }
 0x674   :  { %763 = vxpose.xlu0.b32.start.end [1/1] (short) (narrow) %v761_v15, 8  ;;  %618 = vxpose.xlu1.b32.start.end [1/1] (short) (narrow) %v616_v16, 8 }
 0x677   :  { %v797_v17 = vpop.permute.xlu1 %796 }
 0x6f4   :  { %v634_v18 = vpop.trf.xlu1  ;;  %v779_v19 = vpop.trf.xlu0 }
 0x6f5   :  { %v651_v20 = vpack.c.bf16 %v634_v18, %v634_v18  ;;  %v795_v21 = vpack.c.bf16 %v779_v19, %v779_v19 }
 0x6f7   :  { %v656_v22 = vsel %vm49_vm1, %v651_v20, 0  ;;  %v802_v23 = vsel %vm49_vm1, %v795_v21, 0 }
 0x6f8   :  { %4740 = vmatpush3.bf16.msra.mxu0 %v656_v22 }
 0x6f9   :  { %4751 = vmatprep.subr.bf16.mxu0 %v5290_v0 }
 0x6fb   :  { %4742 = vmatmul.mubr.msk.bf16.vlgmr.msra.gmra.mrb[16].mxu0 %vm39_vm2, %v5463_v14 }
 0x6fc   :  { %4752 = vmatpush3.bf16.msra.mxu0 %v802_v23  ;;  %4753 = vmatprep.mubr.msk.bf16.mxu0 %vm5291_vm0, %v5290_v0 }
 0x6fd   :  { %4763 = vmatprep.subr.bf16.mxu0 %v5290_v0 }
 0x703   :  { %4754 = vmatmul.mubr.msk.bf16.vlgmr.msra.gmra.mrb[20].mxu0 %vm39_vm2, %v797_v17 }
 0x704   :  { %4765 = vmatprep.mubr.msk.bf16.mxu0 %vm5291_vm0, %v5290_v0  ;;  %4764 = vmatpush3.bf16.msra.mxu0 %v5506_v62 }
 0x705   :  { %4775 = vmatprep.subr.bf16.mxu0 %v5290_v0 }
 0x7ce   :  { %v692_v24 = vpop.f32.mrb[16].mxu0 }
 0x7cf   :  { %v4743_v25 = vpop.f32.mrb[17].mxu0  ;;  %v698_v26 = vsel %vm39_vm2, %v692_v24, -inf }
 0x7d0   :  { %699 = vmax.xlane.f32.xlu0 %v698_v26  ;;  %v695_v27 = vpop.f32.mrb[18].mxu0 }
 0x7d1   :  { %v4744_v28 = vpop.f32.mrb[19].mxu0 }
 0x7d6   :  { %v838_v29 = vpop.f32.mrb[20].mxu0 }
 0x7d7   :  { %v4755_v30 = vpop.f32.mrb[21].mxu0  ;;  %v844_v31 = vsel %vm39_vm2, %v838_v29, -inf }
 0x7d8   :  { %845 = vmax.xlane.f32.xlu1 %v844_v31  ;;  %v841_v32 = vpop.f32.mrb[22].mxu0 }
 0x7d9   :  { %v4756_v33 = vpop.f32.mrb[23].mxu0 }
 0x85d   :  { %v700_v34 = vpop.xlane.xlu0 %699 }
 0x85e   :  { %v701_v35 = vsub.f32 %v692_v24, %v700_v34 }
 0x860   :  { %v702_v37 = vmul.f32 1.442695, %v701_v35 }
 0x862   :  { %5151 = vpow2.f32 %v702_v37 }
 0x865   :  { %v846_v38 = vpop.xlane.xlu1 %845 }
 0x866   :  { %v847_v40 = vsub.f32 %v838_v29, %v846_v38 }
 0x868   :  { %v848_v41 = vmul.f32 1.442695, %v847_v40 }
 0x86a   :  { %5153 = vpow2.f32 %v848_v41 }
 0x86c   :  { %v5152_v42 = vpop.eup %5151 }
 0x86d   :  { %v704_v43 = vsel %vm39_vm2, %v5152_v42, 0.0 }
 0x86e   :  { %705 = vadd.xlane.f32.xlu0 %v704_v43 }
 0x874   :  { %v5154_v44 = vpop.eup %5153 }
 0x875   :  { %v850_v45 = vsel %vm39_vm2, %v5154_v44, 0.0 }
 0x876   :  { %851 = vadd.xlane.f32.xlu1 %v850_v45 }
 0x884   :  { %711 = vrot.lane.b32.xlu0 %v5463_v14, %s5288_s22 }
 0x887   :  { %856 = vrot.lane.b32.xlu1 %v5463_v14, %s5295_s25 }
 0x888   :  { %1033 = vrot.lane.b32.xlu0 %v5463_v14, %s5296_s26 }
 0x88b   :  { %997 = vrot.lane.b32.xlu1 %v5453_v9, %s5297_s27 }
 0x8fb   :  { %v706_v46 = vpop.xlane.xlu0 %705 }
 0x8fc   :  { %5155 = vrcp.f32 %v706_v46 }
 0x8ff   :  { %v712_v47 = vpop.permute.xlu0 %711 }
 0x900   :  { %v717_v48 = vsel %vm49_vm1, %v712_v47, 0 }
 0x901   :  { %4746 = vmatpush3.bf16.msra.mxu1 %v717_v48  ;;  %v612_v48 = vld [vmem:[#allocation2 + $0x48] sm:$0xf] }
 0x902   :  { %4757 = vmatprep.subr.bf16.mxu1 %v5290_v0 }
 0x903   :  { %v852_v49 = vpop.xlane.xlu1 %851  ;;  %v1034_v16 = vpop.permute.xlu0 %1033 }
 0x904   :  { %5157 = vrcp.f32 %v852_v49  ;;  %v5542_v49 = vsel %vm49_vm1, %v612_v48, 0 }
 0x906   :  { %v5156_v50 = vpop.eup %5155 }
 0x907   :  { %v708_v51 = vmul.f32 %v5156_v50, %v5152_v42  ;;  %v857_v52 = vpop.permute.xlu1 %856 }
 0x908   :  { %v862_v54 = vsel %vm49_vm1, %v857_v52, 0 }
 0x909   :  { %v709_v53 = vpack.c.bf16 %v708_v51, %v708_v51 }
 0x90b   :  { %4748 = vmatmul.mubr.msk.bf16.vlgmr.msra.gmra.mrb[16].mxu1 %vm39_vm2, %v709_v53  ;;  %v998_v55 = vpop.permute.xlu1 %997 }
 0x90c   :  { %4758 = vmatpush3.bf16.msra.mxu1 %v862_v54  ;;  %1000 = vxpose.xlu1.b32.start.end [1/1] (short) (narrow) %v998_v55, 8 }
 0x90d   :  { %4759 = vmatprep.mubr.msk.bf16.mxu1 %vm5291_vm0, %v5290_v0  ;;  %4769 = vmatprep.subr.bf16.mxu1 %v5290_v0 }
 0x90e   :  { %v5158_v56 = vpop.eup %5157 }
 0x90f   :  { %v854_v57 = vmul.f32 %v5158_v56, %v5154_v44 }
 0x911   :  { %v855_v58 = vpack.c.bf16 %v854_v57, %v854_v57 }
 0x913   :  { %4760 = vmatmul.mubr.msk.bf16.vlgmr.msra.gmra.mrb[20].mxu1 %vm39_vm2, %v855_v58 }
 0x914   :  { %4771 = vmatprep.mubr.msk.bf16.mxu1 %vm5291_vm0, %v5290_v0  ;;  %4770 = vmatpush3.bf16.msra.mxu1 %v5501_v60 }
 0x915   :  { %4781 = vmatprep.subr.bf16.mxu1 %v5290_v0 }
 0x98c   :  { %v1016_v4 = vpop.trf.xlu1 }
 0x98d   :  { %v1032_v6 = vpack.c.bf16 %v1016_v4, %v1016_v4 }
 0x98f   :  { %v1039_v11 = vsel %vm49_vm1, %v1032_v6, 0 }
 0x9de   :  { %v753_v63 = vpop.f32.mrb[16].mxu1 }
 0x9df   :  { %v759_v1 = vpack.c.bf16 %v753_v63, %v753_v63  ;;  %v4749_v2 = vpop.f32.mrb[17].mxu1 }
 0x9e0   :  { %v756_v3 = vpop.f32.mrb[18].mxu1 }
 0x9e1   :  { %v4750_v5 = vpop.f32.mrb[19].mxu1  ;;  %4772 = vmatmul.mubr.msk.bf16.vlgmr.msra.gmra.mrb[24].mxu1 %vm39_vm2, %v759_v1 }
 0x9e2   :  { %4783 = vmatprep.mubr.msk.bf16.mxu1 %vm5291_vm0, %v5290_v0 }
 0x9e6   :  { %v898_v7 = vpop.f32.mrb[20].mxu1 }
 0x9e7   :  { %v904_v8 = vpack.c.bf16 %v898_v7, %v898_v7  ;;  %v4761_v10 = vpop.f32.mrb[21].mxu1 }
 0x9e8   :  { %v901_v13 = vpop.f32.mrb[22].mxu1 }
 0x9e9   :  { %v4762_v15 = vpop.f32.mrb[23].mxu1  ;;  %4766 = vmatmul.mubr.msk.bf16.vlgmr.msra.gmra.mrb[24].mxu0 %vm39_vm2, %v904_v8 }
 0x9ea   :  { %4776 = vmatpush3.bf16.msra.mxu0 %v1039_v11  ;;  %4777 = vmatprep.mubr.msk.bf16.mxu0 %vm5291_vm0, %v5290_v0 }
 0x9eb   :  { %4787 = vmatprep.subr.bf16.mxu0 %v5290_v0 }
 0x9f1   :  { %4778 = vmatmul.mubr.msk.bf16.vlgmr.msra.gmra.mrb[28].mxu0 %vm39_vm2, %v1034_v16 }
 0x9f2   :  { %4789 = vmatprep.mubr.msk.bf16.mxu0 %vm5291_vm0, %v5290_v0  ;;  %4788 = vmatpush3.bf16.msra.mxu0 %v5542_v49 }
 0x9f3   :  { %4799 = vmatprep.subr.bf16.mxu0 %v5290_v0 }
 0xab4   :  { %v991_v17 = vpop.f32.mrb[24].mxu1 }
 0xab5   :  { %v4773_v18 = vpop.f32.mrb[25].mxu1 }
 0xab6   :  { %v994_v19 = vpop.f32.mrb[26].mxu1 }
 0xab7   :  { %v4774_v20 = vpop.f32.mrb[27].mxu1 }
 0xabc   :  { %v945_v21 = vpop.f32.mrb[24].mxu0 }
 0xabd   :  { %v5521_v22 = vadd.f32 %v991_v17, %v945_v21  ;;  %v4767_v23 = vpop.f32.mrb[25].mxu0 }
 0xabe   :  { %v948_v24 = vpop.f32.mrb[26].mxu0 }
 0xabf   :  { %v4768_v25 = vpop.f32.mrb[27].mxu0 }
 0xac4   :  { %v1075_v26 = vpop.f32.mrb[28].mxu0 }
 0xac5   :  { %v4779_v27 = vpop.f32.mrb[29].mxu0  ;;  %v1081_v28 = vsel %vm39_vm2, %v1075_v26, -inf }
 0xac6   :  { %1082 = vmax.xlane.f32.xlu0 %v1081_v28  ;;  %v1078_v29 = vpop.f32.mrb[30].mxu0  ;;  %v613_v27 = vld [vmem:[#allocation2 + $0x4c] sm:$0xf] }
 0xac7   :  { %v4780_v30 = vpop.f32.mrb[31].mxu0  ;;  %v5585_v28 = vsel %vm49_vm1, %v613_v27, 0 }
 0xadc   :  { %1189 = vrot.lane.b32.xlu0 %v5453_v9, %s5298_s28 }
 0xae0   :  { %1093 = vrot.lane.b32.xlu0 %v5463_v14, %s5299_s29 }
 0xae4   :  { %1225 = vrot.lane.b32.xlu0 %v5463_v14, %s5300_s1 }
 0xb53   :  { %v1083_v31 = vpop.xlane.xlu0 %1082 }
 0xb54   :  { %v1084_v32 = vsub.f32 %v1075_v26, %v1083_v31 }
 0xb56   :  { %v1085_v33 = vmul.f32 1.442695, %v1084_v32 }
 0xb57   :  { %v1190_v34 = vpop.permute.xlu0 %1189 }
 0xb58   :  { %5159 = vpow2.f32 %v1085_v33  ;;  %1192 = vxpose.xlu0.b32.start.end [1/1] (short) (narrow) %v1190_v34, 8 }
 0xb5b   :  { %v1094_v35 = vpop.permute.xlu0 %1093 }
 0xb5c   :  { %v1099_v37 = vsel %vm49_vm1, %v1094_v35, 0 }
 0xb5d   :  { %4782 = vmatpush3.bf16.msra.mxu1 %v1099_v37 }
 0xb5e   :  { %4793 = vmatprep.subr.bf16.mxu1 %v5290_v0 }
 0xb5f   :  { %v1226_v41 = vpop.permute.xlu0 %1225 }
 0xb62   :  { %v5160_v9 = vpop.eup %5159 }
 0xb63   :  { %v1087_v38 = vsel %vm39_vm2, %v5160_v9, 0.0 }
 0xb64   :  { %1088 = vadd.xlane.f32.xlu1 %v1087_v38 }
 0xbd8   :  { %v1208_v42 = vpop.trf.xlu0 }
 0xbd9   :  { %v1224_v43 = vpack.c.bf16 %v1208_v42, %v1208_v42 }
 0xbdb   :  { %v1231_v47 = vsel %vm49_vm1, %v1224_v43, 0 }
 0xbf1   :  { %v1089_v40 = vpop.xlane.xlu1 %1088 }
 0xbf2   :  { %5161 = vrcp.f32 %v1089_v40 }
 0xbfc   :  { %v5162_v44 = vpop.eup %5161 }
 0xbfd   :  { %v1091_v45 = vmul.f32 %v5162_v44, %v5160_v9 }
 0xbff   :  { %v1092_v46 = vpack.c.bf16 %v1091_v45, %v1091_v45 }
 0xc01   :  { %4784 = vmatmul.mubr.msk.bf16.vlgmr.msra.gmra.mrb[28].mxu1 %vm39_vm2, %v1092_v46 }
 0xc02   :  { %4794 = vmatpush3.bf16.msra.mxu1 %v1231_v47  ;;  %4795 = vmatprep.mubr.msk.bf16.mxu1 %vm5291_vm0, %v5290_v0 }
 0xc03   :  { %4805 = vmatprep.subr.bf16.mxu1 %v5290_v0 }
 0xc09   :  { %4796 = vmatmul.mubr.msk.bf16.vlgmr.msra.gmra.mrb[32].mxu1 %vm39_vm2, %v1226_v41 }
 0xc0a   :  { %4807 = vmatprep.mubr.msk.bf16.mxu1 %vm5291_vm0, %v5290_v0  ;;  %4806 = vmatpush3.bf16.msra.mxu1 %v5585_v28 }
 0xc0b   :  { %4817 = vmatprep.subr.bf16.mxu1 %v5290_v0 }
 0xcd4   :  { %v1135_v50 = vpop.f32.mrb[28].mxu1 }
 0xcd5   :  { %v1141_v51 = vpack.c.bf16 %v1135_v50, %v1135_v50  ;;  %v4785_v52 = vpop.f32.mrb[29].mxu1 }
 0xcd6   :  { %v1138_v53 = vpop.f32.mrb[30].mxu1 }
 0xcd7   :  { %v4786_v54 = vpop.f32.mrb[31].mxu1  ;;  %4790 = vmatmul.mubr.msk.bf16.vlgmr.msra.gmra.mrb[32].mxu0 %vm39_vm2, %v1141_v51 }
 0xcd8   :  { %4801 = vmatprep.mubr.msk.bf16.mxu0 %vm5291_vm0, %v5290_v0 }
 0xcdc   :  { %v1267_v55 = vpop.f32.mrb[32].mxu1 }
 0xcdd   :  { %v4797_v56 = vpop.f32.mrb[33].mxu1  ;;  %v1273_v57 = vsel %vm39_vm2, %v1267_v55, -inf }
 0xcde   :  { %1274 = vmax.xlane.f32.xlu1 %v1273_v57  ;;  %v1270_v58 = vpop.f32.mrb[34].mxu1 }
 0xcdf   :  { %v4798_v59 = vpop.f32.mrb[35].mxu1 }
 0xcef   :  { %1382 = vrot.lane.b32.xlu1 %v5455_v12, %s5292_s0 }
 0xcf3   :  { %1527 = vrot.lane.b32.xlu1 %v5455_v12, %s5293_s23 }
 0xcf7   :  { %1285 = vrot.lane.b32.xlu1 %v5463_v14, %s5301_s30 }
 0xcfb   :  { %1563 = vrot.lane.b32.xlu1 %v5558_v61, %s5294_s24 }
 0xd6b   :  { %v1275_v63 = vpop.xlane.xlu1 %1274 }
 0xd6c   :  { %v1276_v1 = vsub.f32 %v1267_v55, %v1275_v63 }
 0xd6e   :  { %v1277_v2 = vmul.f32 1.442695, %v1276_v1 }
 0xd6f   :  { %v1383_v3 = vpop.permute.xlu1 %1382 }
 0xd70   :  { %5163 = vpow2.f32 %v1277_v2  ;;  %1385 = vxpose.xlu1.b32.start.end [1/1] (short) (narrow) %v1383_v3, 8 }
 0xd73   :  { %v1528_v4 = vpop.permute.xlu1 %1527 }
 0xd77   :  { %v1286_v5 = vpop.permute.xlu1 %1285 }
 0xd78   :  { %v1291_v6 = vsel %vm49_vm1, %v1286_v5, 0 }
 0xd79   :  { %4800 = vmatpush3.bf16.msra.mxu0 %v1291_v6 }
 0xd7a   :  { %v5164_v7 = vpop.eup %5163  ;;  %4811 = vmatprep.subr.bf16.mxu0 %v5290_v0 }
 0xd7b   :  { %v1279_v14 = vsel %vm39_vm2, %v5164_v7, 0.0  ;;  %v1564_v17 = vpop.permute.xlu1 %1563 }
 0xd7c   :  { %1280 = vadd.xlane.f32.xlu0 %v1279_v14 }
 0xda9   :  { %1530 = vxpose.xlu0.b32.start.end [1/1] (short) (narrow) %v1528_v4, 8 }
 0xdaa   :  { %v1182_v8 = vpop.f32.mrb[32].mxu0 }
 0xdab   :  { %v5566_v10 = vadd.f32 %v1182_v8, %v5521_v22  ;;  %v4791_v11 = vpop.f32.mrb[33].mxu0 }
 0xdac   :  { %v1185_v13 = vpop.f32.mrb[34].mxu0 }
 0xdad   :  { %v4792_v15 = vpop.f32.mrb[35].mxu0 }
 0xdf0   :  { %v1401_v18 = vpop.trf.xlu1 }
 0xdf1   :  { %v1418_v19 = vpack.c.bf16 %v1401_v18, %v1401_v18 }
 0xdf3   :  { %v1423_v24 = vsel %vm49_vm1, %v1418_v19, 0 }
 0xe09   :  { %v1281_v16 = vpop.xlane.xlu0 %1280 }
 0xe0a   :  { %5165 = vrcp.f32 %v1281_v16 }
 0xe14   :  { %v5166_v20 = vpop.eup %5165 }
 0xe15   :  { %v1283_v21 = vmul.f32 %v5166_v20, %v5164_v7 }
 0xe17   :  { %v1284_v23 = vpack.c.bf16 %v1283_v21, %v1283_v21 }
 0xe19   :  { %4802 = vmatmul.mubr.msk.bf16.vlgmr.msra.gmra.mrb[36].mxu0 %vm39_vm2, %v1284_v23 }
 0xe1a   :  { %4812 = vmatpush3.bf16.msra.mxu0 %v1423_v24  ;;  %4813 = vmatprep.mubr.msk.bf16.mxu0 %vm5291_vm0, %v5290_v0 }
 0xe1b   :  { %4823 = vmatprep.subr.bf16.mxu0 %v5290_v0 }
 0xe21   :  { %4814 = vmatmul.mubr.msk.bf16.vlgmr.msra.gmra.mrb[40].mxu0 %vm39_vm2, %v5558_v61 }
 0xe22   :  { %4825 = vmatprep.mubr.msk.bf16.mxu0 %vm5291_vm0, %v5290_v0 }
 0xe29   :  { %v1546_v22 = vpop.trf.xlu0 }
 0xe2a   :  { %v1562_v25 = vpack.c.bf16 %v1546_v22, %v1546_v22 }
 0xe2c   :  { %v1569_v26 = vsel %vm49_vm1, %v1562_v25, 0 }
 0xe2d   :  { %4824 = vmatpush3.bf16.msra.mxu0 %v1569_v26 }
 0xe2e   :  { %4835 = vmatprep.subr.bf16.mxu0 %v5290_v0 }
 0xe30   :  { %4826 = vmatmul.mubr.msk.bf16.vlgmr.msra.gmra.mrb[44].mxu0 %vm39_vm2, %v1564_v17 }
 0xe31   :  { %4836 = vmatpush3.bf16.msra.mxu0 %v5506_v62  ;;  %4837 = vmatprep.mubr.msk.bf16.mxu0 %vm5291_vm0, %v5290_v0 }
 0xe32   :  { %4847 = vmatprep.subr.bf16.mxu0 %v5290_v0 }
 0xeec   :  { %v1327_v29 = vpop.f32.mrb[36].mxu0 }
 0xeed   :  { %v1333_v30 = vpack.c.bf16 %v1327_v29, %v1327_v29  ;;  %v4803_v31 = vpop.f32.mrb[37].mxu0 }
 0xeee   :  { %v1330_v32 = vpop.f32.mrb[38].mxu0 }
 0xeef   :  { %v4804_v33 = vpop.f32.mrb[39].mxu0  ;;  %4808 = vmatmul.mubr.msk.bf16.vlgmr.msra.gmra.mrb[36].mxu1 %vm39_vm2, %v1333_v30 }
 0xef0   :  { %4819 = vmatprep.mubr.msk.bf16.mxu1 %vm5291_vm0, %v5290_v0 }
 0xef4   :  { %v1459_v62 = vpop.f32.mrb[40].mxu0 }
 0xef5   :  { %v4815_v34 = vpop.f32.mrb[41].mxu0  ;;  %v1465_v35 = vsel %vm39_vm2, %v1459_v62, -inf }
 0xef6   :  { %1466 = vmax.xlane.f32.xlu1 %v1465_v35  ;;  %v1462_v37 = vpop.f32.mrb[42].mxu0 }
 0xef7   :  { %v4816_v9 = vpop.f32.mrb[43].mxu0 }
 0xf03   :  { %v1605_v38 = vpop.f32.mrb[44].mxu0 }
 0xf04   :  { %v4827_v40 = vpop.f32.mrb[45].mxu0  ;;  %v1611_v41 = vsel %vm39_vm2, %v1605_v38, -inf }
 0xf05   :  { %1612 = vmax.xlane.f32.xlu0 %v1611_v41  ;;  %v1608_v42 = vpop.f32.mrb[46].mxu0 }
 0xf06   :  { %v4828_v43 = vpop.f32.mrb[47].mxu0 }
 0xf07   :  { %1478 = vrot.lane.b32.xlu1 %v5558_v61, %s5288_s22 }
 0xf83   :  { %v1467_v44 = vpop.xlane.xlu1 %1466 }
 0xf84   :  { %v1468_v45 = vsub.f32 %v1459_v62, %v1467_v44 }
 0xf86   :  { %v1469_v46 = vmul.f32 1.442695, %v1468_v45 }
 0xf87   :  { %v1479_v47 = vpop.permute.xlu1 %1478 }
 0xf88   :  { %5167 = vpow2.f32 %v1469_v46  ;;  %v1484_v48 = vsel %vm49_vm1, %v1479_v47, 0 }
 0xf89   :  { %4818 = vmatpush3.bf16.msra.mxu1 %v1484_v48 }
 0xf8a   :  { %4829 = vmatprep.subr.bf16.mxu1 %v5290_v0 }
 0xf92   :  { %v5168_v50 = vpop.eup %5167  ;;  %v1613_v51 = vpop.xlane.xlu0 %1612 }
 0xf93   :  { %v1614_v52 = vsub.f32 %v1605_v38, %v1613_v51  ;;  %v1471_v53 = vsel %vm39_vm2, %v5168_v50, 0.0  ;;  %v5649_v51 = vld [vmem:[%s6056_s2 + $0x15] ss:$0 sm:$0xff] }
 0xf94   :  { %1472 = vadd.xlane.f32.xlu1 %v1471_v53 }
 0xf95   :  { %v1615_v54 = vmul.f32 1.442695, %v1614_v52 }
 0xf97   :  { %5169 = vpow2.f32 %v1615_v54 }
 0xfa1   :  { %v5170_v55 = vpop.eup %5169 }
 0xfa2   :  { %v1617_v56 = vsel %vm39_vm2, %v5170_v55, 0.0 }
 0xfa3   :  { %1618 = vadd.xlane.f32.xlu1 %v1617_v56 }
 0xfb4   :  { %1623 = vrot.lane.b32.xlu1 %v5558_v61, %s5295_s25 }
 0xfb8   :  { %1758 = vrot.lane.b32.xlu1 %v5455_v12, %s5297_s27 }
 0xfbc   :  { %1794 = vrot.lane.b32.xlu1 %v5558_v61, %s5296_s26 }
 0xfc2   :  { %v1374_v57 = vpop.f32.mrb[36].mxu1 }
 0xfc3   :  { %v5607_v58 = vadd.f32 %v1374_v57, %v5566_v10  ;;  %v4809_v59 = vpop.f32.mrb[37].mxu1 }
 0xfc4   :  { %v1377_v63 = vpop.f32.mrb[38].mxu1 }
 0xfc5   :  { %v4810_v1 = vpop.f32.mrb[39].mxu1 }
0x1021   :  { %v1473_v2 = vpop.xlane.xlu1 %1472 }
0x1022   :  { %5171 = vrcp.f32 %v1473_v2 }
0x102c   :  { %v5172_v3 = vpop.eup %5171 }
0x102d   :  { %v1475_v4 = vmul.f32 %v5172_v3, %v5168_v50  ;;  %v2136_v50 = vadd.f32 %v5607_v58, %v5427_v36 }
0x102f   :  { %v1476_v5 = vpack.c.bf16 %v1475_v4, %v1475_v4  ;;  %v5652_v52 = vadd.f32 %v5649_v51, %v2136_v50  ;;  %v5119_v50 = vld [vmem:[#allocation2 + $0x58] sm:$0xff]  }
0x1030   :  { %v1619_v6 = vpop.xlane.xlu1 %1618 }
0x1031   :  { %5173 = vrcp.f32 %v1619_v6  ;;  %4820 = vmatmul.mubr.msk.bf16.vlgmr.msra.gmra.mrb[40].mxu1 %vm39_vm2, %v1476_v5  ;;  %v2147_v53 = vsel %vm247_vm5, %v5652_v52, 0.0 }
0x1032   :  { %4831 = vmatprep.mubr.msk.bf16.mxu1 %vm5291_vm0, %v5290_v0 }
0x1034   :  { %v1624_v7 = vpop.permute.xlu1 %1623 }
0x1035   :  { %v1629_v14 = vsel %vm49_vm1, %v1624_v7, 0 }
0x1036   :  { %4830 = vmatpush3.bf16.msra.mxu1 %v1629_v14 }
0x1037   :  { %4841 = vmatprep.subr.bf16.mxu1 %v5290_v0 }
0x1038   :  { %v1759_v8 = vpop.permute.xlu1 %1758 }
0x1039   :  { %1761 = vxpose.xlu0.b32.start.end [1/1] (short) (narrow) %v1759_v8, 8 }
0x103b   :  { %v5174_v10 = vpop.eup %5173 }
0x103c   :  { %v1621_v11 = vmul.f32 %v5174_v10, %v5170_v55  ;;  %v1795_v27 = vpop.permute.xlu1 %1794 }
0x103e   :  { %v1622_v13 = vpack.c.bf16 %v1621_v11, %v1621_v11 }
0x1040   :  { %4832 = vmatmul.mubr.msk.bf16.vlgmr.msra.gmra.mrb[44].mxu1 %vm39_vm2, %v1622_v13 }
0x1041   :  { %4842 = vmatpush3.bf16.msra.mxu1 %v5501_v60  ;;  %4843 = vmatprep.mubr.msk.bf16.mxu1 %vm5291_vm0, %v5290_v0 }
0x1042   :  { %4853 = vmatprep.subr.bf16.mxu1 %v5290_v0 }
0x10b9   :  { %v1777_v20 = vpop.trf.xlu0 }
0x10ba   :  { %v1793_v21 = vpack.c.bf16 %v1777_v20, %v1777_v20 }
0x10bc   :  { %v1800_v22 = vsel %vm49_vm1, %v1793_v21, 0 }
0x1104   :  { %v1520_v15 = vpop.f32.mrb[40].mxu1 }
0x1105   :  { %v1526_v16 = vpack.c.bf16 %v1520_v15, %v1520_v15  ;;  %v4821_v17 = vpop.f32.mrb[41].mxu1 }
0x1106   :  { %v1523_v18 = vpop.f32.mrb[42].mxu1 }
0x1107   :  { %v4822_v19 = vpop.f32.mrb[43].mxu1  ;;  %4844 = vmatmul.mubr.msk.bf16.vlgmr.msra.gmra.mrb[48].mxu1 %vm39_vm2, %v1526_v16 }
0x1108   :  { %4855 = vmatprep.mubr.msk.bf16.mxu1 %vm5291_vm0, %v5290_v0 }
0x1113   :  { %v1665_v23 = vpop.f32.mrb[44].mxu1 }
0x1114   :  { %v1671_v24 = vpack.c.bf16 %v1665_v23, %v1665_v23  ;;  %v4833_v60 = vpop.f32.mrb[45].mxu1 }
0x1115   :  { %v1668_v25 = vpop.f32.mrb[46].mxu1 }
0x1116   :  { %v4834_v26 = vpop.f32.mrb[47].mxu1  ;;  %4838 = vmatmul.mubr.msk.bf16.vlgmr.msra.gmra.mrb[48].mxu0 %vm39_vm2, %v1671_v24 }
0x1117   :  { %4848 = vmatpush3.bf16.msra.mxu0 %v1800_v22  ;;  %4849 = vmatprep.mubr.msk.bf16.mxu0 %vm5291_vm0, %v5290_v0 }
0x1118   :  { %4859 = vmatprep.subr.bf16.mxu0 %v5290_v0 }
0x111e   :  { %4850 = vmatmul.mubr.msk.bf16.vlgmr.msra.gmra.mrb[52].mxu0 %vm39_vm2, %v1795_v27 }
0x111f   :  { %4860 = vmatpush3.bf16.msra.mxu0 %v5542_v49  ;;  %4861 = vmatprep.mubr.msk.bf16.mxu0 %vm5291_vm0, %v5290_v0 }
0x1120   :  { %4871 = vmatprep.subr.bf16.mxu0 %v5290_v0 }
0x11da   :  { %v1752_v29 = vpop.f32.mrb[48].mxu1 }
0x11db   :  { %v4845_v30 = vpop.f32.mrb[49].mxu1 }
0x11dc   :  { %v1755_v31 = vpop.f32.mrb[50].mxu1 }
0x11dd   :  { %v4846_v32 = vpop.f32.mrb[51].mxu1 }
0x11e9   :  { %v1709_v33 = vpop.f32.mrb[48].mxu0 }
0x11ea   :  { %v5632_v62 = vadd.f32 %v1752_v29, %v1709_v33  ;;  %v4839_v34 = vpop.f32.mrb[49].mxu0 }
0x11eb   :  { %v1712_v35 = vpop.f32.mrb[50].mxu0 }
0x11ec   :  { %v4840_v37 = vpop.f32.mrb[51].mxu0 }
0x11f1   :  { %v1836_v9 = vpop.f32.mrb[52].mxu0 }
0x11f2   :  { %v4851_v38 = vpop.f32.mrb[53].mxu0  ;;  %v1842_v40 = vsel %vm39_vm2, %v1836_v9, -inf }
0x11f3   :  { %1843 = vmax.xlane.f32.xlu1 %v1842_v40  ;;  %v1839_v49 = vpop.f32.mrb[54].mxu0 }
0x11f4   :  { %v4852_v41 = vpop.f32.mrb[55].mxu0 }
0x1204   :  { %1947 = vrot.lane.b32.xlu1 %v5455_v12, %s5298_s28 }
0x1208   :  { %1854 = vrot.lane.b32.xlu1 %v5558_v61, %s5299_s29 }
0x120c   :  { %1983 = vrot.lane.b32.xlu1 %v5558_v61, %s5300_s1 }
0x1280   :  { %v1844_v42 = vpop.xlane.xlu1 %1843 }
0x1281   :  { %v1845_v43 = vsub.f32 %v1836_v9, %v1844_v42 }
0x1283   :  { %v1846_v44 = vmul.f32 1.442695, %v1845_v43 }
0x1284   :  { %v1948_v45 = vpop.permute.xlu1 %1947 }
0x1285   :  { %5175 = vpow2.f32 %v1846_v44  ;;  %1950 = vxpose.xlu1.b32.start.end [1/1] (short) (narrow) %v1948_v45, 8 }
0x1288   :  { %v1855_v46 = vpop.permute.xlu1 %1854 }
0x1289   :  { %v1860_v47 = vsel %vm49_vm1, %v1855_v46, 0 }
0x128a   :  { %4854 = vmatpush3.bf16.msra.mxu1 %v1860_v47 }
0x128b   :  { %4865 = vmatprep.subr.bf16.mxu1 %v5290_v0 }
0x128c   :  { %v1984_v55 = vpop.permute.xlu1 %1983 }
0x128f   :  { %v5176_v48 = vpop.eup %5175 }
0x1290   :  { %v1848_v12 = vsel %vm39_vm2, %v5176_v48, 0.0 }
0x1291   :  { %1849 = vadd.xlane.f32.xlu0 %v1848_v12  ;;  %v5118_v12 = vld [vmem:[#allocation2 + $0x50] sm:$0xff]  }
0x12ac   :  { %2148 = vadd.xlane.f32.xlu1 %v2147_v53 }
0x1305   :  { %v1966_v56 = vpop.trf.xlu1 }
0x1306   :  { %v1982_v57 = vpack.c.bf16 %v1966_v56, %v1966_v56 }
0x1308   :  { %v1989_v58 = vsel %vm49_vm1, %v1982_v57, 0 }
0x131e   :  { %v1850_v54 = vpop.xlane.xlu0 %1849 }
0x131f   :  { %5177 = vrcp.f32 %v1850_v54 }
0x1329   :  { %v5178_v59 = vpop.eup %5177 }
0x132a   :  { %v1852_v63 = vmul.f32 %v5178_v59, %v5176_v48 }
0x132c   :  { %v1853_v36 = vpack.c.bf16 %v1852_v63, %v1852_v63  ;;  %v4478_v63 = vld [vmem:[%s6056_s2 + $0x16] ss:$0 sm:$0xff] }
0x132e   :  { %4856 = vmatmul.mubr.msk.bf16.vlgmr.msra.gmra.mrb[52].mxu1 %vm39_vm2, %v1853_v36 }
0x132f   :  { %4866 = vmatpush3.bf16.msra.mxu1 %v1989_v58  ;;  %4867 = vmatprep.mubr.msk.bf16.mxu1 %vm5291_vm0, %v5290_v0 }
0x1330   :  { %4877 = vmatprep.subr.bf16.mxu1 %v5290_v0 }
0x1336   :  { %4868 = vmatmul.mubr.msk.bf16.vlgmr.msra.gmra.mrb[56].mxu1 %vm39_vm2, %v1984_v55 }
0x1337   :  { %4878 = vmatpush3.bf16.msra.mxu1 %v5585_v28  ;;  %4879 = vmatprep.mubr.msk.bf16.mxu1 %vm5291_vm0, %v5290_v0 }
0x1338   :  { %4891 = vmatprep.subr.bf16.mxu1 %v5290_v0 }
0x1339   :  { %v2149_v1 = vpop.xlane.xlu1 %2148 }
0x133a   :  { %v2153_v2 = vmul.f32 0.03125, %v2149_v1 }
0x133c   :  { %v5667_v3 = vsub.f32 %v5652_v52, %v2153_v2  ;;  %v4479_v2 = vld [vmem:[%s6056_s2 + $0x17] ss:$0 sm:$0xff] }
0x133e   :  { %v2157_v4 = vmul.f32 %v5667_v3, %v5667_v3 }
0x1340   :  { %v2159_v5 = vsel %vm247_vm5, %v2157_v4, 0.0 }
0x1341   :  { %2160 = vadd.xlane.f32.xlu1 %v2159_v5 }
0x1401   :  { %v1896_v6 = vpop.f32.mrb[52].mxu1 }
0x1402   :  { %v1902_v7 = vpack.c.bf16 %v1896_v6, %v1896_v6  ;;  %v4857_v14 = vpop.f32.mrb[53].mxu1 }
0x1403   :  { %v1899_v28 = vpop.f32.mrb[54].mxu1  ;;  %v5121_v14 = vld [vmem:[#allocation2 + $0x68] sm:$0xff]  }
0x1404   :  { %v4858_v8 = vpop.f32.mrb[55].mxu1  ;;  %4862 = vmatmul.mubr.msk.bf16.vlgmr.msra.gmra.mrb[56].mxu0 %vm39_vm2, %v1902_v7  ;;  %v5122_v28 = vld [vmem:[#allocation2 + $0x70] sm:$0xff]  }
0x1405   :  { %4873 = vmatprep.mubr.msk.bf16.mxu0 %vm5291_vm0, %v5290_v0  ;;  %v5123_v8 = vld [vmem:[#allocation2 + $0x78] sm:$0xff]  }
0x1409   :  { %v2025_v10 = vpop.f32.mrb[56].mxu1 }
0x140a   :  { %v4869_v11 = vpop.f32.mrb[57].mxu1  ;;  %v2031_v13 = vsel %vm39_vm2, %v2025_v10, -inf }
0x140b   :  { %2032 = vmax.xlane.f32.xlu0 %v2031_v13  ;;  %v2028_v15 = vpop.f32.mrb[58].mxu1 }
0x140c   :  { %v4870_v16 = vpop.f32.mrb[59].mxu1 }
0x1498   :  { %v2033_v17 = vpop.xlane.xlu0 %2032 }
0x1499   :  { %v2034_v18 = vsub.f32 %v2025_v10, %v2033_v17  ;;  %v4480_v10 = vld [vmem:[%s6056_s2 + $0x18] ss:$0 sm:$0xff] }
0x149b   :  { %v2035_v19 = vmul.f32 1.442695, %v2034_v18 }
0x149d   :  { %5179 = vpow2.f32 %v2035_v19 }
0x14a7   :  { %v5180_v20 = vpop.eup %5179 }
0x14a8   :  { %v2037_v21 = vsel %vm39_vm2, %v5180_v20, 0.0 }
0x14a9   :  { %2038 = vadd.xlane.f32.xlu0 %v2037_v21 }
0x14bf   :  { %2043 = vrot.lane.b32.xlu0 %v5558_v61, %s5301_s30 }
0x14d7   :  { %v1940_v23 = vpop.f32.mrb[56].mxu0 }
0x14d8   :  { %v1946_v24 = vadd.f32 %v1940_v23, %v5632_v62  ;;  %v4863_v60 = vpop.f32.mrb[57].mxu0 }
0x14d9   :  { %v1943_v22 = vpop.f32.mrb[58].mxu0 }
0x14da   :  { %v4864_v25 = vpop.f32.mrb[59].mxu0 }
0x1536   :  { %v2039_v26 = vpop.xlane.xlu0 %2038 }
0x1537   :  { %5181 = vrcp.f32 %v2039_v26 }
0x153a   :  { %v2044_v27 = vpop.permute.xlu0 %2043 }
0x153b   :  { %v2049_v29 = vsel %vm49_vm1, %v2044_v27, 0 }
0x153c   :  { %4872 = vmatpush3.bf16.msra.mxu0 %v2049_v29 }
0x153d   :  { %4883 = vmatprep.subr.bf16.mxu0 %v5290_v0 }
0x1541   :  { %v5182_v30 = vpop.eup %5181 }
0x1542   :  { %v2041_v31 = vmul.f32 %v5182_v30, %v5180_v20 }
0x1544   :  { %v2042_v32 = vpack.c.bf16 %v2041_v31, %v2041_v31 }
0x1546   :  { %4874 = vmatmul.mubr.msk.bf16.vlgmr.msra.gmra.mrb[60].mxu0 %vm39_vm2, %v2042_v32 }
0x1547   :  { %4887 = vmatprep.mubr.msk.bf16.mxu0 %vm5291_vm0, %v5290_v0  ;;  %4884 = vmatpush3.bf16.msra.mxu0 %v5118_v12 }
0x1548   :  { %4885 = vmatprep.subr.bf16.mxu0 %v5290_v0 }
0x154b   :  { %4886 = vmatpush3.bf16.msra.mxu0 %v5119_v50 }
0x154c   :  { %4903 = vmatprep.subr.bf16.mxu0 %v5290_v0 }
0x1619   :  { %v2085_v61 = vpop.f32.mrb[60].mxu0 }
0x161a   :  { %v2091_v33 = vpack.c.bf16 %v2085_v61, %v2085_v61  ;;  %v4875_v62 = vpop.f32.mrb[61].mxu0 }
0x161b   :  { %v2088_v34 = vpop.f32.mrb[62].mxu0 }
0x161c   :  { %v4876_v35 = vpop.f32.mrb[63].mxu0  ;;  %4880 = vmatmul.mubr.msk.bf16.vlgmr.msra.gmra.mrb[60].mxu1 %vm39_vm2, %v2091_v33 }
0x161d   :  { %4899 = vmatprep.mubr.msk.bf16.mxu1 %vm5291_vm0, %v5290_v0 }
0x16ef   :  { %v2129_v37 = vpop.f32.mrb[60].mxu1 }
0x16f0   :  { %v2135_v9 = vadd.f32 %v2129_v37, %v1946_v24  ;;  %v4881_v38 = vpop.f32.mrb[61].mxu1 }
0x16f1   :  { %v2132_v40 = vpop.f32.mrb[62].mxu1 }
0x16f2   :  { %v2137_v49 = vadd.f32 %v2135_v9, %v5431_v39  ;;  %v4882_v41 = vpop.f32.mrb[63].mxu1  ;;  %v2161_v39 = vpop.xlane.xlu1 %2160  ;;  %v4489_v9 = vld [vmem:[%s6056_s2 + $0x19] ss:$0 sm:$0xff] }
0x16f4   :  { %v5690_v42 = vadd.f32 %v5649_v51, %v2137_v49  ;;  %v2165_v51 = vmul.f32 0.03125, %v2161_v39 }
0x16f6   :  { %v2150_v43 = vsel %vm247_vm5, %v5690_v42, 0.0  ;;  %v2167_v53 = vadd.f32 1e-05, %v2165_v51 }
0x16f7   :  { %2151 = vadd.xlane.f32.xlu0 %v2150_v43 }
0x16f8   :  { %5183 = vrsqrt.f32 %v2167_v53 }
0x1702   :  { %v5184_v57 = vpop.eup %5183 }
0x1703   :  { %v2171_v59 = vmul.f32 %v5184_v57, %v5667_v3  ;;  %v5120_v3 = vld [vmem:[#allocation2 + $0x60] sm:$0xff]   ;;  %v5125_v57 = vld [vmem:[#allocation2 + $0x88] sm:$0xff]  }
0x1704   :  { %4892 = vmatpush3.bf16.msra.mxu1 %v5120_v3 }
0x1705   :  { %v2177_v58 = vmul.f32 %v4478_v63, %v2171_v59  ;;  %4893 = vmatprep.subr.bf16.mxu1 %v5290_v0 }
0x1707   :  { %v2183_v5 = vadd.f32 %v4479_v2, %v2177_v58 }
0x1708   :  { %4894 = vmatpush3.bf16.msra.mxu1 %v5121_v14 }
0x1709   :  { %4895 = vmatprep.subr.bf16.mxu1 %v5290_v0 }
0x170c   :  { %4896 = vmatpush3.bf16.msra.mxu1 %v5122_v28  ;;  %v4491_v28 = vld [vmem:[%s6056_s2 + $0x1b] ss:$0 sm:$0xff] }
0x170d   :  { %4897 = vmatprep.subr.bf16.mxu1 %v5290_v0 }
0x1710   :  { %4898 = vmatpush3.bf16.msra.mxu1 %v5123_v8 }
0x1711   :  { %4917 = vmatprep.subr.bf16.mxu1 %v5290_v0 }
0x1784   :  { %v2152_v44 = vpop.xlane.xlu0 %2151 }
0x1785   :  { %v2154_v45 = vmul.f32 0.03125, %v2152_v44 }
0x1787   :  { %v2156_v46 = vsub.f32 %v5690_v42, %v2154_v45 }
0x1789   :  { %v2158_v47 = vmul.f32 %v2156_v46, %v2156_v46 }
0x178b   :  { %v2162_v48 = vsel %vm247_vm5, %v2158_v47, 0.0 }
0x178c   :  { %2163 = vadd.xlane.f32.xlu1 %v2162_v48 }
0x1819   :  { %v2164_v54 = vpop.xlane.xlu1 %2163 }
0x181a   :  { %v2166_v55 = vmul.f32 0.03125, %v2164_v54 }
0x181c   :  { %v2168_v56 = vadd.f32 1e-05, %v2166_v55 }
0x181e   :  { %5185 = vrsqrt.f32 %v2168_v56  ;;  %v5124_v56 = vld [vmem:[#allocation2 + $0x80] sm:$0xff]  }
0x1828   :  { %v5186_v36 = vpop.eup %5185 }
0x1829   :  { %v2172_v1 = vmul.f32 %v5186_v36, %v2156_v46 }
0x182b   :  { %v2178_v4 = vmul.f32 %v4478_v63, %v2172_v1 }
0x182d   :  { %v2184_v6 = vadd.f32 %v4479_v2, %v2178_v4 }
0x182f   :  { %v2189_v7 = vpack.c.bf16 %v2184_v6, %v2183_v5  ;;  %v4490_v5 = vld [vmem:[%s6056_s2 + $0x1a] ss:$0 sm:$0xff] }
0x1831   :  { %4888 = vmatmul.mubr.msk.bf16.vlgmr.msra.gmra.mrb[64].mxu0 %vm247_vm5, %v2189_v7 }
0x1832   :  { %4907 = vmatprep.mubr.msk.bf16.mxu0 %vm5291_vm0, %v5290_v0  ;;  %4904 = vmatpush3.bf16.msra.mxu0 %v5124_v56 }
0x1833   :  { %4905 = vmatprep.subr.bf16.mxu0 %v5290_v0 }
0x1836   :  { %4906 = vmatpush3.bf16.msra.mxu0 %v5125_v57 }
0x1837   :  { %4911 = vmatprep.subr.bf16.mxu0 %v5290_v0 }
0x1904   :  { %v2244_v11 = vpop.f32.mrb[64].mxu0 }
0x1905   :  { %v2245_v13 = vadd.f32 %v4480_v10, %v2244_v11  ;;  %v4889_v15 = vpop.f32.mrb[65].mxu0 }
0x1906   :  { %v2247_v16 = vpop.f32.mrb[66].mxu0  ;;  %v4492_v15 = vld [vmem:[%s6056_s2 + $0x1c] ss:$0 sm:$0xff] }
0x1907   :  { %v2253_v17 = vmul.f32 0.044715, %v2245_v13  ;;  %v2248_v18 = vadd.f32 %v4480_v10, %v2247_v16  ;;  %v4890_v19 = vpop.f32.mrb[67].mxu0  ;;  %v2251_v32 = vmul.f32 0.5, %v2245_v13 }
0x1909   :  { %v2255_v20 = vmul.f32 %v2253_v17, %v2245_v13  ;;  %v2254_v21 = vmul.f32 0.044715, %v2248_v18  ;;  %v2252_v61 = vmul.f32 0.5, %v2248_v18 }
0x190b   :  { %v2257_v23 = vmul.f32 %v2255_v20, %v2245_v13  ;;  %v2256_v24 = vmul.f32 %v2254_v21, %v2248_v18 }
0x190d   :  { %v2259_v60 = vadd.f32 %v2257_v23, %v2245_v13  ;;  %v2258_v22 = vmul.f32 %v2256_v24, %v2248_v18 }
0x190f   :  { %v2261_v25 = vmul.f32 0.7978846, %v2259_v60  ;;  %v2260_v26 = vadd.f32 %v2258_v22, %v2248_v18 }
0x1911   :  { %5187 = vtanh.f32 %v2261_v25  ;;  %v2262_v27 = vmul.f32 0.7978846, %v2260_v26 }
0x1913   :  { %5189 = vtanh.f32 %v2262_v27 }
0x191b   :  { %v5188_v29 = vpop.eup %5187 }
0x191c   :  { %v2265_v30 = vadd.f32 1.0, %v5188_v29 }
0x191d   :  { %v5190_v31 = vpop.eup %5189 }
0x191e   :  { %v2266_v33 = vadd.f32 1.0, %v5190_v31  ;;  %v2267_v62 = vmul.f32 %v2265_v30, %v2251_v32 }
0x1920   :  { %v2268_v34 = vmul.f32 %v2266_v33, %v2252_v61 }
0x1922   :  { %v2277_v35 = vpack.c.bf16 %v2268_v34, %v2267_v62 }
0x1924   :  { %4900 = vmatmul.mubr.msk.bf16.vlgmr.msra.gmra.mrb[64].mxu1 %vm2302_vm6, %v2277_v35 }
0x1925   :  { %4919 = vmatprep.mubr.msk.bf16.mxu1 %vm5291_vm0, %v5290_v0 }
0x19f7   :  { %v2340_v37 = vpop.f32.mrb[64].mxu1 }
0x19f8   :  { %v2347_v38 = vadd.f32 %v2340_v37, %v5652_v52  ;;  %v4901_v40 = vpop.f32.mrb[65].mxu1 }
0x19f9   :  { %v2343_v49 = vpop.f32.mrb[66].mxu1 }
0x19fa   :  { %v5722_v41 = vadd.f32 %v4489_v9, %v2347_v38  ;;  %v2348_v43 = vadd.f32 %v2343_v49, %v5690_v42  ;;  %v4902_v44 = vpop.f32.mrb[67].mxu1 }
0x19fc   :  { %v5725_v45 = vadd.f32 %v4489_v9, %v2348_v43  ;;  %v2358_v46 = vsel %vm247_vm5, %v5722_v41, 0.0 }
0x19fd   :  { %2359 = vadd.xlane.f32.xlu1 %v2358_v46 }
0x19fe   :  { %v2361_v47 = vsel %vm247_vm5, %v5725_v45, 0.0 }
0x19ff   :  { %2362 = vadd.xlane.f32.xlu0 %v2361_v47 }
0x1a8a   :  { %v2360_v48 = vpop.xlane.xlu1 %2359 }
0x1a8b   :  { %v2364_v12 = vmul.f32 0.03125, %v2360_v48 }
0x1a8c   :  { %v2363_v52 = vpop.xlane.xlu0 %2362 }
0x1a8d   :  { %v2366_v50 = vsub.f32 %v5722_v41, %v2364_v12  ;;  %v2365_v39 = vmul.f32 0.03125, %v2363_v52 }
0x1a8f   :  { %v2367_v51 = vsub.f32 %v5725_v45, %v2365_v39  ;;  %v2368_v42 = vmul.f32 %v2366_v50, %v2366_v50 }
0x1a91   :  { %v2370_v53 = vsel %vm247_vm5, %v2368_v42, 0.0  ;;  %v2369_v54 = vmul.f32 %v2367_v51, %v2367_v51 }
0x1a92   :  { %2371 = vadd.xlane.f32.xlu1 %v2370_v53 }
0x1a93   :  { %v2373_v55 = vsel %vm247_vm5, %v2369_v54, 0.0 }
0x1a94   :  { %2374 = vadd.xlane.f32.xlu0 %v2373_v55 }
0x1b1f   :  { %v2372_v59 = vpop.xlane.xlu1 %2371 }
0x1b20   :  { %v2376_v63 = vmul.f32 0.03125, %v2372_v59 }
0x1b21   :  { %v2375_v36 = vpop.xlane.xlu0 %2374 }
0x1b22   :  { %v2378_v58 = vadd.f32 1e-05, %v2376_v63  ;;  %v2377_v1 = vmul.f32 0.03125, %v2375_v36 }
0x1b24   :  { %5191 = vrsqrt.f32 %v2378_v58  ;;  %v2379_v2 = vadd.f32 1e-05, %v2377_v1 }
0x1b26   :  { %5193 = vrsqrt.f32 %v2379_v2 }
0x1b2e   :  { %v5192_v4 = vpop.eup %5191 }
0x1b2f   :  { %v2382_v6 = vmul.f32 %v5192_v4, %v2366_v50  ;;  %v2462_v4 = vld [vmem:[#allocation2 + $0x90] sm:$0xf] }
0x1b30   :  { %v5194_v7 = vpop.eup %5193 }
0x1b31   :  { %v2388_v3 = vmul.f32 %v4490_v5, %v2382_v6  ;;  %v2383_v14 = vmul.f32 %v5194_v7, %v2367_v51  ;;  %v2463_v6 = vld [vmem:[#allocation2 + $0x94] sm:$0xf] }
0x1b32   :  { %v5802_v7 = vsel %vm49_vm1, %v2463_v6, 0 }
0x1b33   :  { %v2389_v8 = vmul.f32 %v4490_v5, %v2383_v14  ;;  %v2394_v10 = vadd.f32 %v4491_v28, %v2388_v3  ;;  %v5797_v5 = vsel %vm49_vm1, %v2462_v4, 0 }
0x1b35   :  { %v2395_v11 = vadd.f32 %v4491_v28, %v2389_v8 }
0x1b37   :  { %v2400_v13 = vpack.c.bf16 %v2395_v11, %v2394_v10 }
0x1b39   :  { %4908 = vmatmul.mubr.msk.bf16.vlgmr.msra.gmra.mrb[68].mxu0 %vm247_vm5, %v2400_v13 }
0x1b3a   :  { %4913 = vmatprep.mubr.msk.bf16.mxu0 %vm5291_vm0, %v5290_v0 }
0x1c0c   :  { %v2455_v16 = vpop.f32.mrb[68].mxu0 }
0x1c0d   :  { %v5749_v17 = vadd.f32 %v4492_v15, %v2455_v16  ;;  %v4909_v18 = vpop.f32.mrb[69].mxu0 }
0x1c0e   :  { %v2458_v19 = vpop.f32.mrb[70].mxu0 }
0x1c0f   :  { %v5751_v20 = vadd.f32 %v4492_v15, %v2458_v19  ;;  %2612 = vrot.lane.b32.xlu0 %v5749_v17, %s5293_s23  ;;  %2467 = vrot.lane.b32.xlu1 %v5749_v17, %s5292_s0  ;;  %v4910_v21 = vpop.f32.mrb[71].mxu0  ;;  %v5759_v23 = vpack.c.bf16 %v5749_v17, %v5749_v17 }
0x1c11   :  { %v5854_v6 = vpack.c.bf16 %v5751_v20, %v5751_v20 }
0x1c13   :  { %2648 = vrot.lane.b32.xlu1 %v5759_v23, %s5294_s24 }
0x1c81   :  { %v2613_v24 = vpop.permute.xlu0 %2612  ;;  %v2468_v60 = vpop.permute.xlu1 %2467 }
0x1c82   :  { %2615 = vxpose.xlu0.b32.start.end [1/1] (short) (narrow) %v2613_v24, 8  ;;  %2470 = vxpose.xlu1.b32.start.end [1/1] (short) (narrow) %v2468_v60, 8 }
0x1c85   :  { %v2649_v22 = vpop.permute.xlu1 %2648 }
0x1d02   :  { %v2486_v25 = vpop.trf.xlu1  ;;  %v2631_v26 = vpop.trf.xlu0 }
0x1d03   :  { %v2503_v27 = vpack.c.bf16 %v2486_v25, %v2486_v25  ;;  %v2647_v29 = vpack.c.bf16 %v2631_v26, %v2631_v26 }
0x1d05   :  { %v2508_v30 = vsel %vm49_vm1, %v2503_v27, 0  ;;  %v2654_v31 = vsel %vm49_vm1, %v2647_v29, 0 }
0x1d06   :  { %4912 = vmatpush3.bf16.msra.mxu0 %v2508_v30 }
0x1d07   :  { %4923 = vmatprep.subr.bf16.mxu0 %v5290_v0 }
0x1d09   :  { %4914 = vmatmul.mubr.msk.bf16.vlgmr.msra.gmra.mrb[72].mxu0 %vm39_vm2, %v5759_v23 }
0x1d0a   :  { %4924 = vmatpush3.bf16.msra.mxu0 %v2654_v31  ;;  %4925 = vmatprep.mubr.msk.bf16.mxu0 %vm5291_vm0, %v5290_v0 }
0x1d0b   :  { %4935 = vmatprep.subr.bf16.mxu0 %v5290_v0 }
0x1d11   :  { %4926 = vmatmul.mubr.msk.bf16.vlgmr.msra.gmra.mrb[76].mxu0 %vm39_vm2, %v2649_v22 }
0x1d12   :  { %4937 = vmatprep.mubr.msk.bf16.mxu0 %vm5291_vm0, %v5290_v0  ;;  %4936 = vmatpush3.bf16.msra.mxu0 %v5802_v7 }
0x1d13   :  { %4947 = vmatprep.subr.bf16.mxu0 %v5290_v0 }
0x1ddc   :  { %v2544_v32 = vpop.f32.mrb[72].mxu0 }
0x1ddd   :  { %v4915_v61 = vpop.f32.mrb[73].mxu0  ;;  %v2550_v33 = vsel %vm39_vm2, %v2544_v32, -inf }
0x1dde   :  { %2551 = vmax.xlane.f32.xlu0 %v2550_v33  ;;  %v2547_v62 = vpop.f32.mrb[74].mxu0 }
0x1ddf   :  { %v4916_v34 = vpop.f32.mrb[75].mxu0 }
0x1de4   :  { %v2690_v35 = vpop.f32.mrb[76].mxu0 }
0x1de5   :  { %v4927_v37 = vpop.f32.mrb[77].mxu0  ;;  %v2696_v9 = vsel %vm39_vm2, %v2690_v35, -inf }
0x1de6   :  { %2697 = vmax.xlane.f32.xlu1 %v2696_v9  ;;  %v2693_v38 = vpop.f32.mrb[78].mxu0 }
0x1de7   :  { %v4928_v40 = vpop.f32.mrb[79].mxu0 }
0x1e6b   :  { %v2552_v49 = vpop.xlane.xlu0 %2551 }
0x1e6c   :  { %v2553_v43 = vsub.f32 %v2544_v32, %v2552_v49 }
0x1e6e   :  { %v2554_v44 = vmul.f32 1.442695, %v2553_v43 }
0x1e70   :  { %5195 = vpow2.f32 %v2554_v44 }
0x1e73   :  { %v2698_v46 = vpop.xlane.xlu1 %2697 }
0x1e74   :  { %v2699_v47 = vsub.f32 %v2690_v35, %v2698_v46 }
0x1e76   :  { %v2700_v48 = vmul.f32 1.442695, %v2699_v47 }
0x1e78   :  { %5197 = vpow2.f32 %v2700_v48 }
0x1e7a   :  { %v5196_v12 = vpop.eup %5195 }
0x1e7b   :  { %v2556_v52 = vsel %vm39_vm2, %v5196_v12, 0.0 }
0x1e7c   :  { %2557 = vadd.xlane.f32.xlu0 %v2556_v52 }
0x1e82   :  { %v5198_v50 = vpop.eup %5197 }
0x1e83   :  { %v2702_v39 = vsel %vm39_vm2, %v5198_v50, 0.0 }
0x1e84   :  { %2703 = vadd.xlane.f32.xlu1 %v2702_v39 }
0x1e92   :  { %2563 = vrot.lane.b32.xlu0 %v5759_v23, %s5288_s22 }
0x1e95   :  { %2708 = vrot.lane.b32.xlu1 %v5759_v23, %s5295_s25 }
0x1e96   :  { %2885 = vrot.lane.b32.xlu0 %v5759_v23, %s5296_s26 }
0x1e99   :  { %2849 = vrot.lane.b32.xlu1 %v5749_v17, %s5297_s27 }
0x1f09   :  { %v2558_v51 = vpop.xlane.xlu0 %2557 }
0x1f0a   :  { %5199 = vrcp.f32 %v2558_v51 }
0x1f0d   :  { %v2564_v42 = vpop.permute.xlu0 %2563 }
0x1f0e   :  { %v2569_v53 = vsel %vm49_vm1, %v2564_v42, 0 }
0x1f0f   :  { %4918 = vmatpush3.bf16.msra.mxu1 %v2569_v53  ;;  %v2464_v53 = vld [vmem:[#allocation2 + $0x98] sm:$0xf] }
0x1f10   :  { %4929 = vmatprep.subr.bf16.mxu1 %v5290_v0 }
0x1f11   :  { %v2704_v54 = vpop.xlane.xlu1 %2703  ;;  %v2886_v60 = vpop.permute.xlu0 %2885 }
0x1f12   :  { %5201 = vrcp.f32 %v2704_v54  ;;  %v5838_v54 = vsel %vm49_vm1, %v2464_v53, 0 }
0x1f14   :  { %v5200_v55 = vpop.eup %5199 }
0x1f15   :  { %v2560_v56 = vmul.f32 %v5200_v55, %v5196_v12  ;;  %v2709_v57 = vpop.permute.xlu1 %2708 }
0x1f16   :  { %v2714_v63 = vsel %vm49_vm1, %v2709_v57, 0 }
0x1f17   :  { %v2561_v59 = vpack.c.bf16 %v2560_v56, %v2560_v56 }
0x1f19   :  { %4920 = vmatmul.mubr.msk.bf16.vlgmr.msra.gmra.mrb[68].mxu1 %vm39_vm2, %v2561_v59  ;;  %v2850_v36 = vpop.permute.xlu1 %2849 }
0x1f1a   :  { %4930 = vmatpush3.bf16.msra.mxu1 %v2714_v63  ;;  %2852 = vxpose.xlu1.b32.start.end [1/1] (short) (narrow) %v2850_v36, 8 }
0x1f1b   :  { %4931 = vmatprep.mubr.msk.bf16.mxu1 %vm5291_vm0, %v5290_v0  ;;  %4941 = vmatprep.subr.bf16.mxu1 %v5290_v0 }
0x1f1c   :  { %v5202_v58 = vpop.eup %5201 }
0x1f1d   :  { %v2706_v1 = vmul.f32 %v5202_v58, %v5198_v50 }
0x1f1f   :  { %v2707_v2 = vpack.c.bf16 %v2706_v1, %v2706_v1 }
0x1f21   :  { %4932 = vmatmul.mubr.msk.bf16.vlgmr.msra.gmra.mrb[72].mxu1 %vm39_vm2, %v2707_v2 }
0x1f22   :  { %4943 = vmatprep.mubr.msk.bf16.mxu1 %vm5291_vm0, %v5290_v0  ;;  %4942 = vmatpush3.bf16.msra.mxu1 %v5797_v5 }
0x1f23   :  { %4953 = vmatprep.subr.bf16.mxu1 %v5290_v0 }
0x1f9a   :  { %v2868_v10 = vpop.trf.xlu1 }
0x1f9b   :  { %v2884_v13 = vpack.c.bf16 %v2868_v10, %v2868_v10 }
0x1f9d   :  { %v2891_v19 = vsel %vm49_vm1, %v2884_v13, 0 }
0x1fec   :  { %v2605_v3 = vpop.f32.mrb[68].mxu1 }
0x1fed   :  { %v2611_v14 = vpack.c.bf16 %v2605_v3, %v2605_v3  ;;  %v4921_v28 = vpop.f32.mrb[69].mxu1 }
0x1fee   :  { %v2608_v8 = vpop.f32.mrb[70].mxu1 }
0x1fef   :  { %v4922_v11 = vpop.f32.mrb[71].mxu1  ;;  %4944 = vmatmul.mubr.msk.bf16.vlgmr.msra.gmra.mrb[76].mxu1 %vm39_vm2, %v2611_v14 }
0x1ff0   :  { %4955 = vmatprep.mubr.msk.bf16.mxu1 %vm5291_vm0, %v5290_v0 }
0x1ff4   :  { %v2750_v15 = vpop.f32.mrb[72].mxu1 }
0x1ff5   :  { %v2756_v16 = vpack.c.bf16 %v2750_v15, %v2750_v15  ;;  %v4933_v18 = vpop.f32.mrb[73].mxu1 }
0x1ff6   :  { %v2753_v21 = vpop.f32.mrb[74].mxu1 }
0x1ff7   :  { %v4934_v24 = vpop.f32.mrb[75].mxu1  ;;  %4938 = vmatmul.mubr.msk.bf16.vlgmr.msra.gmra.mrb[80].mxu0 %vm39_vm2, %v2756_v16 }
0x1ff8   :  { %4948 = vmatpush3.bf16.msra.mxu0 %v2891_v19  ;;  %4949 = vmatprep.mubr.msk.bf16.mxu0 %vm5291_vm0, %v5290_v0 }
0x1ff9   :  { %4959 = vmatprep.subr.bf16.mxu0 %v5290_v0 }
0x1fff   :  { %4950 = vmatmul.mubr.msk.bf16.vlgmr.msra.gmra.mrb[84].mxu0 %vm39_vm2, %v2886_v60 }
0x2000   :  { %4961 = vmatprep.mubr.msk.bf16.mxu0 %vm5291_vm0, %v5290_v0  ;;  %4960 = vmatpush3.bf16.msra.mxu0 %v5838_v54 }
0x2001   :  { %4971 = vmatprep.subr.bf16.mxu0 %v5290_v0 }
0x20c2   :  { %v2843_v22 = vpop.f32.mrb[76].mxu1 }
0x20c3   :  { %v4945_v25 = vpop.f32.mrb[77].mxu1 }
0x20c4   :  { %v2846_v26 = vpop.f32.mrb[78].mxu1 }
0x20c5   :  { %v4946_v27 = vpop.f32.mrb[79].mxu1 }
0x20ca   :  { %v2797_v29 = vpop.f32.mrb[80].mxu0 }
0x20cb   :  { %v5817_v30 = vadd.f32 %v2843_v22, %v2797_v29  ;;  %v4939_v31 = vpop.f32.mrb[81].mxu0 }
0x20cc   :  { %v2800_v32 = vpop.f32.mrb[82].mxu0 }
0x20cd   :  { %v4940_v61 = vpop.f32.mrb[83].mxu0 }
0x20d2   :  { %v2927_v33 = vpop.f32.mrb[84].mxu0 }
0x20d3   :  { %v4951_v62 = vpop.f32.mrb[85].mxu0  ;;  %v2933_v34 = vsel %vm39_vm2, %v2927_v33, -inf }
0x20d4   :  { %2934 = vmax.xlane.f32.xlu0 %v2933_v34  ;;  %v2930_v35 = vpop.f32.mrb[86].mxu0  ;;  %v2465_v62 = vld [vmem:[#allocation2 + $0x9c] sm:$0xf] }
0x20d5   :  { %v4952_v37 = vpop.f32.mrb[87].mxu0  ;;  %v5881_v34 = vsel %vm49_vm1, %v2465_v62, 0 }
0x20ea   :  { %3041 = vrot.lane.b32.xlu0 %v5749_v17, %s5298_s28 }
0x20ee   :  { %2945 = vrot.lane.b32.xlu0 %v5759_v23, %s5299_s29 }
0x20f2   :  { %3077 = vrot.lane.b32.xlu0 %v5759_v23, %s5300_s1 }
0x2161   :  { %v2935_v9 = vpop.xlane.xlu0 %2934 }
0x2162   :  { %v2936_v38 = vsub.f32 %v2927_v33, %v2935_v9 }
0x2164   :  { %v2937_v40 = vmul.f32 1.442695, %v2936_v38 }
0x2165   :  { %v3042_v49 = vpop.permute.xlu0 %3041 }
0x2166   :  { %5203 = vpow2.f32 %v2937_v40  ;;  %3044 = vxpose.xlu0.b32.start.end [1/1] (short) (narrow) %v3042_v49, 8 }
0x2169   :  { %v2946_v43 = vpop.permute.xlu0 %2945 }
0x216a   :  { %v2951_v44 = vsel %vm49_vm1, %v2946_v43, 0 }
0x216b   :  { %4954 = vmatpush3.bf16.msra.mxu1 %v2951_v44 }
0x216c   :  { %4965 = vmatprep.subr.bf16.mxu1 %v5290_v0 }
0x216d   :  { %v3078_v48 = vpop.permute.xlu0 %3077 }
0x2170   :  { %v5204_v46 = vpop.eup %5203 }
0x2171   :  { %v2939_v17 = vsel %vm39_vm2, %v5204_v46, 0.0 }
0x2172   :  { %2940 = vadd.xlane.f32.xlu1 %v2939_v17 }
0x21e6   :  { %v3060_v12 = vpop.trf.xlu0 }
0x21e7   :  { %v3076_v52 = vpack.c.bf16 %v3060_v12, %v3060_v12 }
0x21e9   :  { %v3083_v42 = vsel %vm49_vm1, %v3076_v52, 0 }
0x21ff   :  { %v2941_v47 = vpop.xlane.xlu1 %2940 }
0x2200   :  { %5205 = vrcp.f32 %v2941_v47 }
0x220a   :  { %v5206_v50 = vpop.eup %5205 }
0x220b   :  { %v2943_v39 = vmul.f32 %v5206_v50, %v5204_v46 }
0x220d   :  { %v2944_v51 = vpack.c.bf16 %v2943_v39, %v2943_v39 }
0x220f   :  { %4956 = vmatmul.mubr.msk.bf16.vlgmr.msra.gmra.mrb[80].mxu1 %vm39_vm2, %v2944_v51 }
0x2210   :  { %4966 = vmatpush3.bf16.msra.mxu1 %v3083_v42  ;;  %4967 = vmatprep.mubr.msk.bf16.mxu1 %vm5291_vm0, %v5290_v0 }
0x2211   :  { %4977 = vmatprep.subr.bf16.mxu1 %v5290_v0 }
0x2217   :  { %4968 = vmatmul.mubr.msk.bf16.vlgmr.msra.gmra.mrb[84].mxu1 %vm39_vm2, %v3078_v48 }
0x2218   :  { %4979 = vmatprep.mubr.msk.bf16.mxu1 %vm5291_vm0, %v5290_v0  ;;  %4978 = vmatpush3.bf16.msra.mxu1 %v5881_v34 }
0x2219   :  { %4989 = vmatprep.subr.bf16.mxu1 %v5290_v0 }
0x22e2   :  { %v2987_v55 = vpop.f32.mrb[80].mxu1 }
0x22e3   :  { %v2993_v56 = vpack.c.bf16 %v2987_v55, %v2987_v55  ;;  %v4957_v57 = vpop.f32.mrb[81].mxu1 }
0x22e4   :  { %v2990_v59 = vpop.f32.mrb[82].mxu1 }
0x22e5   :  { %v4958_v63 = vpop.f32.mrb[83].mxu1  ;;  %4962 = vmatmul.mubr.msk.bf16.vlgmr.msra.gmra.mrb[88].mxu0 %vm39_vm2, %v2993_v56 }
0x22e6   :  { %4973 = vmatprep.mubr.msk.bf16.mxu0 %vm5291_vm0, %v5290_v0 }
0x22ea   :  { %v3119_v36 = vpop.f32.mrb[84].mxu1 }
0x22eb   :  { %v4969_v58 = vpop.f32.mrb[85].mxu1  ;;  %v3125_v1 = vsel %vm39_vm2, %v3119_v36, -inf }
0x22ec   :  { %3126 = vmax.xlane.f32.xlu1 %v3125_v1  ;;  %v3122_v2 = vpop.f32.mrb[86].mxu1 }
0x22ed   :  { %v4970_v4 = vpop.f32.mrb[87].mxu1 }
0x22fd   :  { %3234 = vrot.lane.b32.xlu1 %v5751_v20, %s5292_s0 }
0x2301   :  { %3379 = vrot.lane.b32.xlu1 %v5751_v20, %s5293_s23 }
0x2305   :  { %3137 = vrot.lane.b32.xlu1 %v5759_v23, %s5301_s30 }
0x2309   :  { %3415 = vrot.lane.b32.xlu1 %v5854_v6, %s5294_s24 }
0x2379   :  { %v3127_v3 = vpop.xlane.xlu1 %3126 }
0x237a   :  { %v3128_v14 = vsub.f32 %v3119_v36, %v3127_v3 }
0x237c   :  { %v3129_v28 = vmul.f32 1.442695, %v3128_v14 }
0x237d   :  { %v3235_v8 = vpop.permute.xlu1 %3234 }
0x237e   :  { %5207 = vpow2.f32 %v3129_v28  ;;  %3237 = vxpose.xlu1.b32.start.end [1/1] (short) (narrow) %v3235_v8, 8 }
0x2381   :  { %v3380_v10 = vpop.permute.xlu1 %3379 }
0x2385   :  { %v3138_v11 = vpop.permute.xlu1 %3137 }
0x2386   :  { %v3143_v13 = vsel %vm49_vm1, %v3138_v11, 0 }
0x2387   :  { %4972 = vmatpush3.bf16.msra.mxu0 %v3143_v13 }
0x2388   :  { %v5208_v15 = vpop.eup %5207  ;;  %4983 = vmatprep.subr.bf16.mxu0 %v5290_v0 }
0x2389   :  { %v3131_v23 = vsel %vm39_vm2, %v5208_v15, 0.0  ;;  %v3416_v22 = vpop.permute.xlu1 %3415 }
0x238a   :  { %3132 = vadd.xlane.f32.xlu0 %v3131_v23 }
0x23b7   :  { %3382 = vxpose.xlu0.b32.start.end [1/1] (short) (narrow) %v3380_v10, 8 }
0x23b8   :  { %v3034_v16 = vpop.f32.mrb[88].mxu0 }
0x23b9   :  { %v5862_v18 = vadd.f32 %v3034_v16, %v5817_v30  ;;  %v4963_v19 = vpop.f32.mrb[89].mxu0 }
0x23ba   :  { %v3037_v21 = vpop.f32.mrb[90].mxu0 }
0x23bb   :  { %v4964_v24 = vpop.f32.mrb[91].mxu0 }
0x23fe   :  { %v3253_v25 = vpop.trf.xlu1 }
0x23ff   :  { %v3270_v26 = vpack.c.bf16 %v3253_v25, %v3253_v25 }
0x2401   :  { %v3275_v32 = vsel %vm49_vm1, %v3270_v26, 0 }
0x2417   :  { %v3133_v60 = vpop.xlane.xlu0 %3132 }
0x2418   :  { %5209 = vrcp.f32 %v3133_v60 }
0x2422   :  { %v5210_v27 = vpop.eup %5209 }
0x2423   :  { %v3135_v29 = vmul.f32 %v5210_v27, %v5208_v15 }
0x2425   :  { %v3136_v31 = vpack.c.bf16 %v3135_v29, %v3135_v29 }
0x2427   :  { %4974 = vmatmul.mubr.msk.bf16.vlgmr.msra.gmra.mrb[92].mxu0 %vm39_vm2, %v3136_v31 }
0x2428   :  { %4984 = vmatpush3.bf16.msra.mxu0 %v3275_v32  ;;  %4985 = vmatprep.mubr.msk.bf16.mxu0 %vm5291_vm0, %v5290_v0 }
0x2429   :  { %4995 = vmatprep.subr.bf16.mxu0 %v5290_v0 }
0x242f   :  { %4986 = vmatmul.mubr.msk.bf16.vlgmr.msra.gmra.mrb[96].mxu0 %vm39_vm2, %v5854_v6 }
0x2430   :  { %4997 = vmatprep.mubr.msk.bf16.mxu0 %vm5291_vm0, %v5290_v0 }
0x2437   :  { %v3398_v30 = vpop.trf.xlu0 }
0x2438   :  { %v3414_v61 = vpack.c.bf16 %v3398_v30, %v3398_v30 }
0x243a   :  { %v3421_v33 = vsel %vm49_vm1, %v3414_v61, 0 }
0x243b   :  { %4996 = vmatpush3.bf16.msra.mxu0 %v3421_v33 }
0x243c   :  { %5007 = vmatprep.subr.bf16.mxu0 %v5290_v0 }
0x243e   :  { %4998 = vmatmul.mubr.msk.bf16.vlgmr.msra.gmra.mrb[100].mxu0 %vm39_vm2, %v3416_v22 }
0x243f   :  { %5008 = vmatpush3.bf16.msra.mxu0 %v5802_v7  ;;  %5009 = vmatprep.mubr.msk.bf16.mxu0 %vm5291_vm0, %v5290_v0 }
0x2440   :  { %5019 = vmatprep.subr.bf16.mxu0 %v5290_v0 }
0x24fa   :  { %v3179_v35 = vpop.f32.mrb[92].mxu0 }
0x24fb   :  { %v3185_v37 = vpack.c.bf16 %v3179_v35, %v3179_v35  ;;  %v4975_v9 = vpop.f32.mrb[93].mxu0 }
0x24fc   :  { %v3182_v38 = vpop.f32.mrb[94].mxu0 }
0x24fd   :  { %v4976_v40 = vpop.f32.mrb[95].mxu0  ;;  %4980 = vmatmul.mubr.msk.bf16.vlgmr.msra.gmra.mrb[88].mxu1 %vm39_vm2, %v3185_v37 }
0x24fe   :  { %4991 = vmatprep.mubr.msk.bf16.mxu1 %vm5291_vm0, %v5290_v0 }
0x2502   :  { %v3311_v7 = vpop.f32.mrb[96].mxu0 }
0x2503   :  { %v4987_v49 = vpop.f32.mrb[97].mxu0  ;;  %v3317_v43 = vsel %vm39_vm2, %v3311_v7, -inf }
0x2504   :  { %3318 = vmax.xlane.f32.xlu1 %v3317_v43  ;;  %v3314_v44 = vpop.f32.mrb[98].mxu0 }
0x2505   :  { %v4988_v46 = vpop.f32.mrb[99].mxu0 }
0x2511   :  { %v3457_v17 = vpop.f32.mrb[100].mxu0 }
0x2512   :  { %v4999_v47 = vpop.f32.mrb[101].mxu0  ;;  %v3463_v48 = vsel %vm39_vm2, %v3457_v17, -inf }
0x2513   :  { %3464 = vmax.xlane.f32.xlu0 %v3463_v48  ;;  %v3460_v12 = vpop.f32.mrb[102].mxu0 }
0x2514   :  { %v5000_v52 = vpop.f32.mrb[103].mxu0 }
0x2515   :  { %3330 = vrot.lane.b32.xlu1 %v5854_v6, %s5288_s22 }
0x2591   :  { %v3319_v50 = vpop.xlane.xlu1 %3318 }
0x2592   :  { %v3320_v39 = vsub.f32 %v3311_v7, %v3319_v50 }
0x2594   :  { %v3321_v51 = vmul.f32 1.442695, %v3320_v39 }
0x2595   :  { %v3331_v42 = vpop.permute.xlu1 %3330 }
0x2596   :  { %5211 = vpow2.f32 %v3321_v51  ;;  %v3336_v53 = vsel %vm49_vm1, %v3331_v42, 0 }
0x2597   :  { %4990 = vmatpush3.bf16.msra.mxu1 %v3336_v53 }
0x2598   :  { %5001 = vmatprep.subr.bf16.mxu1 %v5290_v0 }
0x25a0   :  { %v5212_v55 = vpop.eup %5211  ;;  %v3465_v56 = vpop.xlane.xlu0 %3464 }
0x25a1   :  { %v3466_v57 = vsub.f32 %v3457_v17, %v3465_v56  ;;  %v3323_v59 = vsel %vm39_vm2, %v5212_v55, 0.0  ;;  %v5945_v56 = vld [vmem:[%s6056_s2 + $0x1d] ss:$0 sm:$0xff] }
0x25a2   :  { %3324 = vadd.xlane.f32.xlu1 %v3323_v59 }
0x25a3   :  { %v3467_v63 = vmul.f32 1.442695, %v3466_v57 }
0x25a5   :  { %5213 = vpow2.f32 %v3467_v63 }
0x25af   :  { %v5214_v36 = vpop.eup %5213 }
0x25b0   :  { %v3469_v58 = vsel %vm39_vm2, %v5214_v36, 0.0 }
0x25b1   :  { %3470 = vadd.xlane.f32.xlu1 %v3469_v58 }
0x25c2   :  { %3475 = vrot.lane.b32.xlu1 %v5854_v6, %s5295_s25 }
0x25c6   :  { %3610 = vrot.lane.b32.xlu1 %v5751_v20, %s5297_s27 }
0x25ca   :  { %3646 = vrot.lane.b32.xlu1 %v5854_v6, %s5296_s26 }
0x25d0   :  { %v3226_v1 = vpop.f32.mrb[88].mxu1 }
0x25d1   :  { %v5903_v2 = vadd.f32 %v3226_v1, %v5862_v18  ;;  %v4981_v4 = vpop.f32.mrb[89].mxu1 }
0x25d2   :  { %v3229_v3 = vpop.f32.mrb[90].mxu1 }
0x25d3   :  { %v4982_v14 = vpop.f32.mrb[91].mxu1 }
0x262f   :  { %v3325_v28 = vpop.xlane.xlu1 %3324 }
0x2630   :  { %5215 = vrcp.f32 %v3325_v28 }
0x263a   :  { %v5216_v8 = vpop.eup %5215 }
0x263b   :  { %v3327_v10 = vmul.f32 %v5216_v8, %v5212_v55  ;;  %v3988_v55 = vadd.f32 %v5903_v2, %v5722_v41 }
0x263d   :  { %v3328_v11 = vpack.c.bf16 %v3327_v10, %v3327_v10  ;;  %v5948_v57 = vadd.f32 %v5945_v56, %v3988_v55  ;;  %v5127_v55 = vld [vmem:[#allocation2 + $0xa8] sm:$0xff]  }
0x263e   :  { %v3471_v13 = vpop.xlane.xlu1 %3470 }
0x263f   :  { %5217 = vrcp.f32 %v3471_v13  ;;  %4992 = vmatmul.mubr.msk.bf16.vlgmr.msra.gmra.mrb[92].mxu1 %vm39_vm2, %v3328_v11  ;;  %v3999_v59 = vsel %vm247_vm5, %v5948_v57, 0.0 }
0x2640   :  { %5003 = vmatprep.mubr.msk.bf16.mxu1 %vm5291_vm0, %v5290_v0 }
0x2642   :  { %v3476_v15 = vpop.permute.xlu1 %3475 }
0x2643   :  { %v3481_v23 = vsel %vm49_vm1, %v3476_v15, 0 }
0x2644   :  { %5002 = vmatpush3.bf16.msra.mxu1 %v3481_v23 }
0x2645   :  { %5013 = vmatprep.subr.bf16.mxu1 %v5290_v0 }
0x2646   :  { %v3611_v16 = vpop.permute.xlu1 %3610 }
0x2647   :  { %3613 = vxpose.xlu0.b32.start.end [1/1] (short) (narrow) %v3611_v16, 8 }
0x2649   :  { %v5218_v18 = vpop.eup %5217 }
0x264a   :  { %v3473_v19 = vmul.f32 %v5218_v18, %v5214_v36  ;;  %v3647_v62 = vpop.permute.xlu1 %3646 }
0x264c   :  { %v3474_v21 = vpack.c.bf16 %v3473_v19, %v3473_v19 }
0x264e   :  { %5004 = vmatmul.mubr.msk.bf16.vlgmr.msra.gmra.mrb[96].mxu1 %vm39_vm2, %v3474_v21 }
0x264f   :  { %5014 = vmatpush3.bf16.msra.mxu1 %v5797_v5  ;;  %5015 = vmatprep.mubr.msk.bf16.mxu1 %vm5291_vm0, %v5290_v0 }
0x2650   :  { %5025 = vmatprep.subr.bf16.mxu1 %v5290_v0 }
0x26c7   :  { %v3629_v27 = vpop.trf.xlu0 }
0x26c8   :  { %v3645_v29 = vpack.c.bf16 %v3629_v27, %v3629_v27 }
0x26ca   :  { %v3652_v30 = vsel %vm49_vm1, %v3645_v29, 0 }
0x2712   :  { %v3372_v24 = vpop.f32.mrb[92].mxu1 }
0x2713   :  { %v3378_v60 = vpack.c.bf16 %v3372_v24, %v3372_v24  ;;  %v4993_v22 = vpop.f32.mrb[93].mxu1 }
0x2714   :  { %v3375_v25 = vpop.f32.mrb[94].mxu1 }
0x2715   :  { %v4994_v26 = vpop.f32.mrb[95].mxu1  ;;  %5016 = vmatmul.mubr.msk.bf16.vlgmr.msra.gmra.mrb[100].mxu1 %vm39_vm2, %v3378_v60 }
0x2716   :  { %5027 = vmatprep.mubr.msk.bf16.mxu1 %vm5291_vm0, %v5290_v0 }
0x2721   :  { %v3517_v31 = vpop.f32.mrb[96].mxu1 }
0x2722   :  { %v3523_v32 = vpack.c.bf16 %v3517_v31, %v3517_v31  ;;  %v5005_v5 = vpop.f32.mrb[97].mxu1 }
0x2723   :  { %v3520_v61 = vpop.f32.mrb[98].mxu1 }
0x2724   :  { %v5006_v33 = vpop.f32.mrb[99].mxu1  ;;  %5010 = vmatmul.mubr.msk.bf16.vlgmr.msra.gmra.mrb[104].mxu0 %vm39_vm2, %v3523_v32 }
0x2725   :  { %5020 = vmatpush3.bf16.msra.mxu0 %v3652_v30  ;;  %5021 = vmatprep.mubr.msk.bf16.mxu0 %vm5291_vm0, %v5290_v0 }
0x2726   :  { %5031 = vmatprep.subr.bf16.mxu0 %v5290_v0 }
0x272c   :  { %5022 = vmatmul.mubr.msk.bf16.vlgmr.msra.gmra.mrb[108].mxu0 %vm39_vm2, %v3647_v62 }
0x272d   :  { %5032 = vmatpush3.bf16.msra.mxu0 %v5838_v54  ;;  %5033 = vmatprep.mubr.msk.bf16.mxu0 %vm5291_vm0, %v5290_v0 }
0x272e   :  { %5043 = vmatprep.subr.bf16.mxu0 %v5290_v0 }
0x27e8   :  { %v3604_v35 = vpop.f32.mrb[100].mxu1 }
0x27e9   :  { %v5017_v37 = vpop.f32.mrb[101].mxu1 }
0x27ea   :  { %v3607_v9 = vpop.f32.mrb[102].mxu1 }
0x27eb   :  { %v5018_v38 = vpop.f32.mrb[103].mxu1 }
0x27f7   :  { %v3561_v40 = vpop.f32.mrb[104].mxu0 }
0x27f8   :  { %v5928_v7 = vadd.f32 %v3604_v35, %v3561_v40  ;;  %v5011_v49 = vpop.f32.mrb[105].mxu0 }
0x27f9   :  { %v3564_v43 = vpop.f32.mrb[106].mxu0 }
0x27fa   :  { %v5012_v44 = vpop.f32.mrb[107].mxu0 }
0x27ff   :  { %v3688_v46 = vpop.f32.mrb[108].mxu0 }
0x2800   :  { %v5023_v17 = vpop.f32.mrb[109].mxu0  ;;  %v3694_v47 = vsel %vm39_vm2, %v3688_v46, -inf }
0x2801   :  { %3695 = vmax.xlane.f32.xlu1 %v3694_v47  ;;  %v3691_v54 = vpop.f32.mrb[110].mxu0 }
0x2802   :  { %v5024_v48 = vpop.f32.mrb[111].mxu0 }
0x2812   :  { %3799 = vrot.lane.b32.xlu1 %v5751_v20, %s5298_s28 }
0x2816   :  { %3706 = vrot.lane.b32.xlu1 %v5854_v6, %s5299_s29 }
0x281a   :  { %3835 = vrot.lane.b32.xlu1 %v5854_v6, %s5300_s1 }
0x288e   :  { %v3696_v12 = vpop.xlane.xlu1 %3695 }
0x288f   :  { %v3697_v52 = vsub.f32 %v3688_v46, %v3696_v12 }
0x2891   :  { %v3698_v50 = vmul.f32 1.442695, %v3697_v52 }
0x2892   :  { %v3800_v39 = vpop.permute.xlu1 %3799 }
0x2893   :  { %5219 = vpow2.f32 %v3698_v50  ;;  %3802 = vxpose.xlu1.b32.start.end [1/1] (short) (narrow) %v3800_v39, 8 }
0x2896   :  { %v3707_v51 = vpop.permute.xlu1 %3706 }
0x2897   :  { %v3712_v42 = vsel %vm49_vm1, %v3707_v51, 0 }
0x2898   :  { %5026 = vmatpush3.bf16.msra.mxu1 %v3712_v42 }
0x2899   :  { %5037 = vmatprep.subr.bf16.mxu1 %v5290_v0 }
0x289a   :  { %v3836_v36 = vpop.permute.xlu1 %3835 }
0x289d   :  { %v5220_v53 = vpop.eup %5219 }
0x289e   :  { %v3700_v20 = vsel %vm39_vm2, %v5220_v53, 0.0 }
0x289f   :  { %3701 = vadd.xlane.f32.xlu0 %v3700_v20  ;;  %v5126_v20 = vld [vmem:[#allocation2 + $0xa0] sm:$0xff]  }
0x28ba   :  { %4000 = vadd.xlane.f32.xlu1 %v3999_v59 }
0x2913   :  { %v3818_v58 = vpop.trf.xlu1 }
0x2914   :  { %v3834_v1 = vpack.c.bf16 %v3818_v58, %v3818_v58 }
0x2916   :  { %v3841_v2 = vsel %vm49_vm1, %v3834_v1, 0 }
0x292c   :  { %v3702_v63 = vpop.xlane.xlu0 %3701 }
0x292d   :  { %5221 = vrcp.f32 %v3702_v63 }
0x2937   :  { %v5222_v4 = vpop.eup %5221 }
0x2938   :  { %v3704_v3 = vmul.f32 %v5222_v4, %v5220_v53 }
0x293a   :  { %v3705_v41 = vpack.c.bf16 %v3704_v3, %v3704_v3  ;;  %v4521_v3 = vld [vmem:[%s6056_s2 + $0x1e] ss:$0 sm:$0xff] }
0x293c   :  { %5028 = vmatmul.mubr.msk.bf16.vlgmr.msra.gmra.mrb[104].mxu1 %vm39_vm2, %v3705_v41 }
0x293d   :  { %5038 = vmatpush3.bf16.msra.mxu1 %v3841_v2  ;;  %5039 = vmatprep.mubr.msk.bf16.mxu1 %vm5291_vm0, %v5290_v0 }
0x293e   :  { %5049 = vmatprep.subr.bf16.mxu1 %v5290_v0 }
0x2944   :  { %5040 = vmatmul.mubr.msk.bf16.vlgmr.msra.gmra.mrb[108].mxu1 %vm39_vm2, %v3836_v36 }
0x2945   :  { %5050 = vmatpush3.bf16.msra.mxu1 %v5881_v34  ;;  %5051 = vmatprep.mubr.msk.bf16.mxu1 %vm5291_vm0, %v5290_v0 }
0x2946   :  { %5063 = vmatprep.subr.bf16.mxu1 %v5290_v0 }
0x2947   :  { %v4001_v14 = vpop.xlane.xlu1 %4000 }
0x2948   :  { %v4005_v28 = vmul.f32 0.03125, %v4001_v14 }
0x294a   :  { %v5963_v8 = vsub.f32 %v5948_v57, %v4005_v28  ;;  %v4522_v28 = vld [vmem:[%s6056_s2 + $0x1f] ss:$0 sm:$0xff] }
0x294c   :  { %v4009_v10 = vmul.f32 %v5963_v8, %v5963_v8 }
0x294e   :  { %v4011_v11 = vsel %vm247_vm5, %v4009_v10, 0.0 }
0x294f   :  { %4012 = vadd.xlane.f32.xlu1 %v4011_v11 }
0x2a0f   :  { %v3748_v13 = vpop.f32.mrb[104].mxu1 }
0x2a10   :  { %v3754_v15 = vpack.c.bf16 %v3748_v13, %v3748_v13  ;;  %v5029_v23 = vpop.f32.mrb[105].mxu1 }
0x2a11   :  { %v3751_v34 = vpop.f32.mrb[106].mxu1  ;;  %v5129_v23 = vld [vmem:[#allocation2 + $0xb8] sm:$0xff]  }
0x2a12   :  { %v5030_v16 = vpop.f32.mrb[107].mxu1  ;;  %5034 = vmatmul.mubr.msk.bf16.vlgmr.msra.gmra.mrb[112].mxu0 %vm39_vm2, %v3754_v15  ;;  %v5130_v34 = vld [vmem:[#allocation2 + $0xc0] sm:$0xff]  }
0x2a13   :  { %5045 = vmatprep.mubr.msk.bf16.mxu0 %vm5291_vm0, %v5290_v0  ;;  %v5131_v16 = vld [vmem:[#allocation2 + $0xc8] sm:$0xff]  }
0x2a17   :  { %v3877_v18 = vpop.f32.mrb[108].mxu1 }
0x2a18   :  { %v5041_v19 = vpop.f32.mrb[109].mxu1  ;;  %v3883_v21 = vsel %vm39_vm2, %v3877_v18, -inf }
0x2a19   :  { %3884 = vmax.xlane.f32.xlu0 %v3883_v21  ;;  %v3880_v24 = vpop.f32.mrb[110].mxu1 }
0x2a1a   :  { %v5042_v60 = vpop.f32.mrb[111].mxu1 }
0x2aa6   :  { %v3885_v22 = vpop.xlane.xlu0 %3884 }
0x2aa7   :  { %v3886_v25 = vsub.f32 %v3877_v18, %v3885_v22  ;;  %v4523_v18 = vld [vmem:[%s6056_s2 + $0x20] ss:$0 sm:$0xff] }
0x2aa9   :  { %v3887_v26 = vmul.f32 1.442695, %v3886_v25 }
0x2aab   :  { %5223 = vpow2.f32 %v3887_v26 }
0x2ab5   :  { %v5224_v27 = vpop.eup %5223 }
0x2ab6   :  { %v3889_v29 = vsel %vm39_vm2, %v5224_v27, 0.0 }
0x2ab7   :  { %3890 = vadd.xlane.f32.xlu0 %v3889_v29 }
0x2acd   :  { %3895 = vrot.lane.b32.xlu0 %v5854_v6, %s5301_s30 }
0x2ae5   :  { %v3792_v31 = vpop.f32.mrb[112].mxu0 }
0x2ae6   :  { %v3798_v32 = vadd.f32 %v3792_v31, %v5928_v7  ;;  %v5035_v5 = vpop.f32.mrb[113].mxu0 }
0x2ae7   :  { %v3795_v30 = vpop.f32.mrb[114].mxu0 }
0x2ae8   :  { %v5036_v61 = vpop.f32.mrb[115].mxu0 }
0x2b44   :  { %v3891_v33 = vpop.xlane.xlu0 %3890 }
0x2b45   :  { %5225 = vrcp.f32 %v3891_v33 }
0x2b48   :  { %v3896_v62 = vpop.permute.xlu0 %3895 }
0x2b49   :  { %v3901_v35 = vsel %vm49_vm1, %v3896_v62, 0 }
0x2b4a   :  { %5044 = vmatpush3.bf16.msra.mxu0 %v3901_v35 }
0x2b4b   :  { %5055 = vmatprep.subr.bf16.mxu0 %v5290_v0 }
0x2b4f   :  { %v5226_v37 = vpop.eup %5225 }
0x2b50   :  { %v3893_v9 = vmul.f32 %v5226_v37, %v5224_v27 }
0x2b52   :  { %v3894_v38 = vpack.c.bf16 %v3893_v9, %v3893_v9 }
0x2b54   :  { %5046 = vmatmul.mubr.msk.bf16.vlgmr.msra.gmra.mrb[116].mxu0 %vm39_vm2, %v3894_v38 }
0x2b55   :  { %5059 = vmatprep.mubr.msk.bf16.mxu0 %vm5291_vm0, %v5290_v0  ;;  %5056 = vmatpush3.bf16.msra.mxu0 %v5126_v20 }
0x2b56   :  { %5057 = vmatprep.subr.bf16.mxu0 %v5290_v0 }
0x2b59   :  { %5058 = vmatpush3.bf16.msra.mxu0 %v5127_v55 }
0x2b5a   :  { %5075 = vmatprep.subr.bf16.mxu0 %v5290_v0 }
0x2c27   :  { %v3937_v6 = vpop.f32.mrb[116].mxu0 }
0x2c28   :  { %v3943_v40 = vpack.c.bf16 %v3937_v6, %v3937_v6  ;;  %v5047_v7 = vpop.f32.mrb[117].mxu0 }
0x2c29   :  { %v3940_v49 = vpop.f32.mrb[118].mxu0 }
0x2c2a   :  { %v5048_v43 = vpop.f32.mrb[119].mxu0  ;;  %5052 = vmatmul.mubr.msk.bf16.vlgmr.msra.gmra.mrb[112].mxu1 %vm39_vm2, %v3943_v40 }
0x2c2b   :  { %5071 = vmatprep.mubr.msk.bf16.mxu1 %vm5291_vm0, %v5290_v0 }
0x2cfd   :  { %v3981_v44 = vpop.f32.mrb[112].mxu1 }
0x2cfe   :  { %v3987_v46 = vadd.f32 %v3981_v44, %v3798_v32  ;;  %v5053_v17 = vpop.f32.mrb[113].mxu1 }
0x2cff   :  { %v3984_v47 = vpop.f32.mrb[114].mxu1 }
0x2d00   :  { %v3989_v54 = vadd.f32 %v3987_v46, %v5725_v45  ;;  %v5054_v48 = vpop.f32.mrb[115].mxu1  ;;  %v4013_v45 = vpop.xlane.xlu1 %4012  ;;  %v4532_v46 = vld [vmem:[%s6056_s2 + $0x21] ss:$0 sm:$0xff] }
0x2d02   :  { %v5986_v12 = vadd.f32 %v5945_v56, %v3989_v54  ;;  %v4017_v56 = vmul.f32 0.03125, %v4013_v45 }
0x2d04   :  { %v4002_v52 = vsel %vm247_vm5, %v5986_v12, 0.0  ;;  %v4019_v59 = vadd.f32 1e-05, %v4017_v56 }
0x2d05   :  { %4003 = vadd.xlane.f32.xlu0 %v4002_v52 }
0x2d06   :  { %5227 = vrsqrt.f32 %v4019_v59 }
0x2d10   :  { %v5228_v1 = vpop.eup %5227 }
0x2d11   :  { %v4023_v4 = vmul.f32 %v5228_v1, %v5963_v8  ;;  %v5128_v8 = vld [vmem:[#allocation2 + $0xb0] sm:$0xff]  }
0x2d12   :  { %5064 = vmatpush3.bf16.msra.mxu1 %v5128_v8  ;;  %v4534_v8 = vld [vmem:[%s6056_s2 + $0x23] ss:$0 sm:$0xff] }
0x2d13   :  { %v4029_v2 = vmul.f32 %v4521_v3, %v4023_v4  ;;  %5065 = vmatprep.subr.bf16.mxu1 %v5290_v0 }
0x2d15   :  { %v4035_v11 = vadd.f32 %v4522_v28, %v4029_v2 }
0x2d16   :  { %5066 = vmatpush3.bf16.msra.mxu1 %v5129_v23 }
0x2d17   :  { %5067 = vmatprep.subr.bf16.mxu1 %v5290_v0 }
0x2d1a   :  { %5068 = vmatpush3.bf16.msra.mxu1 %v5130_v34 }
0x2d1b   :  { %5069 = vmatprep.subr.bf16.mxu1 %v5290_v0 }
0x2d1e   :  { %5070 = vmatpush3.bf16.msra.mxu1 %v5131_v16 }
0x2d1f   :  { %5089 = vmatprep.subr.bf16.mxu1 %v5290_v0 }
0x2d92   :  { %v4004_v50 = vpop.xlane.xlu0 %4003 }
0x2d93   :  { %v4006_v39 = vmul.f32 0.03125, %v4004_v50 }
0x2d95   :  { %v4008_v51 = vsub.f32 %v5986_v12, %v4006_v39 }
0x2d97   :  { %v4010_v42 = vmul.f32 %v4008_v51, %v4008_v51 }
0x2d99   :  { %v4014_v53 = vsel %vm247_vm5, %v4010_v42, 0.0 }
0x2d9a   :  { %4015 = vadd.xlane.f32.xlu1 %v4014_v53 }
0x2e27   :  { %v4016_v63 = vpop.xlane.xlu1 %4015 }
0x2e28   :  { %v4018_v36 = vmul.f32 0.03125, %v4016_v63 }
0x2e2a   :  { %v4020_v58 = vadd.f32 1e-05, %v4018_v36 }
0x2e2c   :  { %5229 = vrsqrt.f32 %v4020_v58 }
0x2e36   :  { %v5230_v41 = vpop.eup %5229 }
0x2e37   :  { %v4024_v14 = vmul.f32 %v5230_v41, %v4008_v51 }
0x2e39   :  { %v4030_v10 = vmul.f32 %v4521_v3, %v4024_v14 }
0x2e3b   :  { %v4036_v13 = vadd.f32 %v4522_v28, %v4030_v10  ;;  %v4533_v28 = vld [vmem:[%s6056_s2 + $0x22] ss:$0 sm:$0xff] }
0x2e3d   :  { %v4041_v15 = vpack.c.bf16 %v4036_v13, %v4035_v11 }
0x2e3f   :  { %5060 = vmatmul.mubr.msk.bf16.vlgmr.msra.gmra.mrb[120].mxu0 %vm247_vm5, %v4041_v15 }
0x2e40   :  { %5077 = vmatprep.mubr.msk.bf16.mxu0 %vm5291_vm0, %v5290_v0 }
0x2f12   :  { %v4096_v19 = vpop.f32.mrb[120].mxu0 }
0x2f13   :  { %v4097_v21 = vadd.f32 %v4523_v18, %v4096_v19  ;;  %v5061_v24 = vpop.f32.mrb[121].mxu0  ;;  %v4247_v19 = vld [vmem:[#allocation2 + $0xd0] sm:$0x1] }
0x2f14   :  { %v4099_v60 = vpop.f32.mrb[122].mxu0  ;;  %v5133_v24 = vld [vmem:[#allocation2 + $0xe0] sm:$0xff]  }
0x2f15   :  { %v4105_v22 = vmul.f32 0.044715, %v4097_v21  ;;  %v4100_v25 = vadd.f32 %v4523_v18, %v4099_v60  ;;  %v5062_v26 = vpop.f32.mrb[123].mxu0  ;;  %v4103_v38 = vmul.f32 0.5, %v4097_v21 }
0x2f17   :  { %v4107_v27 = vmul.f32 %v4105_v22, %v4097_v21  ;;  %v4106_v29 = vmul.f32 0.044715, %v4100_v25  ;;  %v4104_v6 = vmul.f32 0.5, %v4100_v25 }
0x2f19   :  { %v4109_v31 = vmul.f32 %v4107_v27, %v4097_v21  ;;  %v4108_v32 = vmul.f32 %v4106_v29, %v4100_v25  ;;  %v5134_v29 = vld [vmem:[#allocation2 + $0xe8] sm:$0xff]  }
0x2f1b   :  { %v4111_v5 = vadd.f32 %v4109_v31, %v4097_v21  ;;  %v4110_v30 = vmul.f32 %v4108_v32, %v4100_v25  ;;  %v5132_v21 = vld [vmem:[#allocation2 + $0xd8] sm:$0xff]   ;;  %v4536_v31 = vld [vmem:[%s6056_s2 + $0x24] ss:$0 sm:$0xff] }
0x2f1d   :  { %v4113_v61 = vmul.f32 0.7978846, %v4111_v5  ;;  %v4112_v33 = vadd.f32 %v4110_v30, %v4100_v25 }
0x2f1f   :  { %5231 = vtanh.f32 %v4113_v61  ;;  %v4114_v62 = vmul.f32 0.7978846, %v4112_v33 }
0x2f21   :  { %5233 = vtanh.f32 %v4114_v62 }
0x2f29   :  { %v5232_v35 = vpop.eup %5231 }
0x2f2a   :  { %v4117_v37 = vadd.f32 1.0, %v5232_v35  ;;  %v4540_v35 = vld [vmem:[%s6056_s2 + $0x25] ss:$0 sm:$0xff] }
0x2f2b   :  { %v5234_v9 = vpop.eup %5233 }
0x2f2c   :  { %v4118_v40 = vadd.f32 1.0, %v5234_v9  ;;  %v4119_v7 = vmul.f32 %v4117_v37, %v4103_v38 }
0x2f2e   :  { %v4120_v49 = vmul.f32 %v4118_v40, %v4104_v6 }
0x2f30   :  { %v4129_v43 = vpack.c.bf16 %v4120_v49, %v4119_v7 }
0x2f32   :  { %5072 = vmatmul.mubr.msk.bf16.vlgmr.msra.gmra.mrb[116].mxu1 %vm2302_vm6, %v4129_v43 }
0x2f33   :  { %5091 = vmatprep.mubr.msk.bf16.mxu1 %vm5291_vm0, %v5290_v0  ;;  %5090 = vmatpush3.bf16.msra.mxu1 %v5134_v29 }
0x3005   :  { %v4191_v44 = vpop.f32.mrb[116].mxu1 }
0x3006   :  { %v4198_v17 = vadd.f32 %v4191_v44, %v5948_v57  ;;  %v5073_v47 = vpop.f32.mrb[117].mxu1 }
0x3007   :  { %v4194_v54 = vpop.f32.mrb[118].mxu1 }
0x3008   :  { %v4205_v48 = vadd.f32 %v4532_v46, %v4198_v17  ;;  %v4199_v52 = vadd.f32 %v4194_v54, %v5986_v12  ;;  %v5074_v50 = vpop.f32.mrb[119].mxu1 }
0x300a   :  { %v4206_v39 = vadd.f32 %v4532_v46, %v4199_v52  ;;  %v4209_v51 = vsel %vm247_vm5, %v4205_v48, 0.0 }
0x300b   :  { %4210 = vadd.xlane.f32.xlu1 %v4209_v51 }
0x300c   :  { %v4212_v42 = vsel %vm247_vm5, %v4206_v39, 0.0 }
0x300d   :  { %4213 = vadd.xlane.f32.xlu0 %v4212_v42 }
0x3098   :  { %v4211_v53 = vpop.xlane.xlu1 %4210 }
0x3099   :  { %v4215_v20 = vmul.f32 0.03125, %v4211_v53 }
0x309a   :  { %v4214_v55 = vpop.xlane.xlu0 %4213 }
0x309b   :  { %v4217_v45 = vsub.f32 %v4205_v48, %v4215_v20  ;;  %v4216_v56 = vmul.f32 0.03125, %v4214_v55 }
0x309d   :  { %v4218_v59 = vsub.f32 %v4206_v39, %v4216_v56  ;;  %v4219_v57 = vmul.f32 %v4217_v45, %v4217_v45 }
0x309f   :  { %v4221_v63 = vsel %vm247_vm5, %v4219_v57, 0.0  ;;  %v4220_v36 = vmul.f32 %v4218_v59, %v4218_v59 }
0x30a0   :  { %4222 = vadd.xlane.f32.xlu1 %v4221_v63 }
0x30a1   :  { %v4224_v12 = vsel %vm247_vm5, %v4220_v36, 0.0 }
0x30a2   :  { %4225 = vadd.xlane.f32.xlu0 %v4224_v12 }
0x312d   :  { %v4223_v58 = vpop.xlane.xlu1 %4222 }
0x312e   :  { %v4227_v1 = vmul.f32 0.03125, %v4223_v58 }
0x312f   :  { %v4226_v4 = vpop.xlane.xlu0 %4225 }
0x3130   :  { %v4229_v3 = vadd.f32 1e-05, %v4227_v1  ;;  %v4228_v41 = vmul.f32 0.03125, %v4226_v4 }
0x3132   :  { %5235 = vrsqrt.f32 %v4229_v3  ;;  %v4230_v2 = vadd.f32 1e-05, %v4228_v41 }
0x3134   :  { %5237 = vrsqrt.f32 %v4230_v2 }
0x313c   :  { %v5236_v14 = vpop.eup %5235 }
0x313d   :  { %v4233_v10 = vmul.f32 %v5236_v14, %v4217_v45 }
0x313e   :  { %v5238_v11 = vpop.eup %5237 }
0x313f   :  { %v4234_v13 = vmul.f32 %v5238_v11, %v4218_v59  ;;  %v4239_v15 = vmul.f32 %v4533_v28, %v4233_v10 }
0x3141   :  { %v4240_v23 = vmul.f32 %v4533_v28, %v4234_v13  ;;  %v4245_v34 = vadd.f32 %v4534_v8, %v4239_v15 }
0x3143   :  { %v4246_v16 = vadd.f32 %v4534_v8, %v4240_v23 }
0x3145   :  { %v4248_v18 = vpack.c.bf16 %v4246_v16, %v4245_v34 }
0x3147   :  { %5076 = vmatpush3.bf16.msra.mxu0 %v4248_v18 }
0x3148   :  { %5081 = vmatprep.subr.bf16.mxu0 %v5290_v0 }
0x314a   :  { %5078 = vmatmul.mubr.msk.bf16.vlgmr.msra.gmra.mrb[124].mxu0 %vm4249_vm7, %v4247_v19 }
0x314b   :  { %5082 = vmatpush3.bf16.msra.mxu0 %v5132_v21  ;;  %5085 = vmatprep.mubr.msk.bf16.mxu0 %vm5291_vm0, %v5290_v0 }
0x314c   :  { %5083 = vmatprep.subr.bf16.mxu0 %v5290_v0 }
0x314f   :  { %5084 = vmatpush3.bf16.msra.mxu0 %v5133_v24 }
0x321d   :  { %v4287_v60 = vpop.f32.mrb[124].mxu0 }
0x321e   :  { %v4297_v22 = vpack.c.bf16 %v4287_v60, %v4287_v60  ;;  %v5079_v25 = vpop.f32.mrb[125].mxu0 }
0x321f   :  { %v4290_v26 = vpop.f32.mrb[126].mxu0 }
0x3220   :  { %v5080_v27 = vpop.f32.mrb[127].mxu0  ;;  %5086 = vmatmul.mubr.msk.bf16.vlgmr.msra.gmra.mrb[128].mxu0 %vm247_vm5, %v4297_v22 }
0x32f3   :  { %v4352_v32 = vpop.f32.mrb[128].mxu0 }
0x32f4   :  { %v4353_v5 = vadd.f32 %v4536_v31, %v4352_v32  ;;  %v5087_v30 = vpop.f32.mrb[129].mxu0 }
0x32f5   :  { %v4355_v61 = vpop.f32.mrb[130].mxu0 }
0x32f6   :  { %v4358_v0 = vmax.f32 %v4353_v5, 0.0  ;;  %v5088_v33 = vpop.f32.mrb[131].mxu0 }
0x32f8   :  { %v4361_v62 = vpack.c.bf16 %v4358_v0, %v4358_v0 }
0x32fa   :  { %5092 = vmatmul.mubr.msk.bf16.vlgmr.msra.gmra.mrb[120].mxu1 %vm4249_vm7, %v4361_v62 }
0x33cd   :  { %v4410_v37 = vpop.f32.mrb[120].mxu1 }
0x33ce   :  { %v4411_v9 = vadd.f32 %v4540_v35, %v4410_v37  ;;  %v5093_v38 = vpop.f32.mrb[121].mxu1 }
0x33cf   :  { %v4413_v6 = vpop.f32.mrb[122].mxu1 }
0x33d0   :  { %4416 = vst [vmem:[#allocation5] sm:$0x3] %v4411_v9  ;;  %v5094_v40 = vpop.f32.mrb[123].mxu1 }
0x33d1   :  { %5272 = shalt.err (!%p5269_p12)
}
0x33d2   :  { %s5273_s2 = scalar_lea.hbm %s6057_s3, 32 }
0x33d3   :  { %p5274_p13 = scmp.ne.s32.totalorder %s6057_s3, %s5273_s2  ;;  %p5277_p0 = scmp.lt.u32.totalorder %s5273_s2, %s6057_s3 }
0x33d5   :  { %p5279_p1 = pnand %p5277_p0, %p5274_p13 }
0x33d7   :  { %5282 = shalt.err (!%p5279_p1)
}
0x33d8   :  { %4426 = dma.vmem_to_hbm [thread:$0]  %s4424_s10, 32, %s6057_s3, [#allocation4]  }
0x33d9   :  { %5285 = dma.done.wait [#allocation4], 32  }
0x33da   :  { %5286 = vsyncadd [#allocation4], 4294967264 }
0x33db   :  { %4430 = vsyncpa [#allocation3], 1 }
0x33dc   :  { %4431 = vsyncpa [#allocation4], 1 }

</bundles_post_ra>
